<compile_context>
chip_gen: v7x
topology: tpu7x:2x2x1
jax: 0.10.0
libtpu: 0.0.40
codegen_flags: <defaults>
</compile_context>

<pallas_src>
import functools

import jax
import jax.numpy as jnp
from jax.experimental import pallas as pl
from jax.experimental.pallas import tpu as pltpu


def _multibox_loss_kernel(targets_ref, loc_ref, conf_ref, priors_ref, out_ref,
                          *, threshold, negpos_ratio, inv_v1, batch):
    # targets_ref: (O, Bt, 5)   GT boxes (point form) + label, f32
    # loc_ref:     (4, Bt, P)   predicted offsets (native dtype), prior axis on lanes
    # conf_ref:    (C, Bt, P)   class logits (native dtype), prior axis on lanes
    # priors_ref:  (16, P)      precomputed per-prior rows (see wrapper), f32
    # out_ref:     (1, 1, 128)  lanes 0/1/2 = [loss_l, loss_c, num_pos] for this tile
    O, Bt, _ = targets_ref.shape
    C = conf_ref.shape[0]
    P = priors_ref.shape[1]
    f32 = jnp.float32

    # ---- per-prior precomputed rows, each (1, P) -------------------------------
    pr = priors_ref[...]
    px1 = pr[0:1, :]; py1 = pr[1:2, :]; px2 = pr[2:3, :]; py2 = pr[3:4, :]
    pcx = pr[4:5, :]; pcy = pr[5:6, :]
    inv_v0pw = pr[6:7, :]; inv_v0ph = pr[7:8, :]
    logpw = pr[8:9, :]; logph = pr[9:10, :]
    area_p = pr[10:11, :]

    tt = targets_ref[...].astype(f32)                              # (O, Bt, 5)
    lane_i = jax.lax.broadcasted_iota(jnp.int32, (1, P), 1)        # (1, P)

    # ---- matching: unrolled loop over the (small) GT axis ----------------------
    # Every intermediate stays (Bt, P); O-axis "reductions" are running VPU
    # max/selects instead of cross-sublane XLU reduces.
    bt_ovl = jnp.full((Bt, P), -1.0, f32)        # best GT overlap per prior
    bt_idx = jnp.zeros((Bt, P), jnp.int32)       # best GT index per prior (first max)
    forced_any = jnp.zeros((Bt, P), jnp.bool_)
    forced_j = jnp.zeros((Bt, P), jnp.int32)
    coords = []
    for o in range(O):
        tx1 = tt[o, :, 0:1]; ty1 = tt[o, :, 1:2]                   # (Bt, 1)
        tx2 = tt[o, :, 2:3]; ty2 = tt[o, :, 3:4]
        lab = tt[o, :, 4:5]
        coords.append((tx1, ty1, tx2, ty2, lab))

        iw = jnp.maximum(jnp.minimum(px2, tx2) - jnp.maximum(px1, tx1), 0.0)
        ih = jnp.maximum(jnp.minimum(py2, ty2) - jnp.maximum(py1, ty1), 0.0)
        inter = iw * ih                                            # (Bt, P)
        area_t = (tx2 - tx1) * (ty2 - ty1)                         # (Bt, 1)
        denom = area_t + area_p - inter
        ov = jnp.where(inter > 0.0, inter / denom, 0.0)            # guard 0/0 -> 0

        better = ov > bt_ovl                    # strict > keeps first-max index
        bt_ovl = jnp.where(better, ov, bt_ovl)
        bt_idx = jnp.where(better, o, bt_idx)

        # best prior for this GT (first index among lane maxima), force it later
        bp_ovl = jnp.max(ov, axis=1, keepdims=True)                # (Bt, 1)
        bp_idx = jnp.min(jnp.where(ov == bp_ovl, lane_i, P),
                         axis=1, keepdims=True)                    # (Bt, 1)
        f = lane_i == bp_idx                                       # (Bt, P)
        forced_any = jnp.logical_or(forced_any, f)
        forced_j = jnp.where(f, o, forced_j)                       # last j wins

    # index_fill_ + "for j: best_truth_idx[best_prior_idx[j]] = j"
    bt_idx = jnp.where(forced_any, forced_j, bt_idx)
    bt_ovl = jnp.where(forced_any, 2.0, bt_ovl)

    # gather matched GT box & label per prior (unrolled selects over O)
    mx1 = jnp.zeros((Bt, P), f32); my1 = jnp.zeros((Bt, P), f32)
    mx2 = jnp.zeros((Bt, P), f32); my2 = jnp.zeros((Bt, P), f32)
    mlab = jnp.zeros((Bt, P), f32)
    for o in range(O):
        tx1, ty1, tx2, ty2, lab = coords[o]
        m = bt_idx == o
        mx1 = jnp.where(m, tx1, mx1); my1 = jnp.where(m, ty1, my1)
        mx2 = jnp.where(m, tx2, mx2); my2 = jnp.where(m, ty2, my2)
        mlab = jnp.where(m, lab, mlab)

    cls_f = jnp.where(bt_ovl < threshold, 0.0, mlab + 1.0)         # (Bt, P)
    pos = cls_f > 0.5
    cls_i = cls_f.astype(jnp.int32)

    # ---- encode(matched, priors, variance) + Smooth-L1 loc loss ----------------
    g_cx = ((mx1 + mx2) * 0.5 - pcx) * inv_v0pw
    g_cy = ((my1 + my2) * 0.5 - pcy) * inv_v0ph
    g_w = (jnp.log(mx2 - mx1) - logpw) * inv_v1
    g_h = (jnp.log(my2 - my1) - logph) * inv_v1

    def smooth_l1(d):
        ad = jnp.abs(d)
        return jnp.where(ad < 1.0, 0.5 * ad * ad, ad - 0.5)

    loss_l_per = (smooth_l1(loc_ref[0].astype(f32) - g_cx)
                  + smooth_l1(loc_ref[1].astype(f32) - g_cy)
                  + smooth_l1(loc_ref[2].astype(f32) - g_w)
                  + smooth_l1(loc_ref[3].astype(f32) - g_h))       # (Bt, P)
    loss_l_img = jnp.sum(jnp.where(pos, loss_l_per, 0.0),
                         axis=1, keepdims=True)                    # (Bt, 1)

    # ---- per-prior cross entropy: exactly two sweeps over conf -----------------
    cmax = conf_ref[0].astype(f32)
    for c in range(1, C):
        cmax = jnp.maximum(cmax, conf_ref[c].astype(f32))          # sweep 1: max
    esum = jnp.zeros((Bt, P), f32)
    gathered = jnp.zeros((Bt, P), f32)
    for c in range(C):                                             # sweep 2: fused
        cf_c = conf_ref[c].astype(f32)
        esum = esum + jnp.exp(cf_c - cmax)
        gathered = jnp.where(cls_i == c, cf_c, gathered)
    ce = jnp.log(esum) + cmax - gathered                           # (Bt, P)

    # ---- hard negative mining without sort or (P,P) rank matrix ----------------
    # Exact num_neg-th largest value of lmine per image via unrolled bit-level
    # binary search (f32 >= 0 has order-preserving int32 bit pattern), then
    # threshold + tie-count arithmetic -> identical loss_c to the sort semantics.
    lmine = jnp.where(pos, 0.0, ce)                                # (Bt, P), >= 0
    bits = jnp.bitwise_and(pltpu.bitcast(lmine, jnp.int32),
                           jnp.int32(0x7FFFFFFF))                  # clear -0.0
    npos_i = jnp.sum(pos.astype(jnp.int32), axis=1, keepdims=True)  # (Bt, 1)
    k = jnp.minimum(negpos_ratio * npos_i, P - 1)                  # (Bt, 1)

    lo = jnp.zeros((Bt, 1), jnp.int32)
    hi = jnp.max(bits, axis=1, keepdims=True) + 1                  # tight bound
    # hi <= 0x7F800000 < 2^31, so 31 unrolled halvings reduce the interval to 1.
    for _ in range(31):
        mid = lo + ((hi - lo) >> 1)
        cnt = jnp.sum((bits >= mid).astype(jnp.int32), axis=1, keepdims=True)
        ok = cnt >= k
        lo = jnp.where(ok, mid, lo)
        hi = jnp.where(ok, hi, mid)
    thresh = pltpu.bitcast(lo, f32)                                # (Bt, 1)

    gt_mask = lmine > thresh
    count_gt = jnp.sum(gt_mask.astype(jnp.int32), axis=1, keepdims=True)
    neg_gt_sum = jnp.sum(jnp.where(gt_mask, lmine, 0.0), axis=1, keepdims=True)
    pos_ce_sum = jnp.sum(jnp.where(pos, ce, 0.0), axis=1, keepdims=True)
    tie_sum = (k - count_gt).astype(f32) * thresh
    loss_c_img = pos_ce_sum + jnp.where(k > 0, neg_gt_sum + tie_sum, 0.0)

    # ---- mask padded images, reduce over the tile, write lane-dense row --------
    img_idx = (pl.program_id(0) * Bt
               + jax.lax.broadcasted_iota(jnp.int32, (Bt, 1), 0))
    valid = img_idx < batch                                        # (Bt, 1)
    loss_l_t = jnp.sum(jnp.where(valid, loss_l_img, 0.0))
    loss_c_t = jnp.sum(jnp.where(valid, loss_c_img, 0.0))
    npos_t = jnp.sum(jnp.where(valid, npos_i.astype(f32), 0.0))

    lane = jax.lax.broadcasted_iota(jnp.int32, (1, 128), 1)
    out_ref[0] = (jnp.where(lane == 0, loss_l_t, 0.0)
                  + jnp.where(lane == 1, loss_c_t, 0.0)
                  + jnp.where(lane == 2, npos_t, 0.0))


def multibox_loss_pallas(loc_data, conf_data, priors, targets,
                         threshold=0.5, negpos_ratio=3, variance=(0.1, 0.2),
                         b_tile=8):
    B, P, _ = loc_data.shape
    C = conf_data.shape[2]
    O = targets.shape[1]
    v0, v1 = variance

    Bp = ((B + b_tile - 1) // b_tile) * b_tile
    n_tiles = Bp // b_tile
    pad = Bp - B

    # Keep loc/conf in their native dtype (bf16 stays bf16 over HBM->VMEM);
    # the kernel upcasts per (Bt, P) slice.  The only wrapper-side pass over
    # them is the single layout transpose putting the prior axis on lanes.
    loc_n = loc_data
    conf_n = conf_data
    tgt_f = targets.astype(jnp.float32)
    if pad:
        # benign dummy images (finite everywhere); masked out inside the kernel
        loc_n = jnp.concatenate([loc_n, jnp.zeros((pad, P, 4), loc_n.dtype)], axis=0)
        conf_n = jnp.concatenate([conf_n, jnp.zeros((pad, P, C), conf_n.dtype)], axis=0)
        dummy = jnp.broadcast_to(
            jnp.array([0.25, 0.25, 0.75, 0.75, 0.0], jnp.float32), (pad, O, 5))
        tgt_f = jnp.concatenate([tgt_f, dummy], axis=0)

    # lane-dense layouts: prior axis last; GT axis major on targets
    loc_r = jnp.transpose(loc_n, (2, 0, 1))      # (4, Bp, P), native dtype
    conf_r = jnp.transpose(conf_n, (2, 0, 1))    # (C, Bp, P), native dtype
    tgt_r = jnp.transpose(tgt_f, (1, 0, 2))      # (O, Bp, 5)

    # hoisted prior-only precompute (identical for every image / grid step)
    pf = priors.astype(jnp.float32)
    pcx, pcy, pw, ph = pf[:, 0], pf[:, 1], pf[:, 2], pf[:, 3]
    px1 = pcx - 0.5 * pw; py1 = pcy - 0.5 * ph
    px2 = pcx + 0.5 * pw; py2 = pcy + 0.5 * ph
    rows = jnp.stack([px1, py1, px2, py2, pcx, pcy,
                      1.0 / (v0 * pw), 1.0 / (v0 * ph),
                      jnp.log(pw), jnp.log(ph),
                      (px2 - px1) * (py2 - py1)], axis=0)                  # (11, P)
    priors_pre = jnp.concatenate([rows, jnp.zeros((5, P), jnp.float32)], axis=0)  # (16, P)

    kernel = functools.partial(
        _multibox_loss_kernel, threshold=float(threshold),
        negpos_ratio=int(negpos_ratio), inv_v1=float(1.0 / v1), batch=int(B))

    per_tile = pl.pallas_call(
        kernel,
        out_shape=jax.ShapeDtypeStruct((n_tiles, 1, 128), jnp.float32),
        grid_spec=pltpu.PrefetchScalarGridSpec(
            num_scalar_prefetch=0,
            grid=(n_tiles,),
            in_specs=[
                pl.BlockSpec((O, b_tile, 5), lambda b: (0, b, 0)),
                pl.BlockSpec((4, b_tile, P), lambda b: (0, b, 0)),
                pl.BlockSpec((C, b_tile, P), lambda b: (0, b, 0)),
                pl.BlockSpec((16, P), lambda b: (0, 0)),
            ],
            out_specs=pl.BlockSpec((1, 1, 128), lambda b: (b, 0, 0)),
        ),
        compiler_params=pltpu.CompilerParams(dimension_semantics=("parallel",)),
    )(tgt_r, loc_r, conf_r, priors_pre)

    loss_l = jnp.sum(per_tile[:, 0, 0])
    loss_c = jnp.sum(per_tile[:, 0, 1])
    n = jnp.sum(per_tile[:, 0, 2])     # N = total number of matched (positive) priors
    return loss_l / n, loss_c / n


class MultiBoxLoss:
    """JAX/Pallas port of the SSD MultiBoxLoss forward pass (no learnable params)."""

    def __init__(self, num_classes, overlap_thresh, prior_for_matching, bkg_label,
                 neg_mining, neg_pos, neg_overlap, encode_target):
        self.num_classes = num_classes
        self.threshold = overlap_thresh
        self.negpos_ratio = neg_pos
        self.variance = (0.1, 0.2)   # voc['variance']

    def __call__(self, predictions, targets):
        loc_data, conf_data, priors = predictions
        priors = priors[: loc_data.shape[1], :]
        return multibox_loss_pallas(loc_data, conf_data, priors, targets,
                                    threshold=self.threshold,
                                    negpos_ratio=self.negpos_ratio,
                                    variance=self.variance)


# ---------------- pure-JAX reference (mirrors the PyTorch semantics) ----------------
def multibox_loss_reference(loc_data, conf_data, priors, targets,
                            threshold=0.5, negpos_ratio=3, variance=(0.1, 0.2)):
    B, P, _ = loc_data.shape
    O = targets.shape[1]
    p_min = priors[:, :2] - priors[:, 2:] * 0.5
    p_max = priors[:, :2] + priors[:, 2:] * 0.5
    loc_ts, conf_ts = [], []
    for b in range(B):
        truths = targets[b, :, :4]
        labels = targets[b, :, 4]
        imin = jnp.maximum(truths[:, None, :2], p_min[None, :, :])
        imax = jnp.minimum(truths[:, None, 2:], p_max[None, :, :])
        iwh = jnp.maximum(imax - imin, 0.0)
        inter = iwh[..., 0] * iwh[..., 1]
        area_t = (truths[:, 2] - truths[:, 0]) * (truths[:, 3] - truths[:, 1])
        area_p = (p_max[:, 0] - p_min[:, 0]) * (p_max[:, 1] - p_min[:, 1])
        overlaps = inter / (area_t[:, None] + area_p[None, :] - inter)
        best_prior_idx = jnp.argmax(overlaps, axis=1)
        best_truth_overlap = jnp.max(overlaps, axis=0)
        best_truth_idx = jnp.argmax(overlaps, axis=0)
        best_truth_overlap = best_truth_overlap.at[best_prior_idx].set(2.0)
        for j in range(O):
            best_truth_idx = best_truth_idx.at[best_prior_idx[j]].set(j)
        matched = truths[best_truth_idx]
        conf = labels[best_truth_idx] + 1.0
        conf = jnp.where(best_truth_overlap < threshold, 0.0, conf)
        g_cxcy = ((matched[:, :2] + matched[:, 2:]) * 0.5 - priors[:, :2]) / (variance[0] * priors[:, 2:])
        g_wh = jnp.log((matched[:, 2:] - matched[:, :2]) / priors[:, 2:]) / variance[1]
        loc_ts.append(jnp.concatenate([g_cxcy, g_wh], axis=1))
        conf_ts.append(conf.astype(jnp.int32))
    loc_t = jnp.stack(loc_ts)
    conf_t = jnp.stack(conf_ts)
    pos = conf_t > 0
    d = loc_data - loc_t
    ad = jnp.abs(d)
    sl1 = jnp.where(ad < 1.0, 0.5 * d * d, ad - 0.5)
    loss_l = jnp.sum(jnp.where(pos[..., None], sl1, 0.0))
    lse = jax.scipy.special.logsumexp(conf_data, axis=-1)
    gath = jnp.take_along_axis(conf_data, conf_t[..., None], axis=-1)[..., 0]
    ce = lse - gath
    lmine = jnp.where(pos, 0.0, ce)
    loss_idx = jnp.argsort(-lmine, axis=1)
    idx_rank = jnp.argsort(loss_idx, axis=1)
    num_pos = jnp.sum(pos, axis=1, keepdims=True)
    num_neg = jnp.minimum(negpos_ratio * num_pos, P - 1)
    neg = idx_rank < num_neg
    selected = pos | neg
    loss_c = jnp.sum(jnp.where(selected, ce, 0.0))
    n = jnp.sum(num_pos).astype(jnp.float32)
    return loss_l / n, loss_c / n


if __name__ == "__main__":
    key = jax.random.PRNGKey(0)
    kp1, kp2, kg1, kg2, kl, kloc, kconf = jax.random.split(key, 7)
    B, P, C, O = 2, 128, 8, 4   # batch, num_priors, num_classes, num_objects

    # priors: center form (cx, cy, w, h)
    prior_c = jax.random.uniform(kp1, (P, 2), minval=0.1, maxval=0.9)
    prior_wh = jax.random.uniform(kp2, (P, 2), minval=0.05, maxval=0.3)
    priors = jnp.concatenate([prior_c, prior_wh], axis=1).astype(jnp.float32)

    # ground-truth boxes: point form + label in [0, C-2]
    gt_c = jax.random.uniform(kg1, (B, O, 2), minval=0.2, maxval=0.8)
    gt_wh = jax.random.uniform(kg2, (B, O, 2), minval=0.1, maxval=0.5)
    gt_min = jnp.clip(gt_c - gt_wh * 0.5, 0.0, 1.0)
    gt_max = jnp.clip(gt_c + gt_wh * 0.5, 0.0, 1.0)
    labels = jax.random.randint(kl, (B, O, 1), 0, C - 1).astype(jnp.float32)
    targets = jnp.concatenate([gt_min, gt_max, labels], axis=-1).astype(jnp.float32)

    loc_data = (0.1 * jax.random.normal(kloc, (B, P, 4))).astype(jnp.float32)
    conf_data = jax.random.normal(kconf, (B, P, C)).astype(jnp.float32)

    criterion = MultiBoxLoss(num_classes=C, overlap_thresh=0.5, prior_for_matching=True,
                             bkg_label=0, neg_mining=True, neg_pos=3, neg_overlap=0.5,
                             encode_target=False)
    loss_l, loss_c = criterion((loc_data, conf_data, priors), targets)
    jax.block_until_ready((loss_l, loss_c))

    ref_l, ref_c = multibox_loss_reference(loc_data, conf_data, priors, targets)
    assert bool(jnp.isfinite(loss_l)) and bool(jnp.isfinite(loss_c))
    assert jnp.allclose(loss_l, ref_l, rtol=5e-2, atol=1e-3), (loss_l, ref_l)
    assert jnp.allclose(loss_c, ref_c, rtol=5e-2, atol=1e-3), (loss_c, ref_c)
    print("KERNEL_OK")
</pallas_src>

<mosaic_0001>
module attributes {stable_mosaic.version = 11 : i64} {
  func.func @_multibox_loss_kernel(%arg0: i32, %arg1: memref<4x8x5xf32, #tpu.memory_space<vmem>>, %arg2: memref<4x8x128xf32, #tpu.memory_space<vmem>>, %arg3: memref<8x8x128xf32, #tpu.memory_space<vmem>>, %arg4: memref<16x128xf32, #tpu.memory_space<vmem>>, %arg5: memref<1x1x128xf32, #tpu.memory_space<vmem>>) attributes {dimension_semantics = [#tpu.dimension_semantics<parallel>], iteration_bounds = array<i64: 1>, scalar_prefetch = 0 : i64, scratch_operands = 0 : i64, tpu.core_type = #tpu.core_type<tc>, window_params = [{transform_indices = @transform_0, window_bounds = array<i64: 4, 8, 5>}, {transform_indices = @transform_1, window_bounds = array<i64: 4, 8, 128>}, {transform_indices = @transform_2, window_bounds = array<i64: 8, 8, 128>}, {pipeline_mode = #tpu.pipeline_mode<synchronous>, transform_indices = @transform_3, window_bounds = array<i64: 16, 128>}, {transform_indices = @transform_4, window_bounds = array<i64: 1, 1, 128>}]} {
    %c0 = arith.constant 0 : index
    %c0_0 = arith.constant 0 : index
    %0 = vector.load %arg4[%c0, %c0_0] : memref<16x128xf32, #tpu.memory_space<vmem>>, vector<16x128xf32>
    %1 = vector.extract_strided_slice %0 {offsets = [0, 0], sizes = [1, 128], strides = [1, 1]} : vector<16x128xf32> to vector<1x128xf32>
    %2 = vector.extract_strided_slice %0 {offsets = [1, 0], sizes = [1, 128], strides = [1, 1]} : vector<16x128xf32> to vector<1x128xf32>
    %3 = vector.extract_strided_slice %0 {offsets = [2, 0], sizes = [1, 128], strides = [1, 1]} : vector<16x128xf32> to vector<1x128xf32>
    %4 = vector.extract_strided_slice %0 {offsets = [3, 0], sizes = [1, 128], strides = [1, 1]} : vector<16x128xf32> to vector<1x128xf32>
    %5 = vector.extract_strided_slice %0 {offsets = [4, 0], sizes = [1, 128], strides = [1, 1]} : vector<16x128xf32> to vector<1x128xf32>
    %6 = vector.extract_strided_slice %0 {offsets = [5, 0], sizes = [1, 128], strides = [1, 1]} : vector<16x128xf32> to vector<1x128xf32>
    %7 = vector.extract_strided_slice %0 {offsets = [6, 0], sizes = [1, 128], strides = [1, 1]} : vector<16x128xf32> to vector<1x128xf32>
    %8 = vector.extract_strided_slice %0 {offsets = [7, 0], sizes = [1, 128], strides = [1, 1]} : vector<16x128xf32> to vector<1x128xf32>
    %9 = vector.extract_strided_slice %0 {offsets = [8, 0], sizes = [1, 128], strides = [1, 1]} : vector<16x128xf32> to vector<1x128xf32>
    %10 = vector.extract_strided_slice %0 {offsets = [9, 0], sizes = [1, 128], strides = [1, 1]} : vector<16x128xf32> to vector<1x128xf32>
    %11 = vector.extract_strided_slice %0 {offsets = [10, 0], sizes = [1, 128], strides = [1, 1]} : vector<16x128xf32> to vector<1x128xf32>
    %c0_1 = arith.constant 0 : index
    %c0_2 = arith.constant 0 : index
    %c0_3 = arith.constant 0 : index
    %12 = vector.load %arg1[%c0_1, %c0_2, %c0_3] : memref<4x8x5xf32, #tpu.memory_space<vmem>>, vector<4x8x5xf32>
    %13 = tpu.iota {dimensions = array<i32: 1>} : vector<1x128xi32>
    %cst = arith.constant -1.000000e+00 : f32
    %14 = vector.broadcast %cst : f32 to vector<8x128xf32>
    %c0_i32 = arith.constant 0 : i32
    %15 = vector.broadcast %c0_i32 : i32 to vector<8x128xi32>
    %false = arith.constant false
    %16 = vector.broadcast %false : i1 to vector<8x128xi1>
    %c0_i32_4 = arith.constant 0 : i32
    %17 = vector.broadcast %c0_i32_4 : i32 to vector<8x128xi32>
    %18 = vector.extract_strided_slice %12 {offsets = [0, 0, 0], sizes = [1, 8, 1], strides = [1, 1, 1]} : vector<4x8x5xf32> to vector<1x8x1xf32>
    %19 = vector.shape_cast %18 : vector<1x8x1xf32> to vector<8x1xf32>
    %20 = vector.extract_strided_slice %12 {offsets = [0, 0, 1], sizes = [1, 8, 1], strides = [1, 1, 1]} : vector<4x8x5xf32> to vector<1x8x1xf32>
    %21 = vector.shape_cast %20 : vector<1x8x1xf32> to vector<8x1xf32>
    %22 = vector.extract_strided_slice %12 {offsets = [0, 0, 2], sizes = [1, 8, 1], strides = [1, 1, 1]} : vector<4x8x5xf32> to vector<1x8x1xf32>
    %23 = vector.shape_cast %22 : vector<1x8x1xf32> to vector<8x1xf32>
    %24 = vector.extract_strided_slice %12 {offsets = [0, 0, 3], sizes = [1, 8, 1], strides = [1, 1, 1]} : vector<4x8x5xf32> to vector<1x8x1xf32>
    %25 = vector.shape_cast %24 : vector<1x8x1xf32> to vector<8x1xf32>
    %26 = vector.extract_strided_slice %12 {offsets = [0, 0, 4], sizes = [1, 8, 1], strides = [1, 1, 1]} : vector<4x8x5xf32> to vector<1x8x1xf32>
    %27 = vector.shape_cast %26 : vector<1x8x1xf32> to vector<8x1xf32>
    %28 = vector.broadcast %3 : vector<1x128xf32> to vector<8x128xf32>
    %29 = vector.broadcast %23 : vector<8x1xf32> to vector<8x128xf32>
    %30 = arith.minimumf %28, %29 : vector<8x128xf32>
    %31 = vector.broadcast %1 : vector<1x128xf32> to vector<8x128xf32>
    %32 = vector.broadcast %19 : vector<8x1xf32> to vector<8x128xf32>
    %33 = arith.maximumf %31, %32 : vector<8x128xf32>
    %34 = arith.subf %30, %33 : vector<8x128xf32>
    %cst_5 = arith.constant 0.000000e+00 : f32
    %35 = vector.broadcast %cst_5 : f32 to vector<8x128xf32>
    %36 = arith.maximumf %34, %35 : vector<8x128xf32>
    %37 = vector.broadcast %4 : vector<1x128xf32> to vector<8x128xf32>
    %38 = vector.broadcast %25 : vector<8x1xf32> to vector<8x128xf32>
    %39 = arith.minimumf %37, %38 : vector<8x128xf32>
    %40 = vector.broadcast %2 : vector<1x128xf32> to vector<8x128xf32>
    %41 = vector.broadcast %21 : vector<8x1xf32> to vector<8x128xf32>
    %42 = arith.maximumf %40, %41 : vector<8x128xf32>
    %43 = arith.subf %39, %42 : vector<8x128xf32>
    %cst_6 = arith.constant 0.000000e+00 : f32
    %44 = vector.broadcast %cst_6 : f32 to vector<8x128xf32>
    %45 = arith.maximumf %43, %44 : vector<8x128xf32>
    %46 = arith.mulf %36, %45 : vector<8x128xf32>
    %47 = arith.subf %23, %19 : vector<8x1xf32>
    %48 = arith.subf %25, %21 : vector<8x1xf32>
    %49 = arith.mulf %47, %48 : vector<8x1xf32>
    %50 = vector.broadcast %49 : vector<8x1xf32> to vector<8x128xf32>
    %51 = vector.broadcast %11 : vector<1x128xf32> to vector<8x128xf32>
    %52 = arith.addf %50, %51 : vector<8x128xf32>
    %53 = arith.subf %52, %46 : vector<8x128xf32>
    %cst_7 = arith.constant 0.000000e+00 : f32
    %54 = vector.broadcast %cst_7 : f32 to vector<8x128xf32>
    %55 = arith.cmpf ogt, %46, %54 : vector<8x128xf32>
    %56 = arith.divf %46, %53 : vector<8x128xf32>
    %cst_8 = arith.constant 0.000000e+00 : f32
    %57 = vector.broadcast %cst_8 : f32 to vector<8x128xf32>
    %58 = arith.select %55, %56, %57 : vector<8x128xi1>, vector<8x128xf32>
    %59 = arith.cmpf ogt, %58, %14 : vector<8x128xf32>
    %60 = arith.select %59, %58, %14 : vector<8x128xi1>, vector<8x128xf32>
    %c0_i32_9 = arith.constant 0 : i32
    %61 = vector.broadcast %c0_i32_9 : i32 to vector<8x128xi32>
    %62 = arith.select %59, %61, %15 : vector<8x128xi1>, vector<8x128xi32>
    %cst_10 = arith.constant dense<0xFF800000> : vector<8xf32>
    %63 = vector.multi_reduction <maximumf>, %58, %cst_10 [1] : vector<8x128xf32> to vector<8xf32>
    %64 = vector.shape_cast %63 : vector<8xf32> to vector<8x1xf32>
    %65 = vector.broadcast %64 : vector<8x1xf32> to vector<8x128xf32>
    %66 = arith.cmpf oeq, %58, %65 : vector<8x128xf32>
    %c128_i32 = arith.constant 128 : i32
    %67 = vector.shape_cast %13 : vector<1x128xi32> to vector<1x128xi32>
    %68 = vector.broadcast %67 : vector<1x128xi32> to vector<8x128xi32>
    %69 = vector.broadcast %c128_i32 : i32 to vector<8x128xi32>
    %70 = arith.select %66, %68, %69 : vector<8x128xi1>, vector<8x128xi32>
    %cst_11 = arith.constant dense<2147483647> : vector<8xi32>
    %71 = vector.multi_reduction <minsi>, %70, %cst_11 [1] : vector<8x128xi32> to vector<8xi32>
    %72 = vector.shape_cast %71 : vector<8xi32> to vector<8x1xi32>
    %73 = vector.broadcast %13 : vector<1x128xi32> to vector<8x128xi32>
    %74 = vector.broadcast %72 : vector<8x1xi32> to vector<8x128xi32>
    %75 = arith.cmpi eq, %73, %74 : vector<8x128xi32>
    %76 = arith.ori %16, %75 : vector<8x128xi1>
    %c0_i32_12 = arith.constant 0 : i32
    %77 = vector.broadcast %c0_i32_12 : i32 to vector<8x128xi32>
    %78 = arith.select %75, %77, %17 : vector<8x128xi1>, vector<8x128xi32>
    %79 = vector.extract_strided_slice %12 {offsets = [1, 0, 0], sizes = [1, 8, 1], strides = [1, 1, 1]} : vector<4x8x5xf32> to vector<1x8x1xf32>
    %80 = vector.shape_cast %79 : vector<1x8x1xf32> to vector<8x1xf32>
    %81 = vector.extract_strided_slice %12 {offsets = [1, 0, 1], sizes = [1, 8, 1], strides = [1, 1, 1]} : vector<4x8x5xf32> to vector<1x8x1xf32>
    %82 = vector.shape_cast %81 : vector<1x8x1xf32> to vector<8x1xf32>
    %83 = vector.extract_strided_slice %12 {offsets = [1, 0, 2], sizes = [1, 8, 1], strides = [1, 1, 1]} : vector<4x8x5xf32> to vector<1x8x1xf32>
    %84 = vector.shape_cast %83 : vector<1x8x1xf32> to vector<8x1xf32>
    %85 = vector.extract_strided_slice %12 {offsets = [1, 0, 3], sizes = [1, 8, 1], strides = [1, 1, 1]} : vector<4x8x5xf32> to vector<1x8x1xf32>
    %86 = vector.shape_cast %85 : vector<1x8x1xf32> to vector<8x1xf32>
    %87 = vector.extract_strided_slice %12 {offsets = [1, 0, 4], sizes = [1, 8, 1], strides = [1, 1, 1]} : vector<4x8x5xf32> to vector<1x8x1xf32>
    %88 = vector.shape_cast %87 : vector<1x8x1xf32> to vector<8x1xf32>
    %89 = vector.broadcast %3 : vector<1x128xf32> to vector<8x128xf32>
    %90 = vector.broadcast %84 : vector<8x1xf32> to vector<8x128xf32>
    %91 = arith.minimumf %89, %90 : vector<8x128xf32>
    %92 = vector.broadcast %1 : vector<1x128xf32> to vector<8x128xf32>
    %93 = vector.broadcast %80 : vector<8x1xf32> to vector<8x128xf32>
    %94 = arith.maximumf %92, %93 : vector<8x128xf32>
    %95 = arith.subf %91, %94 : vector<8x128xf32>
    %cst_13 = arith.constant 0.000000e+00 : f32
    %96 = vector.broadcast %cst_13 : f32 to vector<8x128xf32>
    %97 = arith.maximumf %95, %96 : vector<8x128xf32>
    %98 = vector.broadcast %4 : vector<1x128xf32> to vector<8x128xf32>
    %99 = vector.broadcast %86 : vector<8x1xf32> to vector<8x128xf32>
    %100 = arith.minimumf %98, %99 : vector<8x128xf32>
    %101 = vector.broadcast %2 : vector<1x128xf32> to vector<8x128xf32>
    %102 = vector.broadcast %82 : vector<8x1xf32> to vector<8x128xf32>
    %103 = arith.maximumf %101, %102 : vector<8x128xf32>
    %104 = arith.subf %100, %103 : vector<8x128xf32>
    %cst_14 = arith.constant 0.000000e+00 : f32
    %105 = vector.broadcast %cst_14 : f32 to vector<8x128xf32>
    %106 = arith.maximumf %104, %105 : vector<8x128xf32>
    %107 = arith.mulf %97, %106 : vector<8x128xf32>
    %108 = arith.subf %84, %80 : vector<8x1xf32>
    %109 = arith.subf %86, %82 : vector<8x1xf32>
    %110 = arith.mulf %108, %109 : vector<8x1xf32>
    %111 = vector.broadcast %110 : vector<8x1xf32> to vector<8x128xf32>
    %112 = vector.broadcast %11 : vector<1x128xf32> to vector<8x128xf32>
    %113 = arith.addf %111, %112 : vector<8x128xf32>
    %114 = arith.subf %113, %107 : vector<8x128xf32>
    %cst_15 = arith.constant 0.000000e+00 : f32
    %115 = vector.broadcast %cst_15 : f32 to vector<8x128xf32>
    %116 = arith.cmpf ogt, %107, %115 : vector<8x128xf32>
    %117 = arith.divf %107, %114 : vector<8x128xf32>
    %cst_16 = arith.constant 0.000000e+00 : f32
    %118 = vector.broadcast %cst_16 : f32 to vector<8x128xf32>
    %119 = arith.select %116, %117, %118 : vector<8x128xi1>, vector<8x128xf32>
    %120 = arith.cmpf ogt, %119, %60 : vector<8x128xf32>
    %121 = arith.select %120, %119, %60 : vector<8x128xi1>, vector<8x128xf32>
    %c1_i32 = arith.constant 1 : i32
    %122 = vector.broadcast %c1_i32 : i32 to vector<8x128xi32>
    %123 = arith.select %120, %122, %62 : vector<8x128xi1>, vector<8x128xi32>
    %cst_17 = arith.constant dense<0xFF800000> : vector<8xf32>
    %124 = vector.multi_reduction <maximumf>, %119, %cst_17 [1] : vector<8x128xf32> to vector<8xf32>
    %125 = vector.shape_cast %124 : vector<8xf32> to vector<8x1xf32>
    %126 = vector.broadcast %125 : vector<8x1xf32> to vector<8x128xf32>
    %127 = arith.cmpf oeq, %119, %126 : vector<8x128xf32>
    %c128_i32_18 = arith.constant 128 : i32
    %128 = vector.shape_cast %13 : vector<1x128xi32> to vector<1x128xi32>
    %129 = vector.broadcast %128 : vector<1x128xi32> to vector<8x128xi32>
    %130 = vector.broadcast %c128_i32_18 : i32 to vector<8x128xi32>
    %131 = arith.select %127, %129, %130 : vector<8x128xi1>, vector<8x128xi32>
    %cst_19 = arith.constant dense<2147483647> : vector<8xi32>
    %132 = vector.multi_reduction <minsi>, %131, %cst_19 [1] : vector<8x128xi32> to vector<8xi32>
    %133 = vector.shape_cast %132 : vector<8xi32> to vector<8x1xi32>
    %134 = vector.broadcast %13 : vector<1x128xi32> to vector<8x128xi32>
    %135 = vector.broadcast %133 : vector<8x1xi32> to vector<8x128xi32>
    %136 = arith.cmpi eq, %134, %135 : vector<8x128xi32>
    %137 = arith.ori %76, %136 : vector<8x128xi1>
    %c1_i32_20 = arith.constant 1 : i32
    %138 = vector.broadcast %c1_i32_20 : i32 to vector<8x128xi32>
    %139 = arith.select %136, %138, %78 : vector<8x128xi1>, vector<8x128xi32>
    %140 = vector.extract_strided_slice %12 {offsets = [2, 0, 0], sizes = [1, 8, 1], strides = [1, 1, 1]} : vector<4x8x5xf32> to vector<1x8x1xf32>
    %141 = vector.shape_cast %140 : vector<1x8x1xf32> to vector<8x1xf32>
    %142 = vector.extract_strided_slice %12 {offsets = [2, 0, 1], sizes = [1, 8, 1], strides = [1, 1, 1]} : vector<4x8x5xf32> to vector<1x8x1xf32>
    %143 = vector.shape_cast %142 : vector<1x8x1xf32> to vector<8x1xf32>
    %144 = vector.extract_strided_slice %12 {offsets = [2, 0, 2], sizes = [1, 8, 1], strides = [1, 1, 1]} : vector<4x8x5xf32> to vector<1x8x1xf32>
    %145 = vector.shape_cast %144 : vector<1x8x1xf32> to vector<8x1xf32>
    %146 = vector.extract_strided_slice %12 {offsets = [2, 0, 3], sizes = [1, 8, 1], strides = [1, 1, 1]} : vector<4x8x5xf32> to vector<1x8x1xf32>
    %147 = vector.shape_cast %146 : vector<1x8x1xf32> to vector<8x1xf32>
    %148 = vector.extract_strided_slice %12 {offsets = [2, 0, 4], sizes = [1, 8, 1], strides = [1, 1, 1]} : vector<4x8x5xf32> to vector<1x8x1xf32>
    %149 = vector.shape_cast %148 : vector<1x8x1xf32> to vector<8x1xf32>
    %150 = vector.broadcast %3 : vector<1x128xf32> to vector<8x128xf32>
    %151 = vector.broadcast %145 : vector<8x1xf32> to vector<8x128xf32>
    %152 = arith.minimumf %150, %151 : vector<8x128xf32>
    %153 = vector.broadcast %1 : vector<1x128xf32> to vector<8x128xf32>
    %154 = vector.broadcast %141 : vector<8x1xf32> to vector<8x128xf32>
    %155 = arith.maximumf %153, %154 : vector<8x128xf32>
    %156 = arith.subf %152, %155 : vector<8x128xf32>
    %cst_21 = arith.constant 0.000000e+00 : f32
    %157 = vector.broadcast %cst_21 : f32 to vector<8x128xf32>
    %158 = arith.maximumf %156, %157 : vector<8x128xf32>
    %159 = vector.broadcast %4 : vector<1x128xf32> to vector<8x128xf32>
    %160 = vector.broadcast %147 : vector<8x1xf32> to vector<8x128xf32>
    %161 = arith.minimumf %159, %160 : vector<8x128xf32>
    %162 = vector.broadcast %2 : vector<1x128xf32> to vector<8x128xf32>
    %163 = vector.broadcast %143 : vector<8x1xf32> to vector<8x128xf32>
    %164 = arith.maximumf %162, %163 : vector<8x128xf32>
    %165 = arith.subf %161, %164 : vector<8x128xf32>
    %cst_22 = arith.constant 0.000000e+00 : f32
    %166 = vector.broadcast %cst_22 : f32 to vector<8x128xf32>
    %167 = arith.maximumf %165, %166 : vector<8x128xf32>
    %168 = arith.mulf %158, %167 : vector<8x128xf32>
    %169 = arith.subf %145, %141 : vector<8x1xf32>
    %170 = arith.subf %147, %143 : vector<8x1xf32>
    %171 = arith.mulf %169, %170 : vector<8x1xf32>
    %172 = vector.broadcast %171 : vector<8x1xf32> to vector<8x128xf32>
    %173 = vector.broadcast %11 : vector<1x128xf32> to vector<8x128xf32>
    %174 = arith.addf %172, %173 : vector<8x128xf32>
    %175 = arith.subf %174, %168 : vector<8x128xf32>
    %cst_23 = arith.constant 0.000000e+00 : f32
    %176 = vector.broadcast %cst_23 : f32 to vector<8x128xf32>
    %177 = arith.cmpf ogt, %168, %176 : vector<8x128xf32>
    %178 = arith.divf %168, %175 : vector<8x128xf32>
    %cst_24 = arith.constant 0.000000e+00 : f32
    %179 = vector.broadcast %cst_24 : f32 to vector<8x128xf32>
    %180 = arith.select %177, %178, %179 : vector<8x128xi1>, vector<8x128xf32>
    %181 = arith.cmpf ogt, %180, %121 : vector<8x128xf32>
    %182 = arith.select %181, %180, %121 : vector<8x128xi1>, vector<8x128xf32>
    %c2_i32 = arith.constant 2 : i32
    %183 = vector.broadcast %c2_i32 : i32 to vector<8x128xi32>
    %184 = arith.select %181, %183, %123 : vector<8x128xi1>, vector<8x128xi32>
    %cst_25 = arith.constant dense<0xFF800000> : vector<8xf32>
    %185 = vector.multi_reduction <maximumf>, %180, %cst_25 [1] : vector<8x128xf32> to vector<8xf32>
    %186 = vector.shape_cast %185 : vector<8xf32> to vector<8x1xf32>
    %187 = vector.broadcast %186 : vector<8x1xf32> to vector<8x128xf32>
    %188 = arith.cmpf oeq, %180, %187 : vector<8x128xf32>
    %c128_i32_26 = arith.constant 128 : i32
    %189 = vector.shape_cast %13 : vector<1x128xi32> to vector<1x128xi32>
    %190 = vector.broadcast %189 : vector<1x128xi32> to vector<8x128xi32>
    %191 = vector.broadcast %c128_i32_26 : i32 to vector<8x128xi32>
    %192 = arith.select %188, %190, %191 : vector<8x128xi1>, vector<8x128xi32>
    %cst_27 = arith.constant dense<2147483647> : vector<8xi32>
    %193 = vector.multi_reduction <minsi>, %192, %cst_27 [1] : vector<8x128xi32> to vector<8xi32>
    %194 = vector.shape_cast %193 : vector<8xi32> to vector<8x1xi32>
    %195 = vector.broadcast %13 : vector<1x128xi32> to vector<8x128xi32>
    %196 = vector.broadcast %194 : vector<8x1xi32> to vector<8x128xi32>
    %197 = arith.cmpi eq, %195, %196 : vector<8x128xi32>
    %198 = arith.ori %137, %197 : vector<8x128xi1>
    %c2_i32_28 = arith.constant 2 : i32
    %199 = vector.broadcast %c2_i32_28 : i32 to vector<8x128xi32>
    %200 = arith.select %197, %199, %139 : vector<8x128xi1>, vector<8x128xi32>
    %201 = vector.extract_strided_slice %12 {offsets = [3, 0, 0], sizes = [1, 8, 1], strides = [1, 1, 1]} : vector<4x8x5xf32> to vector<1x8x1xf32>
    %202 = vector.shape_cast %201 : vector<1x8x1xf32> to vector<8x1xf32>
    %203 = vector.extract_strided_slice %12 {offsets = [3, 0, 1], sizes = [1, 8, 1], strides = [1, 1, 1]} : vector<4x8x5xf32> to vector<1x8x1xf32>
    %204 = vector.shape_cast %203 : vector<1x8x1xf32> to vector<8x1xf32>
    %205 = vector.extract_strided_slice %12 {offsets = [3, 0, 2], sizes = [1, 8, 1], strides = [1, 1, 1]} : vector<4x8x5xf32> to vector<1x8x1xf32>
    %206 = vector.shape_cast %205 : vector<1x8x1xf32> to vector<8x1xf32>
    %207 = vector.extract_strided_slice %12 {offsets = [3, 0, 3], sizes = [1, 8, 1], strides = [1, 1, 1]} : vector<4x8x5xf32> to vector<1x8x1xf32>
    %208 = vector.shape_cast %207 : vector<1x8x1xf32> to vector<8x1xf32>
    %209 = vector.extract_strided_slice %12 {offsets = [3, 0, 4], sizes = [1, 8, 1], strides = [1, 1, 1]} : vector<4x8x5xf32> to vector<1x8x1xf32>
    %210 = vector.shape_cast %209 : vector<1x8x1xf32> to vector<8x1xf32>
    %211 = vector.broadcast %3 : vector<1x128xf32> to vector<8x128xf32>
    %212 = vector.broadcast %206 : vector<8x1xf32> to vector<8x128xf32>
    %213 = arith.minimumf %211, %212 : vector<8x128xf32>
    %214 = vector.broadcast %1 : vector<1x128xf32> to vector<8x128xf32>
    %215 = vector.broadcast %202 : vector<8x1xf32> to vector<8x128xf32>
    %216 = arith.maximumf %214, %215 : vector<8x128xf32>
    %217 = arith.subf %213, %216 : vector<8x128xf32>
    %cst_29 = arith.constant 0.000000e+00 : f32
    %218 = vector.broadcast %cst_29 : f32 to vector<8x128xf32>
    %219 = arith.maximumf %217, %218 : vector<8x128xf32>
    %220 = vector.broadcast %4 : vector<1x128xf32> to vector<8x128xf32>
    %221 = vector.broadcast %208 : vector<8x1xf32> to vector<8x128xf32>
    %222 = arith.minimumf %220, %221 : vector<8x128xf32>
    %223 = vector.broadcast %2 : vector<1x128xf32> to vector<8x128xf32>
    %224 = vector.broadcast %204 : vector<8x1xf32> to vector<8x128xf32>
    %225 = arith.maximumf %223, %224 : vector<8x128xf32>
    %226 = arith.subf %222, %225 : vector<8x128xf32>
    %cst_30 = arith.constant 0.000000e+00 : f32
    %227 = vector.broadcast %cst_30 : f32 to vector<8x128xf32>
    %228 = arith.maximumf %226, %227 : vector<8x128xf32>
    %229 = arith.mulf %219, %228 : vector<8x128xf32>
    %230 = arith.subf %206, %202 : vector<8x1xf32>
    %231 = arith.subf %208, %204 : vector<8x1xf32>
    %232 = arith.mulf %230, %231 : vector<8x1xf32>
    %233 = vector.broadcast %232 : vector<8x1xf32> to vector<8x128xf32>
    %234 = vector.broadcast %11 : vector<1x128xf32> to vector<8x128xf32>
    %235 = arith.addf %233, %234 : vector<8x128xf32>
    %236 = arith.subf %235, %229 : vector<8x128xf32>
    %cst_31 = arith.constant 0.000000e+00 : f32
    %237 = vector.broadcast %cst_31 : f32 to vector<8x128xf32>
    %238 = arith.cmpf ogt, %229, %237 : vector<8x128xf32>
    %239 = arith.divf %229, %236 : vector<8x128xf32>
    %cst_32 = arith.constant 0.000000e+00 : f32
    %240 = vector.broadcast %cst_32 : f32 to vector<8x128xf32>
    %241 = arith.select %238, %239, %240 : vector<8x128xi1>, vector<8x128xf32>
    %242 = arith.cmpf ogt, %241, %182 : vector<8x128xf32>
    %243 = arith.select %242, %241, %182 : vector<8x128xi1>, vector<8x128xf32>
    %c3_i32 = arith.constant 3 : i32
    %244 = vector.broadcast %c3_i32 : i32 to vector<8x128xi32>
    %245 = arith.select %242, %244, %184 : vector<8x128xi1>, vector<8x128xi32>
    %cst_33 = arith.constant dense<0xFF800000> : vector<8xf32>
    %246 = vector.multi_reduction <maximumf>, %241, %cst_33 [1] : vector<8x128xf32> to vector<8xf32>
    %247 = vector.shape_cast %246 : vector<8xf32> to vector<8x1xf32>
    %248 = vector.broadcast %247 : vector<8x1xf32> to vector<8x128xf32>
    %249 = arith.cmpf oeq, %241, %248 : vector<8x128xf32>
    %c128_i32_34 = arith.constant 128 : i32
    %250 = vector.shape_cast %13 : vector<1x128xi32> to vector<1x128xi32>
    %251 = vector.broadcast %250 : vector<1x128xi32> to vector<8x128xi32>
    %252 = vector.broadcast %c128_i32_34 : i32 to vector<8x128xi32>
    %253 = arith.select %249, %251, %252 : vector<8x128xi1>, vector<8x128xi32>
    %cst_35 = arith.constant dense<2147483647> : vector<8xi32>
    %254 = vector.multi_reduction <minsi>, %253, %cst_35 [1] : vector<8x128xi32> to vector<8xi32>
    %255 = vector.shape_cast %254 : vector<8xi32> to vector<8x1xi32>
    %256 = vector.broadcast %13 : vector<1x128xi32> to vector<8x128xi32>
    %257 = vector.broadcast %255 : vector<8x1xi32> to vector<8x128xi32>
    %258 = arith.cmpi eq, %256, %257 : vector<8x128xi32>
    %259 = arith.ori %198, %258 : vector<8x128xi1>
    %c3_i32_36 = arith.constant 3 : i32
    %260 = vector.broadcast %c3_i32_36 : i32 to vector<8x128xi32>
    %261 = arith.select %258, %260, %200 : vector<8x128xi1>, vector<8x128xi32>
    %262 = arith.select %259, %261, %245 : vector<8x128xi1>, vector<8x128xi32>
    %cst_37 = arith.constant 2.000000e+00 : f32
    %263 = vector.broadcast %cst_37 : f32 to vector<8x128xf32>
    %264 = arith.select %259, %263, %243 : vector<8x128xi1>, vector<8x128xf32>
    %cst_38 = arith.constant 0.000000e+00 : f32
    %265 = vector.broadcast %cst_38 : f32 to vector<8x128xf32>
    %cst_39 = arith.constant 0.000000e+00 : f32
    %266 = vector.broadcast %cst_39 : f32 to vector<8x128xf32>
    %cst_40 = arith.constant 0.000000e+00 : f32
    %267 = vector.broadcast %cst_40 : f32 to vector<8x128xf32>
    %cst_41 = arith.constant 0.000000e+00 : f32
    %268 = vector.broadcast %cst_41 : f32 to vector<8x128xf32>
    %cst_42 = arith.constant 0.000000e+00 : f32
    %269 = vector.broadcast %cst_42 : f32 to vector<8x128xf32>
    %c0_i32_43 = arith.constant 0 : i32
    %270 = vector.broadcast %c0_i32_43 : i32 to vector<8x128xi32>
    %271 = arith.cmpi eq, %262, %270 : vector<8x128xi32>
    %272 = vector.shape_cast %19 : vector<8x1xf32> to vector<8x1xf32>
    %273 = vector.broadcast %272 : vector<8x1xf32> to vector<8x128xf32>
    %274 = arith.select %271, %273, %265 : vector<8x128xi1>, vector<8x128xf32>
    %275 = vector.shape_cast %21 : vector<8x1xf32> to vector<8x1xf32>
    %276 = vector.broadcast %275 : vector<8x1xf32> to vector<8x128xf32>
    %277 = arith.select %271, %276, %266 : vector<8x128xi1>, vector<8x128xf32>
    %278 = vector.shape_cast %23 : vector<8x1xf32> to vector<8x1xf32>
    %279 = vector.broadcast %278 : vector<8x1xf32> to vector<8x128xf32>
    %280 = arith.select %271, %279, %267 : vector<8x128xi1>, vector<8x128xf32>
    %281 = vector.shape_cast %25 : vector<8x1xf32> to vector<8x1xf32>
    %282 = vector.broadcast %281 : vector<8x1xf32> to vector<8x128xf32>
    %283 = arith.select %271, %282, %268 : vector<8x128xi1>, vector<8x128xf32>
    %284 = vector.shape_cast %27 : vector<8x1xf32> to vector<8x1xf32>
    %285 = vector.broadcast %284 : vector<8x1xf32> to vector<8x128xf32>
    %286 = arith.select %271, %285, %269 : vector<8x128xi1>, vector<8x128xf32>
    %c1_i32_44 = arith.constant 1 : i32
    %287 = vector.broadcast %c1_i32_44 : i32 to vector<8x128xi32>
    %288 = arith.cmpi eq, %262, %287 : vector<8x128xi32>
    %289 = vector.shape_cast %80 : vector<8x1xf32> to vector<8x1xf32>
    %290 = vector.broadcast %289 : vector<8x1xf32> to vector<8x128xf32>
    %291 = arith.select %288, %290, %274 : vector<8x128xi1>, vector<8x128xf32>
    %292 = vector.shape_cast %82 : vector<8x1xf32> to vector<8x1xf32>
    %293 = vector.broadcast %292 : vector<8x1xf32> to vector<8x128xf32>
    %294 = arith.select %288, %293, %277 : vector<8x128xi1>, vector<8x128xf32>
    %295 = vector.shape_cast %84 : vector<8x1xf32> to vector<8x1xf32>
    %296 = vector.broadcast %295 : vector<8x1xf32> to vector<8x128xf32>
    %297 = arith.select %288, %296, %280 : vector<8x128xi1>, vector<8x128xf32>
    %298 = vector.shape_cast %86 : vector<8x1xf32> to vector<8x1xf32>
    %299 = vector.broadcast %298 : vector<8x1xf32> to vector<8x128xf32>
    %300 = arith.select %288, %299, %283 : vector<8x128xi1>, vector<8x128xf32>
    %301 = vector.shape_cast %88 : vector<8x1xf32> to vector<8x1xf32>
    %302 = vector.broadcast %301 : vector<8x1xf32> to vector<8x128xf32>
    %303 = arith.select %288, %302, %286 : vector<8x128xi1>, vector<8x128xf32>
    %c2_i32_45 = arith.constant 2 : i32
    %304 = vector.broadcast %c2_i32_45 : i32 to vector<8x128xi32>
    %305 = arith.cmpi eq, %262, %304 : vector<8x128xi32>
    %306 = vector.shape_cast %141 : vector<8x1xf32> to vector<8x1xf32>
    %307 = vector.broadcast %306 : vector<8x1xf32> to vector<8x128xf32>
    %308 = arith.select %305, %307, %291 : vector<8x128xi1>, vector<8x128xf32>
    %309 = vector.shape_cast %143 : vector<8x1xf32> to vector<8x1xf32>
    %310 = vector.broadcast %309 : vector<8x1xf32> to vector<8x128xf32>
    %311 = arith.select %305, %310, %294 : vector<8x128xi1>, vector<8x128xf32>
    %312 = vector.shape_cast %145 : vector<8x1xf32> to vector<8x1xf32>
    %313 = vector.broadcast %312 : vector<8x1xf32> to vector<8x128xf32>
    %314 = arith.select %305, %313, %297 : vector<8x128xi1>, vector<8x128xf32>
    %315 = vector.shape_cast %147 : vector<8x1xf32> to vector<8x1xf32>
    %316 = vector.broadcast %315 : vector<8x1xf32> to vector<8x128xf32>
    %317 = arith.select %305, %316, %300 : vector<8x128xi1>, vector<8x128xf32>
    %318 = vector.shape_cast %149 : vector<8x1xf32> to vector<8x1xf32>
    %319 = vector.broadcast %318 : vector<8x1xf32> to vector<8x128xf32>
    %320 = arith.select %305, %319, %303 : vector<8x128xi1>, vector<8x128xf32>
    %c3_i32_46 = arith.constant 3 : i32
    %321 = vector.broadcast %c3_i32_46 : i32 to vector<8x128xi32>
    %322 = arith.cmpi eq, %262, %321 : vector<8x128xi32>
    %323 = vector.shape_cast %202 : vector<8x1xf32> to vector<8x1xf32>
    %324 = vector.broadcast %323 : vector<8x1xf32> to vector<8x128xf32>
    %325 = arith.select %322, %324, %308 : vector<8x128xi1>, vector<8x128xf32>
    %326 = vector.shape_cast %204 : vector<8x1xf32> to vector<8x1xf32>
    %327 = vector.broadcast %326 : vector<8x1xf32> to vector<8x128xf32>
    %328 = arith.select %322, %327, %311 : vector<8x128xi1>, vector<8x128xf32>
    %329 = vector.shape_cast %206 : vector<8x1xf32> to vector<8x1xf32>
    %330 = vector.broadcast %329 : vector<8x1xf32> to vector<8x128xf32>
    %331 = arith.select %322, %330, %314 : vector<8x128xi1>, vector<8x128xf32>
    %332 = vector.shape_cast %208 : vector<8x1xf32> to vector<8x1xf32>
    %333 = vector.broadcast %332 : vector<8x1xf32> to vector<8x128xf32>
    %334 = arith.select %322, %333, %317 : vector<8x128xi1>, vector<8x128xf32>
    %335 = vector.shape_cast %210 : vector<8x1xf32> to vector<8x1xf32>
    %336 = vector.broadcast %335 : vector<8x1xf32> to vector<8x128xf32>
    %337 = arith.select %322, %336, %320 : vector<8x128xi1>, vector<8x128xf32>
    %cst_47 = arith.constant 5.000000e-01 : f32
    %338 = vector.broadcast %cst_47 : f32 to vector<8x128xf32>
    %339 = arith.cmpf olt, %264, %338 : vector<8x128xf32>
    %cst_48 = arith.constant 1.000000e+00 : f32
    %340 = vector.broadcast %cst_48 : f32 to vector<8x128xf32>
    %341 = arith.addf %337, %340 : vector<8x128xf32>
    %cst_49 = arith.constant 0.000000e+00 : f32
    %342 = vector.broadcast %cst_49 : f32 to vector<8x128xf32>
    %343 = arith.select %339, %342, %341 : vector<8x128xi1>, vector<8x128xf32>
    %cst_50 = arith.constant 5.000000e-01 : f32
    %344 = vector.broadcast %cst_50 : f32 to vector<8x128xf32>
    %345 = arith.cmpf ogt, %343, %344 : vector<8x128xf32>
    %346 = arith.fptosi %343 : vector<8x128xf32> to vector<8x128xi32>
    %347 = arith.addf %325, %331 : vector<8x128xf32>
    %cst_51 = arith.constant 5.000000e-01 : f32
    %348 = vector.broadcast %cst_51 : f32 to vector<8x128xf32>
    %349 = arith.mulf %347, %348 : vector<8x128xf32>
    %350 = vector.broadcast %5 : vector<1x128xf32> to vector<8x128xf32>
    %351 = arith.subf %349, %350 : vector<8x128xf32>
    %352 = vector.broadcast %7 : vector<1x128xf32> to vector<8x128xf32>
    %353 = arith.mulf %351, %352 : vector<8x128xf32>
    %354 = arith.addf %328, %334 : vector<8x128xf32>
    %cst_52 = arith.constant 5.000000e-01 : f32
    %355 = vector.broadcast %cst_52 : f32 to vector<8x128xf32>
    %356 = arith.mulf %354, %355 : vector<8x128xf32>
    %357 = vector.broadcast %6 : vector<1x128xf32> to vector<8x128xf32>
    %358 = arith.subf %356, %357 : vector<8x128xf32>
    %359 = vector.broadcast %8 : vector<1x128xf32> to vector<8x128xf32>
    %360 = arith.mulf %358, %359 : vector<8x128xf32>
    %361 = arith.subf %331, %325 : vector<8x128xf32>
    %362 = math.log %361 : vector<8x128xf32>
    %363 = vector.broadcast %9 : vector<1x128xf32> to vector<8x128xf32>
    %364 = arith.subf %362, %363 : vector<8x128xf32>
    %cst_53 = arith.constant 5.000000e+00 : f32
    %365 = vector.broadcast %cst_53 : f32 to vector<8x128xf32>
    %366 = arith.mulf %364, %365 : vector<8x128xf32>
    %367 = arith.subf %334, %328 : vector<8x128xf32>
    %368 = math.log %367 : vector<8x128xf32>
    %369 = vector.broadcast %10 : vector<1x128xf32> to vector<8x128xf32>
    %370 = arith.subf %368, %369 : vector<8x128xf32>
    %cst_54 = arith.constant 5.000000e+00 : f32
    %371 = vector.broadcast %cst_54 : f32 to vector<8x128xf32>
    %372 = arith.mulf %370, %371 : vector<8x128xf32>
    %c0_55 = arith.constant 0 : index
    %c0_56 = arith.constant 0 : index
    %c0_57 = arith.constant 0 : index
    %373 = vector.load %arg2[%c0_55, %c0_56, %c0_57] : memref<4x8x128xf32, #tpu.memory_space<vmem>>, vector<1x8x128xf32>
    %374 = vector.shape_cast %373 : vector<1x8x128xf32> to vector<8x128xf32>
    %375 = arith.subf %374, %353 : vector<8x128xf32>
    %376 = math.absf %375 : vector<8x128xf32>
    %cst_58 = arith.constant 1.000000e+00 : f32
    %377 = vector.broadcast %cst_58 : f32 to vector<8x128xf32>
    %378 = arith.cmpf olt, %376, %377 : vector<8x128xf32>
    %cst_59 = arith.constant 5.000000e-01 : f32
    %379 = vector.broadcast %cst_59 : f32 to vector<8x128xf32>
    %380 = arith.mulf %379, %376 : vector<8x128xf32>
    %381 = arith.mulf %380, %376 : vector<8x128xf32>
    %cst_60 = arith.constant 5.000000e-01 : f32
    %382 = vector.broadcast %cst_60 : f32 to vector<8x128xf32>
    %383 = arith.subf %376, %382 : vector<8x128xf32>
    %384 = arith.select %378, %381, %383 : vector<8x128xi1>, vector<8x128xf32>
    %c1 = arith.constant 1 : index
    %c0_61 = arith.constant 0 : index
    %c0_62 = arith.constant 0 : index
    %385 = vector.load %arg2[%c1, %c0_61, %c0_62] : memref<4x8x128xf32, #tpu.memory_space<vmem>>, vector<1x8x128xf32>
    %386 = vector.shape_cast %385 : vector<1x8x128xf32> to vector<8x128xf32>
    %387 = arith.subf %386, %360 : vector<8x128xf32>
    %388 = math.absf %387 : vector<8x128xf32>
    %cst_63 = arith.constant 1.000000e+00 : f32
    %389 = vector.broadcast %cst_63 : f32 to vector<8x128xf32>
    %390 = arith.cmpf olt, %388, %389 : vector<8x128xf32>
    %cst_64 = arith.constant 5.000000e-01 : f32
    %391 = vector.broadcast %cst_64 : f32 to vector<8x128xf32>
    %392 = arith.mulf %391, %388 : vector<8x128xf32>
    %393 = arith.mulf %392, %388 : vector<8x128xf32>
    %cst_65 = arith.constant 5.000000e-01 : f32
    %394 = vector.broadcast %cst_65 : f32 to vector<8x128xf32>
    %395 = arith.subf %388, %394 : vector<8x128xf32>
    %396 = arith.select %390, %393, %395 : vector<8x128xi1>, vector<8x128xf32>
    %397 = arith.addf %384, %396 : vector<8x128xf32>
    %c2 = arith.constant 2 : index
    %c0_66 = arith.constant 0 : index
    %c0_67 = arith.constant 0 : index
    %398 = vector.load %arg2[%c2, %c0_66, %c0_67] : memref<4x8x128xf32, #tpu.memory_space<vmem>>, vector<1x8x128xf32>
    %399 = vector.shape_cast %398 : vector<1x8x128xf32> to vector<8x128xf32>
    %400 = arith.subf %399, %366 : vector<8x128xf32>
    %401 = math.absf %400 : vector<8x128xf32>
    %cst_68 = arith.constant 1.000000e+00 : f32
    %402 = vector.broadcast %cst_68 : f32 to vector<8x128xf32>
    %403 = arith.cmpf olt, %401, %402 : vector<8x128xf32>
    %cst_69 = arith.constant 5.000000e-01 : f32
    %404 = vector.broadcast %cst_69 : f32 to vector<8x128xf32>
    %405 = arith.mulf %404, %401 : vector<8x128xf32>
    %406 = arith.mulf %405, %401 : vector<8x128xf32>
    %cst_70 = arith.constant 5.000000e-01 : f32
    %407 = vector.broadcast %cst_70 : f32 to vector<8x128xf32>
    %408 = arith.subf %401, %407 : vector<8x128xf32>
    %409 = arith.select %403, %406, %408 : vector<8x128xi1>, vector<8x128xf32>
    %410 = arith.addf %397, %409 : vector<8x128xf32>
    %c3 = arith.constant 3 : index
    %c0_71 = arith.constant 0 : index
    %c0_72 = arith.constant 0 : index
    %411 = vector.load %arg2[%c3, %c0_71, %c0_72] : memref<4x8x128xf32, #tpu.memory_space<vmem>>, vector<1x8x128xf32>
    %412 = vector.shape_cast %411 : vector<1x8x128xf32> to vector<8x128xf32>
    %413 = arith.subf %412, %372 : vector<8x128xf32>
    %414 = math.absf %413 : vector<8x128xf32>
    %cst_73 = arith.constant 1.000000e+00 : f32
    %415 = vector.broadcast %cst_73 : f32 to vector<8x128xf32>
    %416 = arith.cmpf olt, %414, %415 : vector<8x128xf32>
    %cst_74 = arith.constant 5.000000e-01 : f32
    %417 = vector.broadcast %cst_74 : f32 to vector<8x128xf32>
    %418 = arith.mulf %417, %414 : vector<8x128xf32>
    %419 = arith.mulf %418, %414 : vector<8x128xf32>
    %cst_75 = arith.constant 5.000000e-01 : f32
    %420 = vector.broadcast %cst_75 : f32 to vector<8x128xf32>
    %421 = arith.subf %414, %420 : vector<8x128xf32>
    %422 = arith.select %416, %419, %421 : vector<8x128xi1>, vector<8x128xf32>
    %423 = arith.addf %410, %422 : vector<8x128xf32>
    %cst_76 = arith.constant 0.000000e+00 : f32
    %424 = vector.broadcast %cst_76 : f32 to vector<8x128xf32>
    %425 = arith.select %345, %423, %424 : vector<8x128xi1>, vector<8x128xf32>
    %cst_77 = arith.constant dense<0.000000e+00> : vector<8xf32>
    %426 = vector.multi_reduction <add>, %425, %cst_77 [1] : vector<8x128xf32> to vector<8xf32>
    %427 = vector.shape_cast %426 : vector<8xf32> to vector<8x1xf32>
    %c0_78 = arith.constant 0 : index
    %c0_79 = arith.constant 0 : index
    %c0_80 = arith.constant 0 : index
    %428 = vector.load %arg3[%c0_78, %c0_79, %c0_80] : memref<8x8x128xf32, #tpu.memory_space<vmem>>, vector<1x8x128xf32>
    %429 = vector.shape_cast %428 : vector<1x8x128xf32> to vector<8x128xf32>
    %c1_81 = arith.constant 1 : index
    %c0_82 = arith.constant 0 : index
    %c0_83 = arith.constant 0 : index
    %430 = vector.load %arg3[%c1_81, %c0_82, %c0_83] : memref<8x8x128xf32, #tpu.memory_space<vmem>>, vector<1x8x128xf32>
    %431 = vector.shape_cast %430 : vector<1x8x128xf32> to vector<8x128xf32>
    %432 = arith.maximumf %429, %431 : vector<8x128xf32>
    %c2_84 = arith.constant 2 : index
    %c0_85 = arith.constant 0 : index
    %c0_86 = arith.constant 0 : index
    %433 = vector.load %arg3[%c2_84, %c0_85, %c0_86] : memref<8x8x128xf32, #tpu.memory_space<vmem>>, vector<1x8x128xf32>
    %434 = vector.shape_cast %433 : vector<1x8x128xf32> to vector<8x128xf32>
    %435 = arith.maximumf %432, %434 : vector<8x128xf32>
    %c3_87 = arith.constant 3 : index
    %c0_88 = arith.constant 0 : index
    %c0_89 = arith.constant 0 : index
    %436 = vector.load %arg3[%c3_87, %c0_88, %c0_89] : memref<8x8x128xf32, #tpu.memory_space<vmem>>, vector<1x8x128xf32>
    %437 = vector.shape_cast %436 : vector<1x8x128xf32> to vector<8x128xf32>
    %438 = arith.maximumf %435, %437 : vector<8x128xf32>
    %c4 = arith.constant 4 : index
    %c0_90 = arith.constant 0 : index
    %c0_91 = arith.constant 0 : index
    %439 = vector.load %arg3[%c4, %c0_90, %c0_91] : memref<8x8x128xf32, #tpu.memory_space<vmem>>, vector<1x8x128xf32>
    %440 = vector.shape_cast %439 : vector<1x8x128xf32> to vector<8x128xf32>
    %441 = arith.maximumf %438, %440 : vector<8x128xf32>
    %c5 = arith.constant 5 : index
    %c0_92 = arith.constant 0 : index
    %c0_93 = arith.constant 0 : index
    %442 = vector.load %arg3[%c5, %c0_92, %c0_93] : memref<8x8x128xf32, #tpu.memory_space<vmem>>, vector<1x8x128xf32>
    %443 = vector.shape_cast %442 : vector<1x8x128xf32> to vector<8x128xf32>
    %444 = arith.maximumf %441, %443 : vector<8x128xf32>
    %c6 = arith.constant 6 : index
    %c0_94 = arith.constant 0 : index
    %c0_95 = arith.constant 0 : index
    %445 = vector.load %arg3[%c6, %c0_94, %c0_95] : memref<8x8x128xf32, #tpu.memory_space<vmem>>, vector<1x8x128xf32>
    %446 = vector.shape_cast %445 : vector<1x8x128xf32> to vector<8x128xf32>
    %447 = arith.maximumf %444, %446 : vector<8x128xf32>
    %c7 = arith.constant 7 : index
    %c0_96 = arith.constant 0 : index
    %c0_97 = arith.constant 0 : index
    %448 = vector.load %arg3[%c7, %c0_96, %c0_97] : memref<8x8x128xf32, #tpu.memory_space<vmem>>, vector<1x8x128xf32>
    %449 = vector.shape_cast %448 : vector<1x8x128xf32> to vector<8x128xf32>
    %450 = arith.maximumf %447, %449 : vector<8x128xf32>
    %cst_98 = arith.constant 0.000000e+00 : f32
    %451 = vector.broadcast %cst_98 : f32 to vector<8x128xf32>
    %cst_99 = arith.constant 0.000000e+00 : f32
    %452 = vector.broadcast %cst_99 : f32 to vector<8x128xf32>
    %c0_100 = arith.constant 0 : index
    %c0_101 = arith.constant 0 : index
    %c0_102 = arith.constant 0 : index
    %453 = vector.load %arg3[%c0_100, %c0_101, %c0_102] : memref<8x8x128xf32, #tpu.memory_space<vmem>>, vector<1x8x128xf32>
    %454 = vector.shape_cast %453 : vector<1x8x128xf32> to vector<8x128xf32>
    %455 = arith.subf %454, %450 : vector<8x128xf32>
    %456 = math.exp %455 : vector<8x128xf32>
    %457 = arith.addf %451, %456 : vector<8x128xf32>
    %c0_i32_103 = arith.constant 0 : i32
    %458 = vector.broadcast %c0_i32_103 : i32 to vector<8x128xi32>
    %459 = arith.cmpi eq, %346, %458 : vector<8x128xi32>
    %460 = arith.select %459, %454, %452 : vector<8x128xi1>, vector<8x128xf32>
    %c1_104 = arith.constant 1 : index
    %c0_105 = arith.constant 0 : index
    %c0_106 = arith.constant 0 : index
    %461 = vector.load %arg3[%c1_104, %c0_105, %c0_106] : memref<8x8x128xf32, #tpu.memory_space<vmem>>, vector<1x8x128xf32>
    %462 = vector.shape_cast %461 : vector<1x8x128xf32> to vector<8x128xf32>
    %463 = arith.subf %462, %450 : vector<8x128xf32>
    %464 = math.exp %463 : vector<8x128xf32>
    %465 = arith.addf %457, %464 : vector<8x128xf32>
    %c1_i32_107 = arith.constant 1 : i32
    %466 = vector.broadcast %c1_i32_107 : i32 to vector<8x128xi32>
    %467 = arith.cmpi eq, %346, %466 : vector<8x128xi32>
    %468 = arith.select %467, %462, %460 : vector<8x128xi1>, vector<8x128xf32>
    %c2_108 = arith.constant 2 : index
    %c0_109 = arith.constant 0 : index
    %c0_110 = arith.constant 0 : index
    %469 = vector.load %arg3[%c2_108, %c0_109, %c0_110] : memref<8x8x128xf32, #tpu.memory_space<vmem>>, vector<1x8x128xf32>
    %470 = vector.shape_cast %469 : vector<1x8x128xf32> to vector<8x128xf32>
    %471 = arith.subf %470, %450 : vector<8x128xf32>
    %472 = math.exp %471 : vector<8x128xf32>
    %473 = arith.addf %465, %472 : vector<8x128xf32>
    %c2_i32_111 = arith.constant 2 : i32
    %474 = vector.broadcast %c2_i32_111 : i32 to vector<8x128xi32>
    %475 = arith.cmpi eq, %346, %474 : vector<8x128xi32>
    %476 = arith.select %475, %470, %468 : vector<8x128xi1>, vector<8x128xf32>
    %c3_112 = arith.constant 3 : index
    %c0_113 = arith.constant 0 : index
    %c0_114 = arith.constant 0 : index
    %477 = vector.load %arg3[%c3_112, %c0_113, %c0_114] : memref<8x8x128xf32, #tpu.memory_space<vmem>>, vector<1x8x128xf32>
    %478 = vector.shape_cast %477 : vector<1x8x128xf32> to vector<8x128xf32>
    %479 = arith.subf %478, %450 : vector<8x128xf32>
    %480 = math.exp %479 : vector<8x128xf32>
    %481 = arith.addf %473, %480 : vector<8x128xf32>
    %c3_i32_115 = arith.constant 3 : i32
    %482 = vector.broadcast %c3_i32_115 : i32 to vector<8x128xi32>
    %483 = arith.cmpi eq, %346, %482 : vector<8x128xi32>
    %484 = arith.select %483, %478, %476 : vector<8x128xi1>, vector<8x128xf32>
    %c4_116 = arith.constant 4 : index
    %c0_117 = arith.constant 0 : index
    %c0_118 = arith.constant 0 : index
    %485 = vector.load %arg3[%c4_116, %c0_117, %c0_118] : memref<8x8x128xf32, #tpu.memory_space<vmem>>, vector<1x8x128xf32>
    %486 = vector.shape_cast %485 : vector<1x8x128xf32> to vector<8x128xf32>
    %487 = arith.subf %486, %450 : vector<8x128xf32>
    %488 = math.exp %487 : vector<8x128xf32>
    %489 = arith.addf %481, %488 : vector<8x128xf32>
    %c4_i32 = arith.constant 4 : i32
    %490 = vector.broadcast %c4_i32 : i32 to vector<8x128xi32>
    %491 = arith.cmpi eq, %346, %490 : vector<8x128xi32>
    %492 = arith.select %491, %486, %484 : vector<8x128xi1>, vector<8x128xf32>
    %c5_119 = arith.constant 5 : index
    %c0_120 = arith.constant 0 : index
    %c0_121 = arith.constant 0 : index
    %493 = vector.load %arg3[%c5_119, %c0_120, %c0_121] : memref<8x8x128xf32, #tpu.memory_space<vmem>>, vector<1x8x128xf32>
    %494 = vector.shape_cast %493 : vector<1x8x128xf32> to vector<8x128xf32>
    %495 = arith.subf %494, %450 : vector<8x128xf32>
    %496 = math.exp %495 : vector<8x128xf32>
    %497 = arith.addf %489, %496 : vector<8x128xf32>
    %c5_i32 = arith.constant 5 : i32
    %498 = vector.broadcast %c5_i32 : i32 to vector<8x128xi32>
    %499 = arith.cmpi eq, %346, %498 : vector<8x128xi32>
    %500 = arith.select %499, %494, %492 : vector<8x128xi1>, vector<8x128xf32>
    %c6_122 = arith.constant 6 : index
    %c0_123 = arith.constant 0 : index
    %c0_124 = arith.constant 0 : index
    %501 = vector.load %arg3[%c6_122, %c0_123, %c0_124] : memref<8x8x128xf32, #tpu.memory_space<vmem>>, vector<1x8x128xf32>
    %502 = vector.shape_cast %501 : vector<1x8x128xf32> to vector<8x128xf32>
    %503 = arith.subf %502, %450 : vector<8x128xf32>
    %504 = math.exp %503 : vector<8x128xf32>
    %505 = arith.addf %497, %504 : vector<8x128xf32>
    %c6_i32 = arith.constant 6 : i32
    %506 = vector.broadcast %c6_i32 : i32 to vector<8x128xi32>
    %507 = arith.cmpi eq, %346, %506 : vector<8x128xi32>
    %508 = arith.select %507, %502, %500 : vector<8x128xi1>, vector<8x128xf32>
    %c7_125 = arith.constant 7 : index
    %c0_126 = arith.constant 0 : index
    %c0_127 = arith.constant 0 : index
    %509 = vector.load %arg3[%c7_125, %c0_126, %c0_127] : memref<8x8x128xf32, #tpu.memory_space<vmem>>, vector<1x8x128xf32>
    %510 = vector.shape_cast %509 : vector<1x8x128xf32> to vector<8x128xf32>
    %511 = arith.subf %510, %450 : vector<8x128xf32>
    %512 = math.exp %511 : vector<8x128xf32>
    %513 = arith.addf %505, %512 : vector<8x128xf32>
    %c7_i32 = arith.constant 7 : i32
    %514 = vector.broadcast %c7_i32 : i32 to vector<8x128xi32>
    %515 = arith.cmpi eq, %346, %514 : vector<8x128xi32>
    %516 = arith.select %515, %510, %508 : vector<8x128xi1>, vector<8x128xf32>
    %517 = math.log %513 : vector<8x128xf32>
    %518 = arith.addf %517, %450 : vector<8x128xf32>
    %519 = arith.subf %518, %516 : vector<8x128xf32>
    %cst_128 = arith.constant 0.000000e+00 : f32
    %520 = vector.broadcast %cst_128 : f32 to vector<8x128xf32>
    %521 = arith.select %345, %520, %519 : vector<8x128xi1>, vector<8x128xf32>
    %522 = tpu.bitcast %521 : vector<8x128xf32> -> vector<8x128xi32>
    %c2147483647_i32 = arith.constant 2147483647 : i32
    %523 = vector.broadcast %c2147483647_i32 : i32 to vector<8x128xi32>
    %524 = arith.andi %522, %523 : vector<8x128xi32>
    %525 = arith.extui %345 : vector<8x128xi1> to vector<8x128xi32>
    %cst_129 = arith.constant dense<0> : vector<8xi32>
    %526 = vector.multi_reduction <add>, %525, %cst_129 [1] : vector<8x128xi32> to vector<8xi32>
    %527 = vector.shape_cast %526 : vector<8xi32> to vector<8x1xi32>
    %c3_i32_130 = arith.constant 3 : i32
    %528 = vector.broadcast %c3_i32_130 : i32 to vector<8x1xi32>
    %529 = arith.muli %528, %527 : vector<8x1xi32>
    %c127_i32 = arith.constant 127 : i32
    %530 = vector.broadcast %c127_i32 : i32 to vector<8x1xi32>
    %531 = arith.minsi %529, %530 : vector<8x1xi32>
    %c0_i32_131 = arith.constant 0 : i32
    %532 = vector.broadcast %c0_i32_131 : i32 to vector<8x1xi32>
    %cst_132 = arith.constant dense<-2147483648> : vector<8xi32>
    %533 = vector.multi_reduction <maxsi>, %524, %cst_132 [1] : vector<8x128xi32> to vector<8xi32>
    %534 = vector.shape_cast %533 : vector<8xi32> to vector<8x1xi32>
    %c1_i32_133 = arith.constant 1 : i32
    %535 = vector.broadcast %c1_i32_133 : i32 to vector<8x1xi32>
    %536 = arith.addi %534, %535 : vector<8x1xi32>
    %537 = arith.subi %536, %532 : vector<8x1xi32>
    %c1_i32_134 = arith.constant 1 : i32
    %538 = vector.broadcast %c1_i32_134 : i32 to vector<8x1xi32>
    %539 = arith.shrsi %537, %538 : vector<8x1xi32>
    %540 = arith.addi %532, %539 : vector<8x1xi32>
    %541 = vector.broadcast %540 : vector<8x1xi32> to vector<8x128xi32>
    %542 = arith.cmpi sge, %524, %541 : vector<8x128xi32>
    %543 = arith.extui %542 : vector<8x128xi1> to vector<8x128xi32>
    %cst_135 = arith.constant dense<0> : vector<8xi32>
    %544 = vector.multi_reduction <add>, %543, %cst_135 [1] : vector<8x128xi32> to vector<8xi32>
    %545 = vector.shape_cast %544 : vector<8xi32> to vector<8x1xi32>
    %546 = arith.cmpi sge, %545, %531 : vector<8x1xi32>
    %547 = arith.select %546, %540, %532 : vector<8x1xi1>, vector<8x1xi32>
    %548 = arith.select %546, %536, %540 : vector<8x1xi1>, vector<8x1xi32>
    %549 = arith.subi %548, %547 : vector<8x1xi32>
    %c1_i32_136 = arith.constant 1 : i32
    %550 = vector.broadcast %c1_i32_136 : i32 to vector<8x1xi32>
    %551 = arith.shrsi %549, %550 : vector<8x1xi32>
    %552 = arith.addi %547, %551 : vector<8x1xi32>
    %553 = vector.broadcast %552 : vector<8x1xi32> to vector<8x128xi32>
    %554 = arith.cmpi sge, %524, %553 : vector<8x128xi32>
    %555 = arith.extui %554 : vector<8x128xi1> to vector<8x128xi32>
    %cst_137 = arith.constant dense<0> : vector<8xi32>
    %556 = vector.multi_reduction <add>, %555, %cst_137 [1] : vector<8x128xi32> to vector<8xi32>
    %557 = vector.shape_cast %556 : vector<8xi32> to vector<8x1xi32>
    %558 = arith.cmpi sge, %557, %531 : vector<8x1xi32>
    %559 = arith.select %558, %552, %547 : vector<8x1xi1>, vector<8x1xi32>
    %560 = arith.select %558, %548, %552 : vector<8x1xi1>, vector<8x1xi32>
    %561 = arith.subi %560, %559 : vector<8x1xi32>
    %c1_i32_138 = arith.constant 1 : i32
    %562 = vector.broadcast %c1_i32_138 : i32 to vector<8x1xi32>
    %563 = arith.shrsi %561, %562 : vector<8x1xi32>
    %564 = arith.addi %559, %563 : vector<8x1xi32>
    %565 = vector.broadcast %564 : vector<8x1xi32> to vector<8x128xi32>
    %566 = arith.cmpi sge, %524, %565 : vector<8x128xi32>
    %567 = arith.extui %566 : vector<8x128xi1> to vector<8x128xi32>
    %cst_139 = arith.constant dense<0> : vector<8xi32>
    %568 = vector.multi_reduction <add>, %567, %cst_139 [1] : vector<8x128xi32> to vector<8xi32>
    %569 = vector.shape_cast %568 : vector<8xi32> to vector<8x1xi32>
    %570 = arith.cmpi sge, %569, %531 : vector<8x1xi32>
    %571 = arith.select %570, %564, %559 : vector<8x1xi1>, vector<8x1xi32>
    %572 = arith.select %570, %560, %564 : vector<8x1xi1>, vector<8x1xi32>
    %573 = arith.subi %572, %571 : vector<8x1xi32>
    %c1_i32_140 = arith.constant 1 : i32
    %574 = vector.broadcast %c1_i32_140 : i32 to vector<8x1xi32>
    %575 = arith.shrsi %573, %574 : vector<8x1xi32>
    %576 = arith.addi %571, %575 : vector<8x1xi32>
    %577 = vector.broadcast %576 : vector<8x1xi32> to vector<8x128xi32>
    %578 = arith.cmpi sge, %524, %577 : vector<8x128xi32>
    %579 = arith.extui %578 : vector<8x128xi1> to vector<8x128xi32>
    %cst_141 = arith.constant dense<0> : vector<8xi32>
    %580 = vector.multi_reduction <add>, %579, %cst_141 [1] : vector<8x128xi32> to vector<8xi32>
    %581 = vector.shape_cast %580 : vector<8xi32> to vector<8x1xi32>
    %582 = arith.cmpi sge, %581, %531 : vector<8x1xi32>
    %583 = arith.select %582, %576, %571 : vector<8x1xi1>, vector<8x1xi32>
    %584 = arith.select %582, %572, %576 : vector<8x1xi1>, vector<8x1xi32>
    %585 = arith.subi %584, %583 : vector<8x1xi32>
    %c1_i32_142 = arith.constant 1 : i32
    %586 = vector.broadcast %c1_i32_142 : i32 to vector<8x1xi32>
    %587 = arith.shrsi %585, %586 : vector<8x1xi32>
    %588 = arith.addi %583, %587 : vector<8x1xi32>
    %589 = vector.broadcast %588 : vector<8x1xi32> to vector<8x128xi32>
    %590 = arith.cmpi sge, %524, %589 : vector<8x128xi32>
    %591 = arith.extui %590 : vector<8x128xi1> to vector<8x128xi32>
    %cst_143 = arith.constant dense<0> : vector<8xi32>
    %592 = vector.multi_reduction <add>, %591, %cst_143 [1] : vector<8x128xi32> to vector<8xi32>
    %593 = vector.shape_cast %592 : vector<8xi32> to vector<8x1xi32>
    %594 = arith.cmpi sge, %593, %531 : vector<8x1xi32>
    %595 = arith.select %594, %588, %583 : vector<8x1xi1>, vector<8x1xi32>
    %596 = arith.select %594, %584, %588 : vector<8x1xi1>, vector<8x1xi32>
    %597 = arith.subi %596, %595 : vector<8x1xi32>
    %c1_i32_144 = arith.constant 1 : i32
    %598 = vector.broadcast %c1_i32_144 : i32 to vector<8x1xi32>
    %599 = arith.shrsi %597, %598 : vector<8x1xi32>
    %600 = arith.addi %595, %599 : vector<8x1xi32>
    %601 = vector.broadcast %600 : vector<8x1xi32> to vector<8x128xi32>
    %602 = arith.cmpi sge, %524, %601 : vector<8x128xi32>
    %603 = arith.extui %602 : vector<8x128xi1> to vector<8x128xi32>
    %cst_145 = arith.constant dense<0> : vector<8xi32>
    %604 = vector.multi_reduction <add>, %603, %cst_145 [1] : vector<8x128xi32> to vector<8xi32>
    %605 = vector.shape_cast %604 : vector<8xi32> to vector<8x1xi32>
    %606 = arith.cmpi sge, %605, %531 : vector<8x1xi32>
    %607 = arith.select %606, %600, %595 : vector<8x1xi1>, vector<8x1xi32>
    %608 = arith.select %606, %596, %600 : vector<8x1xi1>, vector<8x1xi32>
    %609 = arith.subi %608, %607 : vector<8x1xi32>
    %c1_i32_146 = arith.constant 1 : i32
    %610 = vector.broadcast %c1_i32_146 : i32 to vector<8x1xi32>
    %611 = arith.shrsi %609, %610 : vector<8x1xi32>
    %612 = arith.addi %607, %611 : vector<8x1xi32>
    %613 = vector.broadcast %612 : vector<8x1xi32> to vector<8x128xi32>
    %614 = arith.cmpi sge, %524, %613 : vector<8x128xi32>
    %615 = arith.extui %614 : vector<8x128xi1> to vector<8x128xi32>
    %cst_147 = arith.constant dense<0> : vector<8xi32>
    %616 = vector.multi_reduction <add>, %615, %cst_147 [1] : vector<8x128xi32> to vector<8xi32>
    %617 = vector.shape_cast %616 : vector<8xi32> to vector<8x1xi32>
    %618 = arith.cmpi sge, %617, %531 : vector<8x1xi32>
    %619 = arith.select %618, %612, %607 : vector<8x1xi1>, vector<8x1xi32>
    %620 = arith.select %618, %608, %612 : vector<8x1xi1>, vector<8x1xi32>
    %621 = arith.subi %620, %619 : vector<8x1xi32>
    %c1_i32_148 = arith.constant 1 : i32
    %622 = vector.broadcast %c1_i32_148 : i32 to vector<8x1xi32>
    %623 = arith.shrsi %621, %622 : vector<8x1xi32>
    %624 = arith.addi %619, %623 : vector<8x1xi32>
    %625 = vector.broadcast %624 : vector<8x1xi32> to vector<8x128xi32>
    %626 = arith.cmpi sge, %524, %625 : vector<8x128xi32>
    %627 = arith.extui %626 : vector<8x128xi1> to vector<8x128xi32>
    %cst_149 = arith.constant dense<0> : vector<8xi32>
    %628 = vector.multi_reduction <add>, %627, %cst_149 [1] : vector<8x128xi32> to vector<8xi32>
    %629 = vector.shape_cast %628 : vector<8xi32> to vector<8x1xi32>
    %630 = arith.cmpi sge, %629, %531 : vector<8x1xi32>
    %631 = arith.select %630, %624, %619 : vector<8x1xi1>, vector<8x1xi32>
    %632 = arith.select %630, %620, %624 : vector<8x1xi1>, vector<8x1xi32>
    %633 = arith.subi %632, %631 : vector<8x1xi32>
    %c1_i32_150 = arith.constant 1 : i32
    %634 = vector.broadcast %c1_i32_150 : i32 to vector<8x1xi32>
    %635 = arith.shrsi %633, %634 : vector<8x1xi32>
    %636 = arith.addi %631, %635 : vector<8x1xi32>
    %637 = vector.broadcast %636 : vector<8x1xi32> to vector<8x128xi32>
    %638 = arith.cmpi sge, %524, %637 : vector<8x128xi32>
    %639 = arith.extui %638 : vector<8x128xi1> to vector<8x128xi32>
    %cst_151 = arith.constant dense<0> : vector<8xi32>
    %640 = vector.multi_reduction <add>, %639, %cst_151 [1] : vector<8x128xi32> to vector<8xi32>
    %641 = vector.shape_cast %640 : vector<8xi32> to vector<8x1xi32>
    %642 = arith.cmpi sge, %641, %531 : vector<8x1xi32>
    %643 = arith.select %642, %636, %631 : vector<8x1xi1>, vector<8x1xi32>
    %644 = arith.select %642, %632, %636 : vector<8x1xi1>, vector<8x1xi32>
    %645 = arith.subi %644, %643 : vector<8x1xi32>
    %c1_i32_152 = arith.constant 1 : i32
    %646 = vector.broadcast %c1_i32_152 : i32 to vector<8x1xi32>
    %647 = arith.shrsi %645, %646 : vector<8x1xi32>
    %648 = arith.addi %643, %647 : vector<8x1xi32>
    %649 = vector.broadcast %648 : vector<8x1xi32> to vector<8x128xi32>
    %650 = arith.cmpi sge, %524, %649 : vector<8x128xi32>
    %651 = arith.extui %650 : vector<8x128xi1> to vector<8x128xi32>
    %cst_153 = arith.constant dense<0> : vector<8xi32>
    %652 = vector.multi_reduction <add>, %651, %cst_153 [1] : vector<8x128xi32> to vector<8xi32>
    %653 = vector.shape_cast %652 : vector<8xi32> to vector<8x1xi32>
    %654 = arith.cmpi sge, %653, %531 : vector<8x1xi32>
    %655 = arith.select %654, %648, %643 : vector<8x1xi1>, vector<8x1xi32>
    %656 = arith.select %654, %644, %648 : vector<8x1xi1>, vector<8x1xi32>
    %657 = arith.subi %656, %655 : vector<8x1xi32>
    %c1_i32_154 = arith.constant 1 : i32
    %658 = vector.broadcast %c1_i32_154 : i32 to vector<8x1xi32>
    %659 = arith.shrsi %657, %658 : vector<8x1xi32>
    %660 = arith.addi %655, %659 : vector<8x1xi32>
    %661 = vector.broadcast %660 : vector<8x1xi32> to vector<8x128xi32>
    %662 = arith.cmpi sge, %524, %661 : vector<8x128xi32>
    %663 = arith.extui %662 : vector<8x128xi1> to vector<8x128xi32>
    %cst_155 = arith.constant dense<0> : vector<8xi32>
    %664 = vector.multi_reduction <add>, %663, %cst_155 [1] : vector<8x128xi32> to vector<8xi32>
    %665 = vector.shape_cast %664 : vector<8xi32> to vector<8x1xi32>
    %666 = arith.cmpi sge, %665, %531 : vector<8x1xi32>
    %667 = arith.select %666, %660, %655 : vector<8x1xi1>, vector<8x1xi32>
    %668 = arith.select %666, %656, %660 : vector<8x1xi1>, vector<8x1xi32>
    %669 = arith.subi %668, %667 : vector<8x1xi32>
    %c1_i32_156 = arith.constant 1 : i32
    %670 = vector.broadcast %c1_i32_156 : i32 to vector<8x1xi32>
    %671 = arith.shrsi %669, %670 : vector<8x1xi32>
    %672 = arith.addi %667, %671 : vector<8x1xi32>
    %673 = vector.broadcast %672 : vector<8x1xi32> to vector<8x128xi32>
    %674 = arith.cmpi sge, %524, %673 : vector<8x128xi32>
    %675 = arith.extui %674 : vector<8x128xi1> to vector<8x128xi32>
    %cst_157 = arith.constant dense<0> : vector<8xi32>
    %676 = vector.multi_reduction <add>, %675, %cst_157 [1] : vector<8x128xi32> to vector<8xi32>
    %677 = vector.shape_cast %676 : vector<8xi32> to vector<8x1xi32>
    %678 = arith.cmpi sge, %677, %531 : vector<8x1xi32>
    %679 = arith.select %678, %672, %667 : vector<8x1xi1>, vector<8x1xi32>
    %680 = arith.select %678, %668, %672 : vector<8x1xi1>, vector<8x1xi32>
    %681 = arith.subi %680, %679 : vector<8x1xi32>
    %c1_i32_158 = arith.constant 1 : i32
    %682 = vector.broadcast %c1_i32_158 : i32 to vector<8x1xi32>
    %683 = arith.shrsi %681, %682 : vector<8x1xi32>
    %684 = arith.addi %679, %683 : vector<8x1xi32>
    %685 = vector.broadcast %684 : vector<8x1xi32> to vector<8x128xi32>
    %686 = arith.cmpi sge, %524, %685 : vector<8x128xi32>
    %687 = arith.extui %686 : vector<8x128xi1> to vector<8x128xi32>
    %cst_159 = arith.constant dense<0> : vector<8xi32>
    %688 = vector.multi_reduction <add>, %687, %cst_159 [1] : vector<8x128xi32> to vector<8xi32>
    %689 = vector.shape_cast %688 : vector<8xi32> to vector<8x1xi32>
    %690 = arith.cmpi sge, %689, %531 : vector<8x1xi32>
    %691 = arith.select %690, %684, %679 : vector<8x1xi1>, vector<8x1xi32>
    %692 = arith.select %690, %680, %684 : vector<8x1xi1>, vector<8x1xi32>
    %693 = arith.subi %692, %691 : vector<8x1xi32>
    %c1_i32_160 = arith.constant 1 : i32
    %694 = vector.broadcast %c1_i32_160 : i32 to vector<8x1xi32>
    %695 = arith.shrsi %693, %694 : vector<8x1xi32>
    %696 = arith.addi %691, %695 : vector<8x1xi32>
    %697 = vector.broadcast %696 : vector<8x1xi32> to vector<8x128xi32>
    %698 = arith.cmpi sge, %524, %697 : vector<8x128xi32>
    %699 = arith.extui %698 : vector<8x128xi1> to vector<8x128xi32>
    %cst_161 = arith.constant dense<0> : vector<8xi32>
    %700 = vector.multi_reduction <add>, %699, %cst_161 [1] : vector<8x128xi32> to vector<8xi32>
    %701 = vector.shape_cast %700 : vector<8xi32> to vector<8x1xi32>
    %702 = arith.cmpi sge, %701, %531 : vector<8x1xi32>
    %703 = arith.select %702, %696, %691 : vector<8x1xi1>, vector<8x1xi32>
    %704 = arith.select %702, %692, %696 : vector<8x1xi1>, vector<8x1xi32>
    %705 = arith.subi %704, %703 : vector<8x1xi32>
    %c1_i32_162 = arith.constant 1 : i32
    %706 = vector.broadcast %c1_i32_162 : i32 to vector<8x1xi32>
    %707 = arith.shrsi %705, %706 : vector<8x1xi32>
    %708 = arith.addi %703, %707 : vector<8x1xi32>
    %709 = vector.broadcast %708 : vector<8x1xi32> to vector<8x128xi32>
    %710 = arith.cmpi sge, %524, %709 : vector<8x128xi32>
    %711 = arith.extui %710 : vector<8x128xi1> to vector<8x128xi32>
    %cst_163 = arith.constant dense<0> : vector<8xi32>
    %712 = vector.multi_reduction <add>, %711, %cst_163 [1] : vector<8x128xi32> to vector<8xi32>
    %713 = vector.shape_cast %712 : vector<8xi32> to vector<8x1xi32>
    %714 = arith.cmpi sge, %713, %531 : vector<8x1xi32>
    %715 = arith.select %714, %708, %703 : vector<8x1xi1>, vector<8x1xi32>
    %716 = arith.select %714, %704, %708 : vector<8x1xi1>, vector<8x1xi32>
    %717 = arith.subi %716, %715 : vector<8x1xi32>
    %c1_i32_164 = arith.constant 1 : i32
    %718 = vector.broadcast %c1_i32_164 : i32 to vector<8x1xi32>
    %719 = arith.shrsi %717, %718 : vector<8x1xi32>
    %720 = arith.addi %715, %719 : vector<8x1xi32>
    %721 = vector.broadcast %720 : vector<8x1xi32> to vector<8x128xi32>
    %722 = arith.cmpi sge, %524, %721 : vector<8x128xi32>
    %723 = arith.extui %722 : vector<8x128xi1> to vector<8x128xi32>
    %cst_165 = arith.constant dense<0> : vector<8xi32>
    %724 = vector.multi_reduction <add>, %723, %cst_165 [1] : vector<8x128xi32> to vector<8xi32>
    %725 = vector.shape_cast %724 : vector<8xi32> to vector<8x1xi32>
    %726 = arith.cmpi sge, %725, %531 : vector<8x1xi32>
    %727 = arith.select %726, %720, %715 : vector<8x1xi1>, vector<8x1xi32>
    %728 = arith.select %726, %716, %720 : vector<8x1xi1>, vector<8x1xi32>
    %729 = arith.subi %728, %727 : vector<8x1xi32>
    %c1_i32_166 = arith.constant 1 : i32
    %730 = vector.broadcast %c1_i32_166 : i32 to vector<8x1xi32>
    %731 = arith.shrsi %729, %730 : vector<8x1xi32>
    %732 = arith.addi %727, %731 : vector<8x1xi32>
    %733 = vector.broadcast %732 : vector<8x1xi32> to vector<8x128xi32>
    %734 = arith.cmpi sge, %524, %733 : vector<8x128xi32>
    %735 = arith.extui %734 : vector<8x128xi1> to vector<8x128xi32>
    %cst_167 = arith.constant dense<0> : vector<8xi32>
    %736 = vector.multi_reduction <add>, %735, %cst_167 [1] : vector<8x128xi32> to vector<8xi32>
    %737 = vector.shape_cast %736 : vector<8xi32> to vector<8x1xi32>
    %738 = arith.cmpi sge, %737, %531 : vector<8x1xi32>
    %739 = arith.select %738, %732, %727 : vector<8x1xi1>, vector<8x1xi32>
    %740 = arith.select %738, %728, %732 : vector<8x1xi1>, vector<8x1xi32>
    %741 = arith.subi %740, %739 : vector<8x1xi32>
    %c1_i32_168 = arith.constant 1 : i32
    %742 = vector.broadcast %c1_i32_168 : i32 to vector<8x1xi32>
    %743 = arith.shrsi %741, %742 : vector<8x1xi32>
    %744 = arith.addi %739, %743 : vector<8x1xi32>
    %745 = vector.broadcast %744 : vector<8x1xi32> to vector<8x128xi32>
    %746 = arith.cmpi sge, %524, %745 : vector<8x128xi32>
    %747 = arith.extui %746 : vector<8x128xi1> to vector<8x128xi32>
    %cst_169 = arith.constant dense<0> : vector<8xi32>
    %748 = vector.multi_reduction <add>, %747, %cst_169 [1] : vector<8x128xi32> to vector<8xi32>
    %749 = vector.shape_cast %748 : vector<8xi32> to vector<8x1xi32>
    %750 = arith.cmpi sge, %749, %531 : vector<8x1xi32>
    %751 = arith.select %750, %744, %739 : vector<8x1xi1>, vector<8x1xi32>
    %752 = arith.select %750, %740, %744 : vector<8x1xi1>, vector<8x1xi32>
    %753 = arith.subi %752, %751 : vector<8x1xi32>
    %c1_i32_170 = arith.constant 1 : i32
    %754 = vector.broadcast %c1_i32_170 : i32 to vector<8x1xi32>
    %755 = arith.shrsi %753, %754 : vector<8x1xi32>
    %756 = arith.addi %751, %755 : vector<8x1xi32>
    %757 = vector.broadcast %756 : vector<8x1xi32> to vector<8x128xi32>
    %758 = arith.cmpi sge, %524, %757 : vector<8x128xi32>
    %759 = arith.extui %758 : vector<8x128xi1> to vector<8x128xi32>
    %cst_171 = arith.constant dense<0> : vector<8xi32>
    %760 = vector.multi_reduction <add>, %759, %cst_171 [1] : vector<8x128xi32> to vector<8xi32>
    %761 = vector.shape_cast %760 : vector<8xi32> to vector<8x1xi32>
    %762 = arith.cmpi sge, %761, %531 : vector<8x1xi32>
    %763 = arith.select %762, %756, %751 : vector<8x1xi1>, vector<8x1xi32>
    %764 = arith.select %762, %752, %756 : vector<8x1xi1>, vector<8x1xi32>
    %765 = arith.subi %764, %763 : vector<8x1xi32>
    %c1_i32_172 = arith.constant 1 : i32
    %766 = vector.broadcast %c1_i32_172 : i32 to vector<8x1xi32>
    %767 = arith.shrsi %765, %766 : vector<8x1xi32>
    %768 = arith.addi %763, %767 : vector<8x1xi32>
    %769 = vector.broadcast %768 : vector<8x1xi32> to vector<8x128xi32>
    %770 = arith.cmpi sge, %524, %769 : vector<8x128xi32>
    %771 = arith.extui %770 : vector<8x128xi1> to vector<8x128xi32>
    %cst_173 = arith.constant dense<0> : vector<8xi32>
    %772 = vector.multi_reduction <add>, %771, %cst_173 [1] : vector<8x128xi32> to vector<8xi32>
    %773 = vector.shape_cast %772 : vector<8xi32> to vector<8x1xi32>
    %774 = arith.cmpi sge, %773, %531 : vector<8x1xi32>
    %775 = arith.select %774, %768, %763 : vector<8x1xi1>, vector<8x1xi32>
    %776 = arith.select %774, %764, %768 : vector<8x1xi1>, vector<8x1xi32>
    %777 = arith.subi %776, %775 : vector<8x1xi32>
    %c1_i32_174 = arith.constant 1 : i32
    %778 = vector.broadcast %c1_i32_174 : i32 to vector<8x1xi32>
    %779 = arith.shrsi %777, %778 : vector<8x1xi32>
    %780 = arith.addi %775, %779 : vector<8x1xi32>
    %781 = vector.broadcast %780 : vector<8x1xi32> to vector<8x128xi32>
    %782 = arith.cmpi sge, %524, %781 : vector<8x128xi32>
    %783 = arith.extui %782 : vector<8x128xi1> to vector<8x128xi32>
    %cst_175 = arith.constant dense<0> : vector<8xi32>
    %784 = vector.multi_reduction <add>, %783, %cst_175 [1] : vector<8x128xi32> to vector<8xi32>
    %785 = vector.shape_cast %784 : vector<8xi32> to vector<8x1xi32>
    %786 = arith.cmpi sge, %785, %531 : vector<8x1xi32>
    %787 = arith.select %786, %780, %775 : vector<8x1xi1>, vector<8x1xi32>
    %788 = arith.select %786, %776, %780 : vector<8x1xi1>, vector<8x1xi32>
    %789 = arith.subi %788, %787 : vector<8x1xi32>
    %c1_i32_176 = arith.constant 1 : i32
    %790 = vector.broadcast %c1_i32_176 : i32 to vector<8x1xi32>
    %791 = arith.shrsi %789, %790 : vector<8x1xi32>
    %792 = arith.addi %787, %791 : vector<8x1xi32>
    %793 = vector.broadcast %792 : vector<8x1xi32> to vector<8x128xi32>
    %794 = arith.cmpi sge, %524, %793 : vector<8x128xi32>
    %795 = arith.extui %794 : vector<8x128xi1> to vector<8x128xi32>
    %cst_177 = arith.constant dense<0> : vector<8xi32>
    %796 = vector.multi_reduction <add>, %795, %cst_177 [1] : vector<8x128xi32> to vector<8xi32>
    %797 = vector.shape_cast %796 : vector<8xi32> to vector<8x1xi32>
    %798 = arith.cmpi sge, %797, %531 : vector<8x1xi32>
    %799 = arith.select %798, %792, %787 : vector<8x1xi1>, vector<8x1xi32>
    %800 = arith.select %798, %788, %792 : vector<8x1xi1>, vector<8x1xi32>
    %801 = arith.subi %800, %799 : vector<8x1xi32>
    %c1_i32_178 = arith.constant 1 : i32
    %802 = vector.broadcast %c1_i32_178 : i32 to vector<8x1xi32>
    %803 = arith.shrsi %801, %802 : vector<8x1xi32>
    %804 = arith.addi %799, %803 : vector<8x1xi32>
    %805 = vector.broadcast %804 : vector<8x1xi32> to vector<8x128xi32>
    %806 = arith.cmpi sge, %524, %805 : vector<8x128xi32>
    %807 = arith.extui %806 : vector<8x128xi1> to vector<8x128xi32>
    %cst_179 = arith.constant dense<0> : vector<8xi32>
    %808 = vector.multi_reduction <add>, %807, %cst_179 [1] : vector<8x128xi32> to vector<8xi32>
    %809 = vector.shape_cast %808 : vector<8xi32> to vector<8x1xi32>
    %810 = arith.cmpi sge, %809, %531 : vector<8x1xi32>
    %811 = arith.select %810, %804, %799 : vector<8x1xi1>, vector<8x1xi32>
    %812 = arith.select %810, %800, %804 : vector<8x1xi1>, vector<8x1xi32>
    %813 = arith.subi %812, %811 : vector<8x1xi32>
    %c1_i32_180 = arith.constant 1 : i32
    %814 = vector.broadcast %c1_i32_180 : i32 to vector<8x1xi32>
    %815 = arith.shrsi %813, %814 : vector<8x1xi32>
    %816 = arith.addi %811, %815 : vector<8x1xi32>
    %817 = vector.broadcast %816 : vector<8x1xi32> to vector<8x128xi32>
    %818 = arith.cmpi sge, %524, %817 : vector<8x128xi32>
    %819 = arith.extui %818 : vector<8x128xi1> to vector<8x128xi32>
    %cst_181 = arith.constant dense<0> : vector<8xi32>
    %820 = vector.multi_reduction <add>, %819, %cst_181 [1] : vector<8x128xi32> to vector<8xi32>
    %821 = vector.shape_cast %820 : vector<8xi32> to vector<8x1xi32>
    %822 = arith.cmpi sge, %821, %531 : vector<8x1xi32>
    %823 = arith.select %822, %816, %811 : vector<8x1xi1>, vector<8x1xi32>
    %824 = arith.select %822, %812, %816 : vector<8x1xi1>, vector<8x1xi32>
    %825 = arith.subi %824, %823 : vector<8x1xi32>
    %c1_i32_182 = arith.constant 1 : i32
    %826 = vector.broadcast %c1_i32_182 : i32 to vector<8x1xi32>
    %827 = arith.shrsi %825, %826 : vector<8x1xi32>
    %828 = arith.addi %823, %827 : vector<8x1xi32>
    %829 = vector.broadcast %828 : vector<8x1xi32> to vector<8x128xi32>
    %830 = arith.cmpi sge, %524, %829 : vector<8x128xi32>
    %831 = arith.extui %830 : vector<8x128xi1> to vector<8x128xi32>
    %cst_183 = arith.constant dense<0> : vector<8xi32>
    %832 = vector.multi_reduction <add>, %831, %cst_183 [1] : vector<8x128xi32> to vector<8xi32>
    %833 = vector.shape_cast %832 : vector<8xi32> to vector<8x1xi32>
    %834 = arith.cmpi sge, %833, %531 : vector<8x1xi32>
    %835 = arith.select %834, %828, %823 : vector<8x1xi1>, vector<8x1xi32>
    %836 = arith.select %834, %824, %828 : vector<8x1xi1>, vector<8x1xi32>
    %837 = arith.subi %836, %835 : vector<8x1xi32>
    %c1_i32_184 = arith.constant 1 : i32
    %838 = vector.broadcast %c1_i32_184 : i32 to vector<8x1xi32>
    %839 = arith.shrsi %837, %838 : vector<8x1xi32>
    %840 = arith.addi %835, %839 : vector<8x1xi32>
    %841 = vector.broadcast %840 : vector<8x1xi32> to vector<8x128xi32>
    %842 = arith.cmpi sge, %524, %841 : vector<8x128xi32>
    %843 = arith.extui %842 : vector<8x128xi1> to vector<8x128xi32>
    %cst_185 = arith.constant dense<0> : vector<8xi32>
    %844 = vector.multi_reduction <add>, %843, %cst_185 [1] : vector<8x128xi32> to vector<8xi32>
    %845 = vector.shape_cast %844 : vector<8xi32> to vector<8x1xi32>
    %846 = arith.cmpi sge, %845, %531 : vector<8x1xi32>
    %847 = arith.select %846, %840, %835 : vector<8x1xi1>, vector<8x1xi32>
    %848 = arith.select %846, %836, %840 : vector<8x1xi1>, vector<8x1xi32>
    %849 = arith.subi %848, %847 : vector<8x1xi32>
    %c1_i32_186 = arith.constant 1 : i32
    %850 = vector.broadcast %c1_i32_186 : i32 to vector<8x1xi32>
    %851 = arith.shrsi %849, %850 : vector<8x1xi32>
    %852 = arith.addi %847, %851 : vector<8x1xi32>
    %853 = vector.broadcast %852 : vector<8x1xi32> to vector<8x128xi32>
    %854 = arith.cmpi sge, %524, %853 : vector<8x128xi32>
    %855 = arith.extui %854 : vector<8x128xi1> to vector<8x128xi32>
    %cst_187 = arith.constant dense<0> : vector<8xi32>
    %856 = vector.multi_reduction <add>, %855, %cst_187 [1] : vector<8x128xi32> to vector<8xi32>
    %857 = vector.shape_cast %856 : vector<8xi32> to vector<8x1xi32>
    %858 = arith.cmpi sge, %857, %531 : vector<8x1xi32>
    %859 = arith.select %858, %852, %847 : vector<8x1xi1>, vector<8x1xi32>
    %860 = arith.select %858, %848, %852 : vector<8x1xi1>, vector<8x1xi32>
    %861 = arith.subi %860, %859 : vector<8x1xi32>
    %c1_i32_188 = arith.constant 1 : i32
    %862 = vector.broadcast %c1_i32_188 : i32 to vector<8x1xi32>
    %863 = arith.shrsi %861, %862 : vector<8x1xi32>
    %864 = arith.addi %859, %863 : vector<8x1xi32>
    %865 = vector.broadcast %864 : vector<8x1xi32> to vector<8x128xi32>
    %866 = arith.cmpi sge, %524, %865 : vector<8x128xi32>
    %867 = arith.extui %866 : vector<8x128xi1> to vector<8x128xi32>
    %cst_189 = arith.constant dense<0> : vector<8xi32>
    %868 = vector.multi_reduction <add>, %867, %cst_189 [1] : vector<8x128xi32> to vector<8xi32>
    %869 = vector.shape_cast %868 : vector<8xi32> to vector<8x1xi32>
    %870 = arith.cmpi sge, %869, %531 : vector<8x1xi32>
    %871 = arith.select %870, %864, %859 : vector<8x1xi1>, vector<8x1xi32>
    %872 = arith.select %870, %860, %864 : vector<8x1xi1>, vector<8x1xi32>
    %873 = arith.subi %872, %871 : vector<8x1xi32>
    %c1_i32_190 = arith.constant 1 : i32
    %874 = vector.broadcast %c1_i32_190 : i32 to vector<8x1xi32>
    %875 = arith.shrsi %873, %874 : vector<8x1xi32>
    %876 = arith.addi %871, %875 : vector<8x1xi32>
    %877 = vector.broadcast %876 : vector<8x1xi32> to vector<8x128xi32>
    %878 = arith.cmpi sge, %524, %877 : vector<8x128xi32>
    %879 = arith.extui %878 : vector<8x128xi1> to vector<8x128xi32>
    %cst_191 = arith.constant dense<0> : vector<8xi32>
    %880 = vector.multi_reduction <add>, %879, %cst_191 [1] : vector<8x128xi32> to vector<8xi32>
    %881 = vector.shape_cast %880 : vector<8xi32> to vector<8x1xi32>
    %882 = arith.cmpi sge, %881, %531 : vector<8x1xi32>
    %883 = arith.select %882, %876, %871 : vector<8x1xi1>, vector<8x1xi32>
    %884 = arith.select %882, %872, %876 : vector<8x1xi1>, vector<8x1xi32>
    %885 = arith.subi %884, %883 : vector<8x1xi32>
    %c1_i32_192 = arith.constant 1 : i32
    %886 = vector.broadcast %c1_i32_192 : i32 to vector<8x1xi32>
    %887 = arith.shrsi %885, %886 : vector<8x1xi32>
    %888 = arith.addi %883, %887 : vector<8x1xi32>
    %889 = vector.broadcast %888 : vector<8x1xi32> to vector<8x128xi32>
    %890 = arith.cmpi sge, %524, %889 : vector<8x128xi32>
    %891 = arith.extui %890 : vector<8x128xi1> to vector<8x128xi32>
    %cst_193 = arith.constant dense<0> : vector<8xi32>
    %892 = vector.multi_reduction <add>, %891, %cst_193 [1] : vector<8x128xi32> to vector<8xi32>
    %893 = vector.shape_cast %892 : vector<8xi32> to vector<8x1xi32>
    %894 = arith.cmpi sge, %893, %531 : vector<8x1xi32>
    %895 = arith.select %894, %888, %883 : vector<8x1xi1>, vector<8x1xi32>
    %896 = arith.select %894, %884, %888 : vector<8x1xi1>, vector<8x1xi32>
    %897 = arith.subi %896, %895 : vector<8x1xi32>
    %c1_i32_194 = arith.constant 1 : i32
    %898 = vector.broadcast %c1_i32_194 : i32 to vector<8x1xi32>
    %899 = arith.shrsi %897, %898 : vector<8x1xi32>
    %900 = arith.addi %895, %899 : vector<8x1xi32>
    %901 = vector.broadcast %900 : vector<8x1xi32> to vector<8x128xi32>
    %902 = arith.cmpi sge, %524, %901 : vector<8x128xi32>
    %903 = arith.extui %902 : vector<8x128xi1> to vector<8x128xi32>
    %cst_195 = arith.constant dense<0> : vector<8xi32>
    %904 = vector.multi_reduction <add>, %903, %cst_195 [1] : vector<8x128xi32> to vector<8xi32>
    %905 = vector.shape_cast %904 : vector<8xi32> to vector<8x1xi32>
    %906 = arith.cmpi sge, %905, %531 : vector<8x1xi32>
    %907 = arith.select %906, %900, %895 : vector<8x1xi1>, vector<8x1xi32>
    %908 = tpu.bitcast %907 : vector<8x1xi32> -> vector<8x1xf32>
    %909 = vector.broadcast %908 : vector<8x1xf32> to vector<8x128xf32>
    %910 = arith.cmpf ogt, %521, %909 : vector<8x128xf32>
    %911 = arith.extui %910 : vector<8x128xi1> to vector<8x128xi32>
    %cst_196 = arith.constant dense<0> : vector<8xi32>
    %912 = vector.multi_reduction <add>, %911, %cst_196 [1] : vector<8x128xi32> to vector<8xi32>
    %913 = vector.shape_cast %912 : vector<8xi32> to vector<8x1xi32>
    %cst_197 = arith.constant 0.000000e+00 : f32
    %914 = vector.broadcast %cst_197 : f32 to vector<8x128xf32>
    %915 = arith.select %910, %521, %914 : vector<8x128xi1>, vector<8x128xf32>
    %cst_198 = arith.constant dense<0.000000e+00> : vector<8xf32>
    %916 = vector.multi_reduction <add>, %915, %cst_198 [1] : vector<8x128xf32> to vector<8xf32>
    %917 = vector.shape_cast %916 : vector<8xf32> to vector<8x1xf32>
    %cst_199 = arith.constant 0.000000e+00 : f32
    %918 = vector.broadcast %cst_199 : f32 to vector<8x128xf32>
    %919 = arith.select %345, %519, %918 : vector<8x128xi1>, vector<8x128xf32>
    %cst_200 = arith.constant dense<0.000000e+00> : vector<8xf32>
    %920 = vector.multi_reduction <add>, %919, %cst_200 [1] : vector<8x128xf32> to vector<8xf32>
    %921 = vector.shape_cast %920 : vector<8xf32> to vector<8x1xf32>
    %922 = arith.subi %531, %913 : vector<8x1xi32>
    %923 = arith.sitofp %922 : vector<8x1xi32> to vector<8x1xf32>
    %924 = arith.mulf %923, %908 : vector<8x1xf32>
    %c0_i32_201 = arith.constant 0 : i32
    %925 = vector.broadcast %c0_i32_201 : i32 to vector<8x1xi32>
    %926 = arith.cmpi sgt, %531, %925 : vector<8x1xi32>
    %927 = arith.addf %917, %924 : vector<8x1xf32>
    %cst_202 = arith.constant 0.000000e+00 : f32
    %928 = vector.broadcast %cst_202 : f32 to vector<8x1xf32>
    %929 = arith.select %926, %927, %928 : vector<8x1xi1>, vector<8x1xf32>
    %930 = arith.addf %921, %929 : vector<8x1xf32>
    %c8_i32 = arith.constant 8 : i32
    %931 = arith.muli %arg0, %c8_i32 : i32
    %932 = tpu.iota {dimensions = array<i32: 0>} : vector<8x1xi32>
    %933 = vector.broadcast %931 : i32 to vector<8x1xi32>
    %934 = arith.addi %933, %932 : vector<8x1xi32>
    %c2_i32_203 = arith.constant 2 : i32
    %935 = vector.broadcast %c2_i32_203 : i32 to vector<8x1xi32>
    %936 = arith.cmpi slt, %934, %935 : vector<8x1xi32>
    %cst_204 = arith.constant 0.000000e+00 : f32
    %937 = vector.broadcast %cst_204 : f32 to vector<8x1xf32>
    %938 = arith.select %936, %427, %937 : vector<8x1xi1>, vector<8x1xf32>
    %939 = vector.shape_cast %938 : vector<8x1xf32> to vector<1x8x1xf32>
    %cst_205 = arith.constant dense<0.000000e+00> : vector<1xf32>
    %940 = vector.multi_reduction <add>, %939, %cst_205 [1, 2] : vector<1x8x1xf32> to vector<1xf32>
    %941 = vector.shape_cast %940 : vector<1xf32> to vector<1x1x1xf32>
    %942 = vector.extract %941[0, 0, 0] : f32 from vector<1x1x1xf32>
    %cst_206 = arith.constant 0.000000e+00 : f32
    %943 = vector.broadcast %cst_206 : f32 to vector<8x1xf32>
    %944 = arith.select %936, %930, %943 : vector<8x1xi1>, vector<8x1xf32>
    %945 = vector.shape_cast %944 : vector<8x1xf32> to vector<1x8x1xf32>
    %cst_207 = arith.constant dense<0.000000e+00> : vector<1xf32>
    %946 = vector.multi_reduction <add>, %945, %cst_207 [1, 2] : vector<1x8x1xf32> to vector<1xf32>
    %947 = vector.shape_cast %946 : vector<1xf32> to vector<1x1x1xf32>
    %948 = vector.extract %947[0, 0, 0] : f32 from vector<1x1x1xf32>
    %949 = arith.sitofp %527 : vector<8x1xi32> to vector<8x1xf32>
    %cst_208 = arith.constant 0.000000e+00 : f32
    %950 = vector.broadcast %cst_208 : f32 to vector<8x1xf32>
    %951 = arith.select %936, %949, %950 : vector<8x1xi1>, vector<8x1xf32>
    %952 = vector.shape_cast %951 : vector<8x1xf32> to vector<1x8x1xf32>
    %cst_209 = arith.constant dense<0.000000e+00> : vector<1xf32>
    %953 = vector.multi_reduction <add>, %952, %cst_209 [1, 2] : vector<1x8x1xf32> to vector<1xf32>
    %954 = vector.shape_cast %953 : vector<1xf32> to vector<1x1x1xf32>
    %955 = vector.extract %954[0, 0, 0] : f32 from vector<1x1x1xf32>
    %956 = tpu.iota {dimensions = array<i32: 1>} : vector<1x128xi32>
    %c0_i32_210 = arith.constant 0 : i32
    %957 = vector.broadcast %c0_i32_210 : i32 to vector<1x128xi32>
    %958 = arith.cmpi eq, %956, %957 : vector<1x128xi32>
    %cst_211 = arith.constant 0.000000e+00 : f32
    %959 = vector.broadcast %942 : f32 to vector<1x128xf32>
    %960 = vector.broadcast %cst_211 : f32 to vector<1x128xf32>
    %961 = arith.select %958, %959, %960 : vector<1x128xi1>, vector<1x128xf32>
    %c1_i32_212 = arith.constant 1 : i32
    %962 = vector.broadcast %c1_i32_212 : i32 to vector<1x128xi32>
    %963 = arith.cmpi eq, %956, %962 : vector<1x128xi32>
    %cst_213 = arith.constant 0.000000e+00 : f32
    %964 = vector.broadcast %948 : f32 to vector<1x128xf32>
    %965 = vector.broadcast %cst_213 : f32 to vector<1x128xf32>
    %966 = arith.select %963, %964, %965 : vector<1x128xi1>, vector<1x128xf32>
    %967 = arith.addf %961, %966 : vector<1x128xf32>
    %c2_i32_214 = arith.constant 2 : i32
    %968 = vector.broadcast %c2_i32_214 : i32 to vector<1x128xi32>
    %969 = arith.cmpi eq, %956, %968 : vector<1x128xi32>
    %cst_215 = arith.constant 0.000000e+00 : f32
    %970 = vector.broadcast %955 : f32 to vector<1x128xf32>
    %971 = vector.broadcast %cst_215 : f32 to vector<1x128xf32>
    %972 = arith.select %969, %970, %971 : vector<1x128xi1>, vector<1x128xf32>
    %973 = arith.addf %967, %972 : vector<1x128xf32>
    %c0_216 = arith.constant 0 : index
    %c0_217 = arith.constant 0 : index
    %c0_218 = arith.constant 0 : index
    %974 = vector.load %arg5[%c0_216, %c0_217, %c0_218] : memref<1x1x128xf32, #tpu.memory_space<vmem>>, vector<1x1x128xf32>
    %975 = vector.shape_cast %974 : vector<1x1x128xf32> to vector<1x128xf32>
    %976 = vector.shape_cast %973 : vector<1x128xf32> to vector<1x1x128xf32>
    tpu.vector_store %arg5[%c0_216, %c0_217, %c0_218], %976 {strides = array<i32>} : memref<1x1x128xf32, #tpu.memory_space<vmem>>, vector<1x1x128xf32>,
    return
  }
  func.func @transform_0(%arg0: i32) -> (i32, i32, i32) {
    %c0_i32 = arith.constant 0 : i32
    %c0_i32_0 = arith.constant 0 : i32
    %c0_i32_1 = arith.constant 0 : i32
    return %c0_i32, %arg0, %c0_i32_0 : i32, i32, i32
  }
  func.func @transform_1(%arg0: i32) -> (i32, i32, i32) {
    %c0_i32 = arith.constant 0 : i32
    %c0_i32_0 = arith.constant 0 : i32
    %c0_i32_1 = arith.constant 0 : i32
    return %c0_i32, %arg0, %c0_i32_0 : i32, i32, i32
  }
  func.func @transform_2(%arg0: i32) -> (i32, i32, i32) {
    %c0_i32 = arith.constant 0 : i32
    %c0_i32_0 = arith.constant 0 : i32
    %c0_i32_1 = arith.constant 0 : i32
    return %c0_i32, %arg0, %c0_i32_0 : i32, i32, i32
  }
  func.func @transform_3(%arg0: i32) -> (i32, i32) {
    %c0_i32 = arith.constant 0 : i32
    %c0_i32_0 = arith.constant 0 : i32
    %c0_i32_1 = arith.constant 0 : i32
    return %c0_i32, %c0_i32_0 : i32, i32
  }
  func.func @transform_4(%arg0: i32) -> (i32, i32, i32) {
    %c0_i32 = arith.constant 0 : i32
    %c0_i32_0 = arith.constant 0 : i32
    %c0_i32_1 = arith.constant 0 : i32
    return %arg0, %c0_i32, %c0_i32_0 : i32, i32, i32
  }
}

</mosaic_0001>

<bundles_post_ra>
// kernel: tpu_custom_call.1
= control target key start
LH: loop header
LB: loop body
LE: loop exit
PB: predicated region body
PF: predicated region fallthrough
CT: control target
= control target key end

     0   :  { %9 = vsyncpa [#allocation3], 0  ;;  %s1897_s0 = inlined_call_operand.vmem [shape: f32[4,8,5], index: 0, kind: input, shape index: {}]   ;;  %s1898_s1 = inlined_call_operand.vmem [shape: f32[4,8,128], index: 1, kind: input, shape index: {}]   ;;  %s1899_s2 = inlined_call_operand.hbm [shape: f32[8,8,128], index: 2, kind: input, shape index: {}]   ;;  %s1900_s3 = inlined_call_operand.vmem [shape: f32[16,128], index: 3, kind: input, shape index: {}]   ;;  %s1901_s4 = inlined_call_operand.hbm [shape: f32[1,1,128], index: 4, kind: output, shape index: {}]  }
   0x1   :  { %10 = vsyncpa [#allocation4], 0  ;;  %s1410_s15 = smov [#allocation2]   ;;  %s1362_s19 = scalar_lea.hbm %s1899_s2, 1024 }
   0x2   :  { %s20_s16 = sshll.u32 %s1410_s15, 4  ;;  %p1363_p0 = scmp.ne.s32.totalorder %s1899_s2, %s1362_s19  ;;  %s21_s16 = int_to_ptr.vmem [resolvable:$true] %s20_s16 }
   0x3   :  { %p1366_p1 = scmp.lt.u32.totalorder %s1362_s19, %s1899_s2 }
   0x5   :  { %p1368_p2 = pnand %p1366_p1, %p1363_p0 }
   0x7   :  { %1371 = shalt.err (!%p1368_p2)
}
   0x8   :  { %s1372_s24 = scalar_lea.vmem %s21_s16, 1024  ;;  %p1377_p4 = scmp.lt.s32.totalorder %s21_s16, %s21_s16 }
   0x9   :  { %p1373_p3 = scmp.ne.s32.totalorder %s21_s16, %s1372_s24  ;;  %p1378_p5 = scmp.lt.s32.totalorder %s1372_s24, %s1372_s24 }
   0xb   :  { %p1379_p6 = por %p1378_p5, %p1377_p4 }
   0xd   :  { %p1380_p7 = pnand %p1379_p6, %p1373_p3 }
   0xf   :  { %1383 = shalt.err (!%p1380_p7)
}
  0x10   :  { %s1411_s25 = smov 128   ;;  %s1412_s26 = smov 8  }
  0x11   :  { %26 = dma.hbm_to_vmem [thread:$0]  %s1899_s2, 1024, %s21_s16, [#allocation3], %s1411_s25, %s1411_s25, %s1412_s26  }
  0x12   :  { %1406 = dma.done.wait [#allocation3], 1024  }
  0x13   :  { %1407 = vsyncadd [#allocation3], 4294966272  ;;  %v1413_v0 = vmov 3   ;;  %v1414_v1 = vmov 0   ;;  %v1462_v2 = vld [vmem:[%s1897_s0] sm:$0xff]  ;;  %v1467_v3 = vld [vmem:[%s1897_s0 + $0x10] sm:$0xff]  ;;  %v38_v32 = vlaneseq }
  0x14   :  { %1318 = vset.pattern.permute.xlu0 %v1413_v0  ;;  %1314 = vset.pattern.permute.xlu1 %v1414_v1  ;;  %s1415_s7 = smov 2   ;;  %v1474_v4 = vld [vmem:[%s1897_s0 + $0x8] sm:$0xff]  ;;  %v1479_v5 = vld [vmem:[%s1897_s0 + $0x18] sm:$0xff]  ;;  %s1416_s11 = smov 127   ;;  %v1417_v14 = vmov 2   ;;  %v1418_v15 = vmov 1  }
  0x15   :  { %82 = vrot.lane.b32.xlu0 %v1462_v2, %s1415_s7  ;;  %223 = vrot.lane.b32.xlu1 %v1467_v3, %s1415_s7  ;;  %v1525_v34 = vshrl.u32 %v38_v32, 7  ;;  %v1538_v41 = vld [vmem:[%s1900_s3] sm:$0xff]  ;;  %v1569_v61 = vld [vmem:[%s1900_s3 + $0x8] sm:$0xff]  ;;  %s1420_s24 = smov [#allocation5]  }
  0x16   :  { %s1279_s25 = sshll.u32 %s1420_s24, 4  ;;  %s1280_s25 = int_to_ptr.vmem [resolvable:$true] %s1279_s25 }
  0x17   :  { %v63_v37 = vsub.s32 3, %v1525_v34  ;;  %v52_v38 = vsub.s32 0, %v1525_v34  ;;  %v42_v39 = vsub.s32 2, %v1525_v34  ;;  %v72_v40 = vsub.s32 1, %v1525_v34  ;;  %s1384_s26 = scalar_lea.vmem %s1280_s25, 16  ;;  %s1388_s27 = scalar_lea.vmem %s1280_s25, 32 }
  0x18   :  { %p1385_p8 = scmp.ne.s32.totalorder %s1280_s25, %s1384_s26  ;;  %p1389_p9 = scmp.lt.s32.totalorder %s1280_s25, %s1280_s25 }
  0x19   :  { %153 = vrot.lane.b32.xlu0 %v1474_v4, %s1415_s7  ;;  %293 = vrot.lane.b32.xlu1 %v1479_v5, %s1415_s7  ;;  %v64_v43 = vrot.slane %v1538_v41, %v63_v37  ;;  %v53_v44 = vrot.slane %v1538_v41, %v52_v38  ;;  %v43_v45 = vrot.slane %v1538_v41, %v42_v39  ;;  %p1390_p10 = scmp.lt.s32.totalorder %s1388_s27, %s1384_s26 }
  0x1a   :  { %v73_v46 = vrot.slane %v1538_v41, %v72_v40 }
  0x1b   :  { %p1391_p11 = por %p1390_p10, %p1389_p9 }
  0x1d   :  { %p1392_p12 = pnand %p1391_p11, %p1385_p8 }
  0x87   :  { %v83_v6 = vpop.permute.xlu0 %82  ;;  %v224_v7 = vpop.permute.xlu1 %223 }
  0x88   :  { %v85_v8 = vsub.f32 %v1462_v2, %v83_v6  ;;  %v226_v9 = vsub.f32 %v1467_v3, %v224_v7 }
  0x8a   :  { %87 = vrot.lane.b32.xlu0 %v85_v8, %s1416_s11 }
  0x8b   :  { %v154_v10 = vpop.permute.xlu0 %153  ;;  %v294_v11 = vpop.permute.xlu1 %293 }
  0x8c   :  { %v156_v12 = vsub.f32 %v1474_v4, %v154_v10  ;;  %v296_v13 = vsub.f32 %v1479_v5, %v294_v11 }
  0x8e   :  { %228 = vrot.lane.b32.xlu0 %v226_v9, %s1416_s11  ;;  %158 = vrot.lane.b32.xlu1 %v156_v12, %s1416_s11 }
  0x92   :  { %298 = vrot.lane.b32.xlu1 %v296_v13, %s1416_s11  ;;  %141 = vperm.xlu0 %1318, %v1474_v4  }
  0x96   :  { %1321 = vset.pattern.permute.xlu0 %v1414_v1  ;;  %55 = vperm.xlu1 %1314, %v1462_v2  }
  0x97   :  { %204 = vperm.xlu0 %1321, %v1467_v3  }
  0x9a   :  { %1315 = vset.pattern.permute.xlu1 %v1413_v0 }
  0x9b   :  { %1322 = vset.pattern.permute.xlu0 %v1417_v14  ;;  %66 = vperm.xlu1 %1315, %v1462_v2  }
  0x9c   :  { %46 = vperm.xlu0 %1322, %v1462_v2  }
  0x9f   :  { %1316 = vset.pattern.permute.xlu1 %v1417_v14 }
  0xa0   :  { %269 = vperm.xlu0 %1322, %v1479_v5   ;;  %129 = vperm.xlu1 %1316, %v1474_v4  }
  0xa4   :  { %1325 = vset.pattern.permute.xlu0 %v1418_v15  ;;  %1317 = vset.pattern.permute.xlu1 %v1414_v1 }
  0xa5   :  { %75 = vperm.xlu0 %1325, %v1462_v2   ;;  %134 = vperm.xlu1 %1317, %v1474_v4  }
  0xa9   :  { %1319 = vset.pattern.permute.xlu1 %v1418_v15  ;;  %286 = vperm.xlu0 %1325, %v1479_v5  }
  0xaa   :  { %146 = vperm.xlu1 %1319, %v1474_v4  }
  0xad   :  { %1329 = vset.pattern.permute.xlu0 %v1417_v14 }
  0xae   :  { %1320 = vset.pattern.permute.xlu1 %v1417_v14 }
  0xaf   :  { %199 = vperm.xlu1 %1320, %v1467_v3  }
  0xb3   :  { %1323 = vset.pattern.permute.xlu1 %v1413_v0 }
  0xb4   :  { %211 = vperm.xlu1 %1323, %v1467_v3  }
  0xb8   :  { %1324 = vset.pattern.permute.xlu1 %v1418_v15 }
  0xb9   :  { %216 = vperm.xlu1 %1324, %v1467_v3  }
  0xbd   :  { %1326 = vset.pattern.permute.xlu1 %v1414_v1 }
  0xbe   :  { %274 = vperm.xlu1 %1326, %v1479_v5  }
  0xc2   :  { %1327 = vset.pattern.permute.xlu1 %v1413_v0 }
  0xc3   :  { %281 = vperm.xlu1 %1327, %v1479_v5  }
  0xc7   :  { %1328 = vset.pattern.permute.xlu1 %v1417_v14 }
  0xfc   :  { %v88_v16 = vpop.permute.xlu0 %87 }
  0xfd   :  { %v90_v17 = vmul.f32 %v88_v16, %v85_v8 }
  0xff   :  { %93 = vperm.xlu1 %1328, %v90_v17  }
 0x100   :  { %v159_v18 = vpop.permute.xlu1 %158  ;;  %v229_v19 = vpop.permute.xlu0 %228 }
 0x101   :  { %v161_v20 = vmul.f32 %v159_v18, %v156_v12  ;;  %v231_v21 = vmul.f32 %v229_v19, %v226_v9  ;;  %v99_v9 = vrot.slane %v1569_v61, %v42_v39 }
 0x103   :  { %164 = vperm.xlu1 %1328, %v161_v20   ;;  %234 = vperm.xlu0 %1329, %v231_v21  }
 0x104   :  { %v299_v22 = vpop.permute.xlu1 %298 }
 0x105   :  { %v301_v23 = vmul.f32 %v299_v22, %v296_v13 }
 0x107   :  { %304 = vperm.xlu1 %1328, %v301_v23  }
 0x111   :  { %v1512_v27 = vpop.permute.xlu0 %141 }
 0x112   :  { %v144_v53 = vmin.f32 %v64_v43, %v1512_v27 }
 0x115   :  { %v1506_v24 = vpop.permute.xlu1 %55 }
 0x116   :  { %v1516_v29 = vpop.permute.xlu0 %204  ;;  %v58_v50 = vmax.f32 %v53_v44, %v1506_v24 }
 0x117   :  { %v207_v54 = vmax.f32 %v53_v44, %v1516_v29 }
 0x11a   :  { %v1508_v25 = vpop.permute.xlu1 %66 }
 0x11b   :  { %v1522_v33 = vpop.permute.xlu0 %46  ;;  %v69_v51 = vmin.f32 %v64_v43, %v1508_v25 }
 0x11c   :  { %v49_v49 = vmin.f32 %v43_v45, %v1522_v33 }
 0x11e   :  { %v59_v62 = vsub.f32 %v49_v49, %v58_v50 }
 0x11f   :  { %v1510_v26 = vpop.permute.xlu1 %129  ;;  %v1529_v36 = vpop.permute.xlu0 %269 }
 0x120   :  { %v132_v55 = vmin.f32 %v43_v45, %v1510_v26  ;;  %v272_v7 = vmin.f32 %v43_v45, %v1529_v36  ;;  %v60_v14 = vmax.f32 %v59_v62, 0.0 }
 0x124   :  { %v1514_v28 = vpop.permute.xlu1 %134  ;;  %v1550_v47 = vpop.permute.xlu0 %75 }
 0x125   :  { %v78_v52 = vmax.f32 %v73_v46, %v1550_v47  ;;  %v137_v56 = vmax.f32 %v53_v44, %v1514_v28 }
 0x127   :  { %v79_v63 = vsub.f32 %v69_v51, %v78_v52  ;;  %v138_v8 = vsub.f32 %v132_v55, %v137_v56 }
 0x128   :  { %v1573_v6 = vpop.permute.xlu0 %286 }
 0x129   :  { %v1518_v30 = vpop.permute.xlu1 %146  ;;  %v80_v15 = vmax.f32 %v79_v63, 0.0  ;;  %v289_v17 = vmax.f32 %v73_v46, %v1573_v6  ;;  %v139_v18 = vmax.f32 %v138_v8, 0.0 }
 0x12a   :  { %v149_v57 = vmax.f32 %v73_v46, %v1518_v30 }
 0x12b   :  { %v81_v37 = vmul.f32 %v80_v15, %v60_v14 }
 0x12c   :  { %v150_v10 = vsub.f32 %v144_v53, %v149_v57 }
 0x12d   :  { %vm102_vm0 = vcmp.gt.f32.partialorder %v81_v37, 0.0 }
 0x12e   :  { %v1520_v31 = vpop.permute.xlu1 %199  ;;  %v151_v19 = vmax.f32 %v150_v10, 0.0 }
 0x12f   :  { %v202_v58 = vmin.f32 %v43_v45, %v1520_v31 }
 0x130   :  { %v152_v50 = vmul.f32 %v151_v19, %v139_v18 }
 0x131   :  { %v208_v11 = vsub.f32 %v202_v58, %v207_v54 }
 0x132   :  { %vm169_vm1 = vcmp.gt.f32.partialorder %v152_v50, 0.0 }
 0x133   :  { %v1527_v35 = vpop.permute.xlu1 %211  ;;  %v209_v20 = vmax.f32 %v208_v11, 0.0 }
 0x134   :  { %v214_v59 = vmin.f32 %v64_v43, %v1527_v35 }
 0x138   :  { %v1540_v42 = vpop.permute.xlu1 %216 }
 0x139   :  { %v219_v60 = vmax.f32 %v73_v46, %v1540_v42 }
 0x13b   :  { %v220_v12 = vsub.f32 %v214_v59, %v219_v60 }
 0x13d   :  { %v1552_v48 = vpop.permute.xlu1 %274  ;;  %v221_v21 = vmax.f32 %v220_v12, 0.0 }
 0x13e   :  { %v277_v13 = vmax.f32 %v53_v44, %v1552_v48 }
 0x13f   :  { %v222_v53 = vmul.f32 %v221_v21, %v209_v20 }
 0x140   :  { %v278_v22 = vsub.f32 %v272_v7, %v277_v13 }
 0x141   :  { %vm239_vm2 = vcmp.gt.f32.partialorder %v222_v53, 0.0 }
 0x142   :  { %v1571_v0 = vpop.permute.xlu1 %281  ;;  %v279_v51 = vmax.f32 %v278_v22, 0.0 }
 0x143   :  { %v284_v16 = vmin.f32 %v64_v43, %v1571_v0 }
 0x145   :  { %v290_v45 = vsub.f32 %v284_v16, %v289_v17  ;;  %v1593_v17 = vand.u32 127, %v38_v32 }
 0x147   :  { %v291_v54 = vmax.f32 %v290_v45, 0.0 }
 0x149   :  { %v292_v58 = vmul.f32 %v291_v54, %v279_v51  ;;  %v1419_v54 = vmov 4  }
 0x14a   :  { %1331 = vset.pattern.permute.xlu1 %v1419_v54  ;;  %1330 = vset.pattern.permute.xlu0 %v1419_v54 }
 0x14b   :  { %vm309_vm3 = vcmp.gt.f32.partialorder %v292_v58, 0.0 }
 0x17e   :  { %v94_v23 = vpop.permute.xlu1 %93 }
 0x17f   :  { %v100_v39 = vadd.f32 %v99_v9, %v94_v23 }
 0x181   :  { %v101_v49 = vsub.f32 %v100_v39, %v81_v37 }
 0x182   :  { %v165_v52 = vpop.permute.xlu1 %164  ;;  %v235_v44 = vpop.permute.xlu0 %234 }
 0x183   :  { %1332 = vrcp.f32 %v101_v49  ;;  %v167_v43 = vadd.f32 %v165_v52, %v99_v9  ;;  %v237_v55 = vadd.f32 %v235_v44, %v99_v9 }
 0x185   :  { %v168_v46 = vsub.f32 %v167_v43, %v152_v50  ;;  %v238_v56 = vsub.f32 %v237_v55, %v222_v53 }
 0x186   :  { %v305_v57 = vpop.permute.xlu1 %304 }
 0x187   :  { %1334 = vrcp.f32 %v168_v46  ;;  %v307_v59 = vadd.f32 %v305_v57, %v99_v9 }
 0x188   :  { %1336 = vrcp.f32 %v238_v56 }
 0x189   :  { %v308_v60 = vsub.f32 %v307_v59, %v292_v58 }
 0x18b   :  { %1338 = vrcp.f32 %v308_v60 }
 0x18d   :  { %v1333_v62 = vpop.eup %1332 }
 0x18e   :  { %v104_v63 = vmul.f32 %v1333_v62, %v81_v37 }
 0x190   :  { %v1580_v7 = vsel %vm102_vm0, %v104_v63, 0.0 }
 0x191   :  { %v1335_v8 = vpop.eup %1334  ;;  %108 = vmax.xlane.f32.xlu1 %v1580_v7  ;;  %vm106_vm15 = vcmp.gt.f32.partialorder %v1580_v7, -1.0 }
 0x192   :  { %v1337_v10 = vpop.eup %1336  ;;  %v171_v11 = vmul.f32 %v1335_v8, %v152_v50 }
 0x193   :  { %v241_v13 = vmul.f32 %v1337_v10, %v222_v53 }
 0x194   :  { %v1583_v12 = vsel %vm169_vm1, %v171_v11, 0.0 }
 0x195   :  { %v1339_v14 = vpop.eup %1338  ;;  %176 = vmax.xlane.f32.xlu0 %v1583_v12  ;;  %v1586_v15 = vsel %vm239_vm2, %v241_v13, 0.0 }
 0x196   :  { %v311_v9 = vmul.f32 %v1339_v14, %v292_v58 }
 0x198   :  { %v1588_v16 = vsel %vm309_vm3, %v311_v9, 0.0 }
 0x199   :  { %246 = vmax.xlane.f32.xlu0 %v1586_v15  ;;  %316 = vmax.xlane.f32.xlu1 %v1588_v16 }
 0x21e   :  { %v109_v18 = vpop.xlane.xlu1 %108 }
 0x21f   :  { %vm110_vm4 = vcmp.eq.f32.partialorder %v1580_v7, %v109_v18  ;;  %v1613_v18 = vld [vmem:[#allocation2] sm:$0xff] }
 0x220   :  { %v111_v19 = vsel %vm110_vm4, %v1593_v17, 128 }
 0x221   :  { %v113_v20 = vshra.s32 %v111_v19, 16  ;;  %v112_v43 = vand.u32 65535, %v111_v19  ;;  %v1615_v19 = vld [vmem:[#allocation2 + $0x8] sm:$0xff] }
 0x222   :  { %v177_v21 = vpop.xlane.xlu0 %176 }
 0x223   :  { %vm178_vm5 = vcmp.eq.f32.partialorder %v1583_v12, %v177_v21  ;;  %v115_v22 = vcvt.s32.f32 %v113_v20  ;;  %v114_v56 = vcvt.s32.f32 %v112_v43  ;;  %v1622_v20 = vld [vmem:[#allocation2 + $0x18] sm:$0xff]  ;;  %v1633_v43 = vld [vmem:[#allocation2 + $0x30] sm:$0xff] }
 0x224   :  { %v179_v23 = vsel %vm178_vm5, %v1593_v17, 128 }
 0x225   :  { %116 = vmin.xlane.f32.xlu0 %v115_v22  ;;  %v181_v37 = vshra.s32 %v179_v23, 16  ;;  %v180_v55 = vand.u32 65535, %v179_v23  ;;  %v1625_v23 = vld [vmem:[#allocation2 + $0x20] sm:$0xff] }
 0x226   :  { %v247_v45 = vpop.xlane.xlu0 %246  ;;  %v317_v39 = vpop.xlane.xlu1 %316 }
 0x227   :  { %vm248_vm6 = vcmp.eq.f32.partialorder %v1586_v15, %v247_v45  ;;  %vm318_vm7 = vcmp.eq.f32.partialorder %v1588_v16, %v317_v39  ;;  %v183_v32 = vcvt.s32.f32 %v181_v37  ;;  %v182_v60 = vcvt.s32.f32 %v180_v55 }
 0x228   :  { %v249_v49 = vsel %vm248_vm6, %v1593_v17, 128  ;;  %v319_v50 = vsel %vm318_vm7, %v1593_v17, 128 }
 0x229   :  { %184 = vmin.xlane.f32.xlu1 %v183_v32  ;;  %v251_v51 = vshra.s32 %v249_v49, 16  ;;  %v321_v52 = vshra.s32 %v319_v50, 16  ;;  %v250_v58 = vand.u32 65535, %v249_v49  ;;  %v320_v11 = vand.u32 65535, %v319_v50  ;;  %v1628_v49 = vld [vmem:[#allocation2 + $0x28] sm:$0xff] }
 0x22b   :  { %v253_v44 = vcvt.s32.f32 %v251_v51  ;;  %v323_v53 = vcvt.s32.f32 %v321_v52  ;;  %v252_v8 = vcvt.s32.f32 %v250_v58  ;;  %v322_v14 = vcvt.s32.f32 %v320_v11 }
 0x22d   :  { %254 = vmin.xlane.f32.xlu0 %v253_v44  ;;  %324 = vmin.xlane.f32.xlu1 %v323_v53 }
 0x2b2   :  { %v117_v46 = vpop.xlane.xlu0 %116 }
 0x2b3   :  { %vm118_vm8 = vcmp.eq.f32.partialorder %v115_v22, %v117_v46  ;;  %v123_v22 = vcvt.f32.s32 %v117_v46 }
 0x2b4   :  { %v119_v57 = vsel %vm118_vm8, %v114_v56, inf  ;;  %v1646_v56 = vld [vmem:[#allocation2 + $0x38] sm:$0xff] }
 0x2b5   :  { %120 = vmin.xlane.f32.xlu0 %v119_v57 }
 0x2b6   :  { %v185_v59 = vpop.xlane.xlu1 %184 }
 0x2b7   :  { %vm186_vm9 = vcmp.eq.f32.partialorder %v183_v32, %v185_v59  ;;  %v124_v32 = vshll.u32 %v123_v22, 16 }
 0x2b8   :  { %v187_v62 = vsel %vm186_vm9, %v182_v60, inf }
 0x2b9   :  { %188 = vmin.xlane.f32.xlu1 %v187_v62 }
 0x2ba   :  { %v1603_v63 = vpop.xlane.xlu0 %254  ;;  %v1609_v13 = vpop.xlane.xlu1 %324 }
 0x2bb   :  { %vm256_vm10 = vcmp.eq.f32.partialorder %v253_v44, %v1603_v63  ;;  %vm326_vm11 = vcmp.eq.f32.partialorder %v323_v53, %v1609_v13 }
 0x2bc   :  { %v257_v10 = vsel %vm256_vm10, %v252_v8, inf  ;;  %v327_v9 = vsel %vm326_vm11, %v322_v14, inf }
 0x2bd   :  { %258 = vmin.xlane.f32.xlu0 %v257_v10 }
 0x2ca   :  { %355 = vperm.xlu1 %1331, %v1474_v4   ;;  %v470_v4 = vmax.f32 %v1613_v18, %v1615_v19 }
 0x2ce   :  { %365 = vperm.xlu1 %1331, %v1467_v3   ;;  %v1619_v3 = vld [vmem:[#allocation2 + $0x10] sm:$0xff] }
 0x2d3   :  { %345 = vperm.xlu0 %1330, %v1462_v2   ;;  %v473_v2 = vmax.f32 %v470_v4, %v1619_v3 }
 0x2d5   :  { %v476_v21 = vmax.f32 %v473_v2, %v1622_v20 }
 0x2d7   :  { %v479_v39 = vmax.f32 %v476_v21, %v1625_v23 }
 0x2d9   :  { %v482_v53 = vmax.f32 %v479_v39, %v1628_v49 }
 0x2db   :  { %v485_v46 = vmax.f32 %v482_v53, %v1633_v43 }
 0x2dd   :  { %v1649_v57 = vmax.f32 %v485_v46, %v1646_v56 }
 0x2df   :  { %v489_v58 = vsub.f32 %v1613_v18, %v1649_v57  ;;  %v501_v8 = vsub.f32 %v1619_v3, %v1649_v57  ;;  %v507_v11 = vsub.f32 %v1622_v20, %v1649_v57  ;;  %v519_v2 = vsub.f32 %v1628_v49, %v1649_v57 }
 0x2e1   :  { %v490_v60 = vmul.f32 1.442695, %v489_v58  ;;  %v502_v10 = vmul.f32 1.442695, %v501_v8  ;;  %v508_v14 = vmul.f32 1.442695, %v507_v11 }
 0x2e2   :  { %v107_v58 = vsel %vm106_vm15, %v1580_v7, -1.0  ;;  %v331_v7 = vcvt.f32.s32 %v1609_v13 }
 0x2e3   :  { %1340 = vpow2.f32 %v490_v60  ;;  %vm173_vm0 = vcmp.gt.f32.partialorder %v1583_v12, %v107_v58 }
 0x2e4   :  { %v174_v11 = vsel %vm173_vm0, %v1583_v12, %v107_v58 }
 0x2e5   :  { %vm243_vm1 = vcmp.gt.f32.partialorder %v1586_v15, %v174_v11 }
 0x2ed   :  { %v1341_v21 = vpop.eup %1340 }
 0x2f2   :  { %328 = vmin.xlane.f32.xlu1 %v327_v9  ;;  %v513_v9 = vsub.f32 %v1625_v23, %v1649_v57 }
 0x2f4   :  { %v514_v4 = vmul.f32 1.442695, %v513_v9 }
 0x303   :  { %375 = vperm.xlu1 %1331, %v1479_v5   ;;  %v191_v5 = vcvt.f32.s32 %v185_v59  ;;  %v495_v59 = vsub.f32 %v1615_v19, %v1649_v57 }
 0x305   :  { %v192_v51 = vshll.u32 %v191_v5, 16  ;;  %v496_v62 = vmul.f32 1.442695, %v495_v59  ;;  %v525_v5 = vsub.f32 %v1633_v43, %v1649_v57 }
 0x307   :  { %1342 = vpow2.f32 %v496_v62 }
 0x308   :  { %1344 = vpow2.f32 %v502_v10  ;;  %v261_v10 = vcvt.f32.s32 %v1603_v63  ;;  %v332_v63 = vshll.u32 %v331_v7, 16 }
 0x309   :  { %1346 = vpow2.f32 %v508_v14 }
 0x30a   :  { %1348 = vpow2.f32 %v514_v4 }
 0x311   :  { %v1343_v22 = vpop.eup %1342 }
 0x312   :  { %v1345_v39 = vpop.eup %1344 }
 0x342   :  { %v121_v37 = vpop.xlane.xlu0 %120 }
 0x343   :  { %v122_v45 = vcvt.f32.s32 %v121_v37  ;;  %v520_v37 = vmul.f32 1.442695, %v519_v2  ;;  %v262_v2 = vshll.u32 %v261_v10, 16  ;;  %v393_v10 = vsub.s32 6, %v1525_v34 }
 0x345   :  { %v125_v52 = vadd.s32 %v124_v32, %v122_v45  ;;  %v498_v45 = vadd.f32 %v1343_v22, %v1341_v21  ;;  %1350 = vpow2.f32 %v520_v37  ;;  %v526_v32 = vmul.f32 1.442695, %v525_v5 }
 0x346   :  { %v189_v50 = vpop.xlane.xlu1 %188  ;;  %v175_v37 = vsel %vm173_vm0, 1, %v1414_v1 }
 0x347   :  { %v190_v44 = vcvt.f32.s32 %v189_v50  ;;  %vm126_vm12 = vcmp.eq.s32.totalorder %v1593_v17, %v125_v52  ;;  %v531_v50 = vsub.f32 %v1646_v56, %v1649_v57  ;;  %v1347_v52 = vpop.eup %1346  ;;  %1352 = vpow2.f32 %v526_v32 }
 0x348   :  { %v1349_v46 = vpop.eup %1348  ;;  %v245_v12 = vsel %vm243_vm1, 2, %v175_v37 }
 0x349   :  { %v1631_v54 = vadd.s32 %v192_v51, %v190_v44  ;;  %v504_v51 = vadd.f32 %v1345_v39, %v498_v45  ;;  %v532_v44 = vmul.f32 1.442695, %v531_v50  ;;  %v244_v39 = vsel %vm243_vm1, %v1586_v15, %v174_v11 }
 0x34a   :  { %v356_v59 = vpop.permute.xlu1 %355  ;;  %v259_v60 = vpop.xlane.xlu0 %258  ;;  %vm313_vm3 = vcmp.gt.f32.partialorder %v1588_v16, %v244_v39 }
 0x34b   :  { %vm194_vm13 = vcmp.eq.s32.totalorder %v1593_v17, %v1631_v54  ;;  %v510_v53 = vadd.f32 %v1347_v52, %v504_v51  ;;  %1354 = vpow2.f32 %v532_v44  ;;  %v260_v14 = vcvt.f32.s32 %v259_v60 }
 0x34c   :  { %vm1641_vm14 = vmor %vm126_vm12, %vm194_vm13  ;;  %v388_v52 = vsub.s32 4, %v1525_v34  ;;  %v196_v13 = vsel %vm194_vm13, 1, %v1414_v1 }
 0x34d   :  { %v516_v62 = vadd.f32 %v1349_v46, %v510_v53  ;;  %v263_v22 = vadd.s32 %v262_v2, %v260_v14  ;;  %v315_v53 = vsel %vm313_vm3, 3, %v245_v12  ;;  %v314_v46 = vsel %vm313_vm3, %v1588_v16, %v244_v39 }
 0x34e   :  { %v366_v21 = vpop.permute.xlu1 %365  ;;  %v405_v16 = vsub.s32 7, %v1525_v34 }
 0x34f   :  { %v1351_v8 = vpop.eup %1350  ;;  %vm264_vm2 = vcmp.eq.s32.totalorder %v1593_v17, %v263_v22 }
 0x350   :  { %v522_v9 = vadd.f32 %v1351_v8, %v516_v62  ;;  %vm265_vm4 = vmor %vm1641_vm14, %vm264_vm2  ;;  %v266_v15 = vsel %vm264_vm2, 2, %v196_v13  ;;  %v400_v62 = vsub.s32 5, %v1525_v34  ;;  %v389_v8 = vrot.slane %v1538_v41, %v388_v52 }
 0x351   :  { %v1353_v4 = vpop.eup %1352 }
 0x352   :  { %v528_v5 = vadd.f32 %v1353_v4, %v522_v9  ;;  %v346_v55 = vpop.permute.xlu0 %345 }
 0x355   :  { %v1355_v45 = vpop.eup %1354 }
 0x356   :  { %v534_v44 = vadd.f32 %v1355_v45, %v528_v5 }
 0x358   :  { %1356 = vlog2.f32 %v534_v44 }
 0x37f   :  { %v329_v32 = vpop.xlane.xlu1 %328 }
 0x380   :  { %v330_v50 = vcvt.f32.s32 %v329_v32 }
 0x382   :  { %v333_v51 = vadd.s32 %v332_v63, %v330_v50 }
 0x383   :  { %v376_v32 = vpop.permute.xlu1 %375 }
 0x384   :  { %vm334_vm5 = vcmp.eq.s32.totalorder %v1593_v17, %v333_v51 }
 0x385   :  { %vm1687_vm6 = vmor %vm265_vm4, %vm334_vm5  ;;  %v336_v60 = vsel %vm334_vm5, 3, %v266_v15 }
 0x386   :  { %v337_v54 = vsel %vm1687_vm6, %v336_v60, %v315_v53  ;;  %v338_v11 = vsel %vm1687_vm6, 2.0, %v314_v46  ;;  %v426_v60 = vld [vmem:[%s1898_s1] sm:$0xff] }
 0x387   :  { %vm339_vm7 = vcmp.eq.s32.totalorder %v337_v54, 0  ;;  %vm349_vm8 = vcmp.eq.s32.totalorder %v337_v54, 1  ;;  %vm369_vm9 = vcmp.eq.s32.totalorder %v337_v54, 3  ;;  %vm359_vm10 = vcmp.eq.s32.totalorder %v337_v54, 2 }
 0x388   :  { %v340_v14 = vsel %vm339_vm7, %v1506_v24, 0.0  ;;  %v341_v9 = vsel %vm339_vm7, %v1550_v47, 0.0  ;;  %v342_v4 = vsel %vm339_vm7, %v1522_v33, 0.0  ;;  %v343_v2 = vsel %vm339_vm7, %v1508_v25, 0.0 }
 0x389   :  { %v348_v7 = vsel %vm339_vm7, %v346_v55, 0.0  ;;  %v350_v22 = vsel %vm349_vm8, %v1514_v28, %v340_v14  ;;  %v351_v37 = vsel %vm349_vm8, %v1518_v30, %v341_v9  ;;  %v352_v5 = vsel %vm349_vm8, %v1510_v26, %v342_v4 }
 0x38a   :  { %v353_v45 = vsel %vm349_vm8, %v1512_v27, %v343_v2  ;;  %v358_v39 = vsel %vm349_vm8, %v356_v59, %v348_v7  ;;  %v360_v24 = vsel %vm359_vm10, %v1516_v29, %v350_v22  ;;  %v361_v47 = vsel %vm359_vm10, %v1540_v42, %v351_v37 }
 0x38b   :  { %v362_v33 = vsel %vm359_vm10, %v1520_v31, %v352_v5  ;;  %v363_v25 = vsel %vm359_vm10, %v1527_v35, %v353_v45  ;;  %v368_v63 = vsel %vm359_vm10, %v366_v21, %v358_v39  ;;  %v370_v28 = vsel %vm369_vm9, %v1552_v48, %v360_v24  ;;  %v1357_v48 = vpop.eup %1356 }
 0x38c   :  { %v371_v30 = vsel %vm369_vm9, %v1573_v6, %v361_v47  ;;  %v372_v26 = vsel %vm369_vm9, %v1529_v36, %v362_v33  ;;  %v373_v27 = vsel %vm369_vm9, %v1571_v0, %v363_v25  ;;  %v378_v59 = vsel %vm369_vm9, %v376_v32, %v368_v63  ;;  %v1291_v47 = vld [vmem:[%s1898_s1 + $0x10] sm:$0xff] }
 0x38d   :  { %v384_v50 = vadd.f32 %v372_v26, %v370_v28  ;;  %v408_v12 = vsub.f32 %v372_v26, %v370_v28  ;;  %v401_v29 = vrot.slane %v1538_v41, %v400_v62  ;;  %v380_v42 = vadd.f32 1.0, %v378_v59  ;;  %v1289_v62 = vld [vmem:[%s1898_s1 + $0x8] sm:$0xff] }
 0x38e   :  { %v396_v51 = vadd.f32 %v373_v27, %v371_v30  ;;  %v417_v31 = vsub.f32 %v373_v27, %v371_v30  ;;  %vm379_vm11 = vcmp.lt.f32.partialorder %v338_v11, 0.5  ;;  %v394_v21 = vrot.slane %v1538_v41, %v393_v10 }
 0x38f   :  { %v385_v35 = vmul.f32 0.5, %v384_v50  ;;  %1358 = vlog2.f32 %v408_v12  ;;  %v1717_v52 = vsel %vm379_vm11, 0.0, %v380_v42  ;;  %v406_v36 = vrot.slane %v1538_v41, %v405_v16 }
 0x390   :  { %v397_v6 = vmul.f32 0.5, %v396_v51  ;;  %1360 = vlog2.f32 %v417_v31  ;;  %v1295_v0 = vtrunc.f32 %v1717_v52  ;;  %v538_v58 = vmul.f32 0.6931472, %v1357_v48 }
 0x391   :  { %v390_v44 = vsub.f32 %v385_v35, %v389_v8  ;;  %v414_v54 = vrot.slane %v1569_v61, %v52_v38  ;;  %v423_v8 = vrot.slane %v1569_v61, %v72_v40  ;;  %vm382_vm4 = vcmp.gt.f32.partialorder %v1717_v52, 0.5 }
 0x392   :  { %v402_v13 = vsub.f32 %v397_v6, %v401_v29  ;;  %v1296_v15 = vcvt.f32.s32 %v1295_v0  ;;  %v539_v9 = vadd.f32 %v538_v58, %v1649_v57  ;;  %v544_v27 = vsel %vm382_vm4, 1, %v1414_v1 }
 0x393   :  { %v395_v53 = vmul.f32 %v394_v21, %v390_v44  ;;  %v546_v31 = vshrl.u32 %v544_v27, 16  ;;  %v545_v44 = vand.u32 65535, %v544_v27 }
 0x394   :  { %v407_v46 = vmul.f32 %v406_v36, %v402_v13  ;;  %vm493_vm12 = vcmp.eq.s32.totalorder %v1296_v15, 0  ;;  %vm499_vm13 = vcmp.eq.s32.totalorder %v1296_v15, 1  ;;  %vm505_vm14 = vcmp.eq.s32.totalorder %v1296_v15, 2 }
 0x395   :  { %v494_v41 = vsel %vm493_vm12, %v1613_v18, 0.0  ;;  %vm511_vm15 = vcmp.eq.s32.totalorder %v1296_v15, 3  ;;  %v427_v11 = vsub.f32 %v426_v60, %v395_v53  ;;  %vm517_vm0 = vcmp.eq.s32.totalorder %v1296_v15, 4 }
 0x396   :  { %v500_v55 = vsel %vm499_vm13, %v1615_v19, %v494_v41  ;;  %v436_v16 = vsub.f32 %v1289_v62, %v407_v46  ;;  %vm523_vm1 = vcmp.eq.s32.totalorder %v1296_v15, 5  ;;  %vm529_vm2 = vcmp.eq.s32.totalorder %v1296_v15, 6 }
 0x397   :  { %v506_v10 = vsel %vm505_vm14, %v1619_v3, %v500_v55  ;;  %v428_v40 = vand.u32 2147483647, %v427_v11  ;;  %vm535_vm3 = vcmp.eq.s32.totalorder %v1296_v15, 7  ;;  %v548_v0 = vcvt.s32.f32 %v546_v31 }
 0x398   :  { %v512_v18 = vsel %vm511_vm15, %v1622_v20, %v506_v10  ;;  %v437_v61 = vand.u32 2147483647, %v436_v16  ;;  %v547_v60 = vcvt.s32.f32 %v545_v44 }
 0x399   :  { %v1359_v14 = vpop.eup %1358  ;;  %v518_v4 = vsel %vm517_vm0, %v1625_v23, %v512_v18  ;;  %v430_v37 = vmul.f32 0.5, %v428_v40  ;;  %v1288_v5 = vadd.f32 -0.5, %v428_v40  ;;  %vm429_vm5 = vcmp.lt.f32.partialorder %v428_v40, 1.0 }
 0x39a   :  { %v1361_v38 = vpop.eup %1360  ;;  %v410_v2 = vmul.f32 0.6931472, %v1359_v14  ;;  %v524_v19 = vsel %vm523_vm1, %v1628_v49, %v518_v4  ;;  %v439_v23 = vmul.f32 0.5, %v437_v61  ;;  %v1293_v49 = vld [vmem:[%s1898_s1 + $0x18] sm:$0xff]  ;;  %v1290_v33 = vadd.f32 -0.5, %v437_v61 }
 0x39b   :  { %v419_v3 = vmul.f32 0.6931472, %v1361_v38  ;;  %v530_v7 = vsel %vm529_vm2, %v1633_v43, %v524_v19  ;;  %v431_v24 = vmul.f32 %v430_v37, %v428_v40  ;;  %vm438_vm6 = vcmp.lt.f32.partialorder %v437_v61, 1.0 }
 0x39c   :  { %v415_v22 = vsub.f32 %v410_v2, %v414_v54  ;;  %v536_v57 = vsel %vm535_vm3, %v1646_v56, %v530_v7  ;;  %v440_v63 = vmul.f32 %v439_v23, %v437_v61 }
 0x39d   :  { %v424_v20 = vsub.f32 %v419_v3, %v423_v8  ;;  %v540_v45 = vsub.f32 %v539_v9, %v536_v57  ;;  %v433_v32 = vsel %vm429_vm5, %v431_v24, %v1288_v5 }
 0x39e   :  { %v416_v39 = vmul.f32 5.0, %v415_v22  ;;  %v442_v59 = vsel %vm438_vm6, %v440_v63, %v1290_v33 }
 0x39f   :  { %v425_v43 = vmul.f32 5.0, %v424_v20  ;;  %v1751_v56 = vsel %vm382_vm4, 0.0, %v540_v45  ;;  %v1755_v25 = vsel %vm382_vm4, %v540_v45, 0.0  ;;  %v443_v12 = vadd.f32 %v442_v59, %v433_v32 }
 0x3a0   :  { %v1758_v28 = vand.u32 2147483647, %v1751_v56  ;;  %v446_v30 = vsub.f32 %v1291_v47, %v416_v39 }
 0x3a1   :  { %v456_v26 = vsub.f32 %v1293_v49, %v425_v43 }
 0x3a2   :  { %v561_v50 = vshra.s32 %v1758_v28, 16  ;;  %v447_v29 = vand.u32 2147483647, %v446_v30  ;;  %v560_v41 = vand.u32 65535, %v1758_v28 }
 0x3a3   :  { %v457_v42 = vand.u32 2147483647, %v456_v26 }
 0x3a4   :  { %v563_v51 = vcvt.s32.f32 %v561_v50  ;;  %v449_v35 = vmul.f32 0.5, %v447_v29  ;;  %v1292_v6 = vadd.f32 -0.5, %v447_v29  ;;  %vm448_vm7 = vcmp.lt.f32.partialorder %v447_v29, 1.0 }
 0x3a5   :  { %v459_v21 = vmul.f32 0.5, %v457_v42  ;;  %v1294_v15 = vadd.f32 -0.5, %v457_v42  ;;  %vm458_vm8 = vcmp.lt.f32.partialorder %v457_v42, 1.0  ;;  %v562_v8 = vcvt.s32.f32 %v560_v41 }
 0x3a6   :  { %564 = vmax.xlane.f32.xlu1 %v563_v51  ;;  %v450_v48 = vmul.f32 %v449_v35, %v447_v29 }
 0x3a7   :  { %v460_v36 = vmul.f32 %v459_v21, %v457_v42 }
 0x3a8   :  { %v452_v13 = vsel %vm448_vm7, %v450_v48, %v1292_v6 }
 0x3a9   :  { %v453_v53 = vadd.f32 %v452_v13, %v443_v12  ;;  %v462_v46 = vsel %vm458_vm8, %v460_v36, %v1294_v15 }
 0x3aa   :  { %551 = vadd.xlane.f32.xlu1 %v548_v0 }
 0x3ab   :  { %v463_v58 = vadd.f32 %v462_v46, %v453_v53 }
 0x3ad   :  { %v1766_v62 = vsel %vm382_vm4, %v463_v58, 0.0 }
 0x3ae   :  { %549 = vadd.xlane.f32.xlu1 %v547_v60 }
 0x433   :  { %v565_v54 = vpop.xlane.xlu1 %564 }
 0x434   :  { %vm566_vm9 = vcmp.eq.f32.partialorder %v563_v51, %v565_v54  ;;  %v571_v10 = vcvt.f32.s32 %v565_v54 }
 0x435   :  { %v567_v55 = vsel %vm566_vm9, %v562_v8, -inf }
 0x436   :  { %568 = vmax.xlane.f32.xlu0 %v567_v55  ;;  %v572_v16 = vshll.u32 %v571_v10, 16 }
 0x437   :  { %v552_v19 = vpop.xlane.xlu1 %551 }
 0x438   :  { %v554_v7 = vcvt.f32.s32 %v552_v19 }
 0x43a   :  { %v555_v37 = vshll.u32 %v554_v7, 16 }
 0x43b   :  { %v550_v3 = vpop.xlane.xlu1 %549 }
 0x43c   :  { %v553_v22 = vcvt.f32.s32 %v550_v3 }
 0x43e   :  { %v1771_v57 = vadd.s32 %v555_v37, %v553_v22 }
 0x440   :  { %v557_v5 = vmul.u32 3, %v1771_v57 }
 0x442   :  { %vm558_vm11 = vcmp.lt.s32.totalorder %v557_v5, 127 }
 0x443   :  { %v1774_v49 = vsel %vm558_vm11, %v557_v5, 127 }
 0x4c3   :  { %v569_v11 = vpop.xlane.xlu0 %568 }
 0x4c4   :  { %v570_v14 = vcvt.f32.s32 %v569_v11 }
 0x4c6   :  { %v573_v9 = vadd.s32 %v572_v16, %v570_v14 }
 0x4c8   :  { %v574_v18 = vadd.s32 1, %v573_v9 }
 0x4ca   :  { %v575_v38 = vshra.s32 %v574_v18, 1 }
 0x4cc   :  { %vm576_vm10 = vcmp.ge.s32.totalorder %v1758_v28, %v575_v38 }
 0x4cd   :  { %v577_v52 = vsel %vm576_vm10, 1, %v1414_v1 }
 0x4ce   :  { %v579_v4 = vshrl.u32 %v577_v52, 16  ;;  %v578_v40 = vand.u32 65535, %v577_v52 }
 0x4d0   :  { %v581_v2 = vcvt.s32.f32 %v579_v4  ;;  %v580_v61 = vcvt.s32.f32 %v578_v40 }
 0x4d2   :  { %584 = vadd.xlane.f32.xlu1 %v581_v2 }
 0x4d6   :  { %582 = vadd.xlane.f32.xlu1 %v580_v61 }
 0x55f   :  { %v585_v20 = vpop.xlane.xlu1 %584 }
 0x560   :  { %v587_v45 = vcvt.f32.s32 %v585_v20 }
 0x562   :  { %v588_v24 = vshll.u32 %v587_v45, 16 }
 0x563   :  { %v583_v39 = vpop.xlane.xlu1 %582 }
 0x564   :  { %v586_v23 = vcvt.f32.s32 %v583_v39 }
 0x566   :  { %v589_v47 = vadd.s32 %v588_v24, %v586_v23 }
 0x568   :  { %vm590_vm12 = vcmp.ge.s32.totalorder %v589_v47, %v1774_v49 }
 0x569   :  { %v591_v43 = vsel %vm590_vm12, %v575_v38, 0  ;;  %v592_v33 = vsel %vm590_vm12, %v574_v18, %v575_v38 }
 0x56a   :  { %v593_v32 = vsub.s32 %v592_v33, %v591_v43 }
 0x56c   :  { %v594_v63 = vshra.s32 %v593_v32, 1 }
 0x56e   :  { %v595_v30 = vadd.s32 %v594_v63, %v591_v43 }
 0x570   :  { %vm596_vm13 = vcmp.ge.s32.totalorder %v1758_v28, %v595_v30 }
 0x571   :  { %v597_v26 = vsel %vm596_vm13, 1, %v1414_v1 }
 0x572   :  { %v599_v27 = vshrl.u32 %v597_v26, 16  ;;  %v598_v59 = vand.u32 65535, %v597_v26 }
 0x574   :  { %v601_v50 = vcvt.s32.f32 %v599_v27  ;;  %v600_v12 = vcvt.s32.f32 %v598_v59 }
 0x576   :  { %604 = vadd.xlane.f32.xlu0 %v601_v50  ;;  %602 = vadd.xlane.f32.xlu1 %v600_v12 }
 0x603   :  { %v605_v29 = vpop.xlane.xlu0 %604  ;;  %v603_v42 = vpop.xlane.xlu1 %602 }
 0x604   :  { %v607_v51 = vcvt.f32.s32 %v605_v29  ;;  %v606_v35 = vcvt.f32.s32 %v603_v42 }
 0x606   :  { %v608_v31 = vshll.u32 %v607_v51, 16 }
 0x608   :  { %v609_v21 = vadd.s32 %v608_v31, %v606_v35 }
 0x60a   :  { %vm610_vm14 = vcmp.ge.s32.totalorder %v609_v21, %v1774_v49 }
 0x60b   :  { %v611_v48 = vsel %vm610_vm14, %v595_v30, %v591_v43  ;;  %v612_v6 = vsel %vm610_vm14, %v592_v33, %v595_v30 }
 0x60c   :  { %v613_v36 = vsub.s32 %v612_v6, %v611_v48 }
 0x60e   :  { %v614_v0 = vshra.s32 %v613_v36, 1 }
 0x610   :  { %v615_v44 = vadd.s32 %v614_v0, %v611_v48 }
 0x612   :  { %vm616_vm15 = vcmp.ge.s32.totalorder %v1758_v28, %v615_v44 }
 0x613   :  { %v617_v13 = vsel %vm616_vm15, 1, %v1414_v1 }
 0x614   :  { %v619_v15 = vshrl.u32 %v617_v13, 16  ;;  %v618_v53 = vand.u32 65535, %v617_v13 }
 0x616   :  { %v621_v46 = vcvt.s32.f32 %v619_v15  ;;  %v620_v58 = vcvt.s32.f32 %v618_v53 }
 0x618   :  { %624 = vadd.xlane.f32.xlu0 %v621_v46  ;;  %622 = vadd.xlane.f32.xlu1 %v620_v58 }
 0x6a5   :  { %v625_v60 = vpop.xlane.xlu0 %624  ;;  %v623_v41 = vpop.xlane.xlu1 %622 }
 0x6a6   :  { %v627_v54 = vcvt.f32.s32 %v625_v60  ;;  %v626_v55 = vcvt.f32.s32 %v623_v41 }
 0x6a8   :  { %v628_v8 = vshll.u32 %v627_v54, 16 }
 0x6aa   :  { %v629_v10 = vadd.s32 %v628_v8, %v626_v55 }
 0x6ac   :  { %vm630_vm0 = vcmp.ge.s32.totalorder %v629_v10, %v1774_v49 }
 0x6ad   :  { %v631_v11 = vsel %vm630_vm0, %v615_v44, %v611_v48  ;;  %v632_v16 = vsel %vm630_vm0, %v612_v6, %v615_v44 }
 0x6ae   :  { %v633_v14 = vsub.s32 %v632_v16, %v631_v11 }
 0x6b0   :  { %v634_v9 = vshra.s32 %v633_v14, 1 }
 0x6b2   :  { %v635_v18 = vadd.s32 %v634_v9, %v631_v11 }
 0x6b4   :  { %vm636_vm1 = vcmp.ge.s32.totalorder %v1758_v28, %v635_v18 }
 0x6b5   :  { %v637_v38 = vsel %vm636_vm1, 1, %v1414_v1 }
 0x6b6   :  { %v639_v52 = vshrl.u32 %v637_v38, 16  ;;  %v638_v4 = vand.u32 65535, %v637_v38 }
 0x6b8   :  { %v641_v2 = vcvt.s32.f32 %v639_v52  ;;  %v640_v40 = vcvt.s32.f32 %v638_v4 }
 0x6ba   :  { %644 = vadd.xlane.f32.xlu0 %v641_v2  ;;  %642 = vadd.xlane.f32.xlu1 %v640_v40 }
 0x747   :  { %v645_v61 = vpop.xlane.xlu0 %644  ;;  %v643_v19 = vpop.xlane.xlu1 %642 }
 0x748   :  { %v647_v3 = vcvt.f32.s32 %v645_v61  ;;  %v646_v22 = vcvt.f32.s32 %v643_v19 }
 0x74a   :  { %v648_v7 = vshll.u32 %v647_v3, 16 }
 0x74c   :  { %v649_v37 = vadd.s32 %v648_v7, %v646_v22 }
 0x74e   :  { %vm650_vm2 = vcmp.ge.s32.totalorder %v649_v37, %v1774_v49 }
 0x74f   :  { %v651_v20 = vsel %vm650_vm2, %v635_v18, %v631_v11  ;;  %v652_v5 = vsel %vm650_vm2, %v632_v16, %v635_v18 }
 0x750   :  { %v653_v45 = vsub.s32 %v652_v5, %v651_v20 }
 0x752   :  { %v654_v39 = vshra.s32 %v653_v45, 1 }
 0x754   :  { %v655_v24 = vadd.s32 %v654_v39, %v651_v20 }
 0x756   :  { %vm656_vm3 = vcmp.ge.s32.totalorder %v1758_v28, %v655_v24 }
 0x757   :  { %v657_v23 = vsel %vm656_vm3, 1, %v1414_v1 }
 0x758   :  { %v659_v47 = vshrl.u32 %v657_v23, 16  ;;  %v658_v43 = vand.u32 65535, %v657_v23 }
 0x75a   :  { %v661_v33 = vcvt.s32.f32 %v659_v47  ;;  %v660_v32 = vcvt.s32.f32 %v658_v43 }
 0x75c   :  { %664 = vadd.xlane.f32.xlu0 %v661_v33  ;;  %662 = vadd.xlane.f32.xlu1 %v660_v32 }
 0x7e9   :  { %v665_v63 = vpop.xlane.xlu0 %664  ;;  %v663_v30 = vpop.xlane.xlu1 %662 }
 0x7ea   :  { %v667_v26 = vcvt.f32.s32 %v665_v63  ;;  %v666_v59 = vcvt.f32.s32 %v663_v30 }
 0x7ec   :  { %v668_v27 = vshll.u32 %v667_v26, 16 }
 0x7ee   :  { %v669_v50 = vadd.s32 %v668_v27, %v666_v59 }
 0x7f0   :  { %vm670_vm4 = vcmp.ge.s32.totalorder %v669_v50, %v1774_v49 }
 0x7f1   :  { %v671_v12 = vsel %vm670_vm4, %v655_v24, %v651_v20  ;;  %v672_v29 = vsel %vm670_vm4, %v652_v5, %v655_v24 }
 0x7f2   :  { %v673_v42 = vsub.s32 %v672_v29, %v671_v12 }
 0x7f4   :  { %v674_v51 = vshra.s32 %v673_v42, 1 }
 0x7f6   :  { %v675_v31 = vadd.s32 %v674_v51, %v671_v12 }
 0x7f8   :  { %vm676_vm5 = vcmp.ge.s32.totalorder %v1758_v28, %v675_v31 }
 0x7f9   :  { %v677_v35 = vsel %vm676_vm5, 1, %v1414_v1 }
 0x7fa   :  { %v679_v21 = vshrl.u32 %v677_v35, 16  ;;  %v678_v48 = vand.u32 65535, %v677_v35 }
 0x7fc   :  { %v681_v6 = vcvt.s32.f32 %v679_v21  ;;  %v680_v36 = vcvt.s32.f32 %v678_v48 }
 0x7fe   :  { %684 = vadd.xlane.f32.xlu0 %v681_v6  ;;  %682 = vadd.xlane.f32.xlu1 %v680_v36 }
 0x88b   :  { %v685_v0 = vpop.xlane.xlu0 %684  ;;  %v683_v44 = vpop.xlane.xlu1 %682 }
 0x88c   :  { %v687_v13 = vcvt.f32.s32 %v685_v0  ;;  %v686_v53 = vcvt.f32.s32 %v683_v44 }
 0x88e   :  { %v688_v15 = vshll.u32 %v687_v13, 16 }
 0x890   :  { %v689_v46 = vadd.s32 %v688_v15, %v686_v53 }
 0x892   :  { %vm690_vm6 = vcmp.ge.s32.totalorder %v689_v46, %v1774_v49 }
 0x893   :  { %v691_v58 = vsel %vm690_vm6, %v675_v31, %v671_v12  ;;  %v692_v60 = vsel %vm690_vm6, %v672_v29, %v675_v31 }
 0x894   :  { %v693_v41 = vsub.s32 %v692_v60, %v691_v58 }
 0x896   :  { %v694_v54 = vshra.s32 %v693_v41, 1 }
 0x898   :  { %v695_v8 = vadd.s32 %v694_v54, %v691_v58 }
 0x89a   :  { %vm696_vm7 = vcmp.ge.s32.totalorder %v1758_v28, %v695_v8 }
 0x89b   :  { %v697_v55 = vsel %vm696_vm7, 1, %v1414_v1 }
 0x89c   :  { %v699_v10 = vshrl.u32 %v697_v55, 16  ;;  %v698_v11 = vand.u32 65535, %v697_v55 }
 0x89e   :  { %v701_v16 = vcvt.s32.f32 %v699_v10  ;;  %v700_v14 = vcvt.s32.f32 %v698_v11 }
 0x8a0   :  { %704 = vadd.xlane.f32.xlu0 %v701_v16  ;;  %702 = vadd.xlane.f32.xlu1 %v700_v14 }
 0x92d   :  { %v705_v9 = vpop.xlane.xlu0 %704  ;;  %v703_v18 = vpop.xlane.xlu1 %702 }
 0x92e   :  { %v707_v38 = vcvt.f32.s32 %v705_v9  ;;  %v706_v4 = vcvt.f32.s32 %v703_v18 }
 0x930   :  { %v708_v52 = vshll.u32 %v707_v38, 16 }
 0x932   :  { %v709_v2 = vadd.s32 %v708_v52, %v706_v4 }
 0x934   :  { %vm710_vm8 = vcmp.ge.s32.totalorder %v709_v2, %v1774_v49 }
 0x935   :  { %v711_v40 = vsel %vm710_vm8, %v695_v8, %v691_v58  ;;  %v712_v61 = vsel %vm710_vm8, %v692_v60, %v695_v8 }
 0x936   :  { %v713_v19 = vsub.s32 %v712_v61, %v711_v40 }
 0x938   :  { %v714_v3 = vshra.s32 %v713_v19, 1 }
 0x93a   :  { %v715_v7 = vadd.s32 %v714_v3, %v711_v40 }
 0x93c   :  { %vm716_vm9 = vcmp.ge.s32.totalorder %v1758_v28, %v715_v7 }
 0x93d   :  { %v717_v22 = vsel %vm716_vm9, 1, %v1414_v1 }
 0x93e   :  { %v719_v37 = vshrl.u32 %v717_v22, 16  ;;  %v718_v20 = vand.u32 65535, %v717_v22 }
 0x940   :  { %v721_v5 = vcvt.s32.f32 %v719_v37  ;;  %v720_v45 = vcvt.s32.f32 %v718_v20 }
 0x942   :  { %724 = vadd.xlane.f32.xlu0 %v721_v5  ;;  %722 = vadd.xlane.f32.xlu1 %v720_v45 }
 0x9cf   :  { %v725_v39 = vpop.xlane.xlu0 %724  ;;  %v723_v24 = vpop.xlane.xlu1 %722 }
 0x9d0   :  { %v727_v23 = vcvt.f32.s32 %v725_v39  ;;  %v726_v43 = vcvt.f32.s32 %v723_v24 }
 0x9d2   :  { %v728_v47 = vshll.u32 %v727_v23, 16 }
 0x9d4   :  { %v729_v33 = vadd.s32 %v728_v47, %v726_v43 }
 0x9d6   :  { %vm730_vm10 = vcmp.ge.s32.totalorder %v729_v33, %v1774_v49 }
 0x9d7   :  { %v731_v32 = vsel %vm730_vm10, %v715_v7, %v711_v40  ;;  %v732_v63 = vsel %vm730_vm10, %v712_v61, %v715_v7 }
 0x9d8   :  { %v733_v30 = vsub.s32 %v732_v63, %v731_v32 }
 0x9da   :  { %v734_v26 = vshra.s32 %v733_v30, 1 }
 0x9dc   :  { %v735_v27 = vadd.s32 %v734_v26, %v731_v32 }
 0x9de   :  { %vm736_vm11 = vcmp.ge.s32.totalorder %v1758_v28, %v735_v27 }
 0x9df   :  { %v737_v59 = vsel %vm736_vm11, 1, %v1414_v1 }
 0x9e0   :  { %v739_v50 = vshrl.u32 %v737_v59, 16  ;;  %v738_v12 = vand.u32 65535, %v737_v59 }
 0x9e2   :  { %v741_v29 = vcvt.s32.f32 %v739_v50  ;;  %v740_v42 = vcvt.s32.f32 %v738_v12 }
 0x9e4   :  { %744 = vadd.xlane.f32.xlu0 %v741_v29  ;;  %742 = vadd.xlane.f32.xlu1 %v740_v42 }
 0xa71   :  { %v745_v51 = vpop.xlane.xlu0 %744  ;;  %v743_v31 = vpop.xlane.xlu1 %742 }
 0xa72   :  { %v747_v35 = vcvt.f32.s32 %v745_v51  ;;  %v746_v48 = vcvt.f32.s32 %v743_v31 }
 0xa74   :  { %v748_v21 = vshll.u32 %v747_v35, 16 }
 0xa76   :  { %v749_v6 = vadd.s32 %v748_v21, %v746_v48 }
 0xa78   :  { %vm750_vm12 = vcmp.ge.s32.totalorder %v749_v6, %v1774_v49 }
 0xa79   :  { %v751_v36 = vsel %vm750_vm12, %v735_v27, %v731_v32  ;;  %v752_v0 = vsel %vm750_vm12, %v732_v63, %v735_v27 }
 0xa7a   :  { %v753_v44 = vsub.s32 %v752_v0, %v751_v36 }
 0xa7c   :  { %v754_v13 = vshra.s32 %v753_v44, 1 }
 0xa7e   :  { %v755_v15 = vadd.s32 %v754_v13, %v751_v36 }
 0xa80   :  { %vm756_vm13 = vcmp.ge.s32.totalorder %v1758_v28, %v755_v15 }
 0xa81   :  { %v757_v53 = vsel %vm756_vm13, 1, %v1414_v1 }
 0xa82   :  { %v759_v46 = vshrl.u32 %v757_v53, 16  ;;  %v758_v58 = vand.u32 65535, %v757_v53 }
 0xa84   :  { %v761_v60 = vcvt.s32.f32 %v759_v46  ;;  %v760_v41 = vcvt.s32.f32 %v758_v58 }
 0xa86   :  { %764 = vadd.xlane.f32.xlu0 %v761_v60  ;;  %762 = vadd.xlane.f32.xlu1 %v760_v41 }
 0xb13   :  { %v765_v54 = vpop.xlane.xlu0 %764  ;;  %v763_v8 = vpop.xlane.xlu1 %762 }
 0xb14   :  { %v767_v55 = vcvt.f32.s32 %v765_v54  ;;  %v766_v11 = vcvt.f32.s32 %v763_v8 }
 0xb16   :  { %v768_v10 = vshll.u32 %v767_v55, 16 }
 0xb18   :  { %v769_v16 = vadd.s32 %v768_v10, %v766_v11 }
 0xb1a   :  { %vm770_vm14 = vcmp.ge.s32.totalorder %v769_v16, %v1774_v49 }
 0xb1b   :  { %v771_v14 = vsel %vm770_vm14, %v755_v15, %v751_v36  ;;  %v772_v9 = vsel %vm770_vm14, %v752_v0, %v755_v15 }
 0xb1c   :  { %v773_v18 = vsub.s32 %v772_v9, %v771_v14 }
 0xb1e   :  { %v774_v38 = vshra.s32 %v773_v18, 1 }
 0xb20   :  { %v775_v52 = vadd.s32 %v774_v38, %v771_v14 }
 0xb22   :  { %vm776_vm15 = vcmp.ge.s32.totalorder %v1758_v28, %v775_v52 }
 0xb23   :  { %v777_v4 = vsel %vm776_vm15, 1, %v1414_v1 }
 0xb24   :  { %v779_v2 = vshrl.u32 %v777_v4, 16  ;;  %v778_v40 = vand.u32 65535, %v777_v4 }
 0xb26   :  { %v781_v61 = vcvt.s32.f32 %v779_v2  ;;  %v780_v19 = vcvt.s32.f32 %v778_v40 }
 0xb28   :  { %784 = vadd.xlane.f32.xlu0 %v781_v61  ;;  %782 = vadd.xlane.f32.xlu1 %v780_v19 }
 0xbb5   :  { %v785_v3 = vpop.xlane.xlu0 %784  ;;  %v783_v7 = vpop.xlane.xlu1 %782 }
 0xbb6   :  { %v787_v22 = vcvt.f32.s32 %v785_v3  ;;  %v786_v20 = vcvt.f32.s32 %v783_v7 }
 0xbb8   :  { %v788_v37 = vshll.u32 %v787_v22, 16 }
 0xbba   :  { %v789_v5 = vadd.s32 %v788_v37, %v786_v20 }
 0xbbc   :  { %vm790_vm0 = vcmp.ge.s32.totalorder %v789_v5, %v1774_v49 }
 0xbbd   :  { %v791_v45 = vsel %vm790_vm0, %v775_v52, %v771_v14  ;;  %v792_v39 = vsel %vm790_vm0, %v772_v9, %v775_v52 }
 0xbbe   :  { %v793_v24 = vsub.s32 %v792_v39, %v791_v45 }
 0xbc0   :  { %v794_v23 = vshra.s32 %v793_v24, 1 }
 0xbc2   :  { %v795_v47 = vadd.s32 %v794_v23, %v791_v45 }
 0xbc4   :  { %vm796_vm1 = vcmp.ge.s32.totalorder %v1758_v28, %v795_v47 }
 0xbc5   :  { %v797_v43 = vsel %vm796_vm1, 1, %v1414_v1 }
 0xbc6   :  { %v799_v33 = vshrl.u32 %v797_v43, 16  ;;  %v798_v32 = vand.u32 65535, %v797_v43 }
 0xbc8   :  { %v801_v63 = vcvt.s32.f32 %v799_v33  ;;  %v800_v30 = vcvt.s32.f32 %v798_v32 }
 0xbca   :  { %804 = vadd.xlane.f32.xlu0 %v801_v63  ;;  %802 = vadd.xlane.f32.xlu1 %v800_v30 }
 0xc57   :  { %v805_v26 = vpop.xlane.xlu0 %804  ;;  %v803_v27 = vpop.xlane.xlu1 %802 }
 0xc58   :  { %v807_v59 = vcvt.f32.s32 %v805_v26  ;;  %v806_v12 = vcvt.f32.s32 %v803_v27 }
 0xc5a   :  { %v808_v50 = vshll.u32 %v807_v59, 16 }
 0xc5c   :  { %v809_v29 = vadd.s32 %v808_v50, %v806_v12 }
 0xc5e   :  { %vm810_vm2 = vcmp.ge.s32.totalorder %v809_v29, %v1774_v49 }
 0xc5f   :  { %v811_v42 = vsel %vm810_vm2, %v795_v47, %v791_v45  ;;  %v812_v51 = vsel %vm810_vm2, %v792_v39, %v795_v47 }
 0xc60   :  { %v813_v31 = vsub.s32 %v812_v51, %v811_v42 }
 0xc62   :  { %v814_v35 = vshra.s32 %v813_v31, 1 }
 0xc64   :  { %v815_v21 = vadd.s32 %v814_v35, %v811_v42 }
 0xc66   :  { %vm816_vm3 = vcmp.ge.s32.totalorder %v1758_v28, %v815_v21 }
 0xc67   :  { %v817_v48 = vsel %vm816_vm3, 1, %v1414_v1 }
 0xc68   :  { %v819_v6 = vshrl.u32 %v817_v48, 16  ;;  %v818_v36 = vand.u32 65535, %v817_v48 }
 0xc6a   :  { %v821_v0 = vcvt.s32.f32 %v819_v6  ;;  %v820_v44 = vcvt.s32.f32 %v818_v36 }
 0xc6c   :  { %824 = vadd.xlane.f32.xlu0 %v821_v0  ;;  %822 = vadd.xlane.f32.xlu1 %v820_v44 }
 0xcf9   :  { %v825_v13 = vpop.xlane.xlu0 %824  ;;  %v823_v15 = vpop.xlane.xlu1 %822 }
 0xcfa   :  { %v827_v53 = vcvt.f32.s32 %v825_v13  ;;  %v826_v58 = vcvt.f32.s32 %v823_v15 }
 0xcfc   :  { %v828_v46 = vshll.u32 %v827_v53, 16 }
 0xcfe   :  { %v829_v60 = vadd.s32 %v828_v46, %v826_v58 }
 0xd00   :  { %vm830_vm4 = vcmp.ge.s32.totalorder %v829_v60, %v1774_v49 }
 0xd01   :  { %v831_v41 = vsel %vm830_vm4, %v815_v21, %v811_v42  ;;  %v832_v54 = vsel %vm830_vm4, %v812_v51, %v815_v21 }
 0xd02   :  { %v833_v8 = vsub.s32 %v832_v54, %v831_v41 }
 0xd04   :  { %v834_v55 = vshra.s32 %v833_v8, 1 }
 0xd06   :  { %v835_v10 = vadd.s32 %v834_v55, %v831_v41 }
 0xd08   :  { %vm836_vm5 = vcmp.ge.s32.totalorder %v1758_v28, %v835_v10 }
 0xd09   :  { %v837_v11 = vsel %vm836_vm5, 1, %v1414_v1 }
 0xd0a   :  { %v839_v16 = vshrl.u32 %v837_v11, 16  ;;  %v838_v14 = vand.u32 65535, %v837_v11 }
 0xd0c   :  { %v841_v9 = vcvt.s32.f32 %v839_v16  ;;  %v840_v18 = vcvt.s32.f32 %v838_v14 }
 0xd0e   :  { %844 = vadd.xlane.f32.xlu0 %v841_v9  ;;  %842 = vadd.xlane.f32.xlu1 %v840_v18 }
 0xd9b   :  { %v845_v38 = vpop.xlane.xlu0 %844  ;;  %v843_v52 = vpop.xlane.xlu1 %842 }
 0xd9c   :  { %v847_v4 = vcvt.f32.s32 %v845_v38  ;;  %v846_v40 = vcvt.f32.s32 %v843_v52 }
 0xd9e   :  { %v848_v2 = vshll.u32 %v847_v4, 16 }
 0xda0   :  { %v849_v61 = vadd.s32 %v848_v2, %v846_v40 }
 0xda2   :  { %vm850_vm6 = vcmp.ge.s32.totalorder %v849_v61, %v1774_v49 }
 0xda3   :  { %v851_v19 = vsel %vm850_vm6, %v835_v10, %v831_v41  ;;  %v852_v3 = vsel %vm850_vm6, %v832_v54, %v835_v10 }
 0xda4   :  { %v853_v7 = vsub.s32 %v852_v3, %v851_v19 }
 0xda6   :  { %v854_v22 = vshra.s32 %v853_v7, 1 }
 0xda8   :  { %v855_v37 = vadd.s32 %v854_v22, %v851_v19 }
 0xdaa   :  { %vm856_vm7 = vcmp.ge.s32.totalorder %v1758_v28, %v855_v37 }
 0xdab   :  { %v857_v20 = vsel %vm856_vm7, 1, %v1414_v1 }
 0xdac   :  { %v859_v5 = vshrl.u32 %v857_v20, 16  ;;  %v858_v45 = vand.u32 65535, %v857_v20 }
 0xdae   :  { %v861_v39 = vcvt.s32.f32 %v859_v5  ;;  %v860_v24 = vcvt.s32.f32 %v858_v45 }
 0xdb0   :  { %864 = vadd.xlane.f32.xlu0 %v861_v39  ;;  %862 = vadd.xlane.f32.xlu1 %v860_v24 }
 0xe3d   :  { %v865_v23 = vpop.xlane.xlu0 %864  ;;  %v863_v47 = vpop.xlane.xlu1 %862 }
 0xe3e   :  { %v867_v43 = vcvt.f32.s32 %v865_v23  ;;  %v866_v32 = vcvt.f32.s32 %v863_v47 }
 0xe40   :  { %v868_v33 = vshll.u32 %v867_v43, 16 }
 0xe42   :  { %v869_v63 = vadd.s32 %v868_v33, %v866_v32 }
 0xe44   :  { %vm870_vm8 = vcmp.ge.s32.totalorder %v869_v63, %v1774_v49 }
 0xe45   :  { %v871_v30 = vsel %vm870_vm8, %v855_v37, %v851_v19  ;;  %v872_v26 = vsel %vm870_vm8, %v852_v3, %v855_v37 }
 0xe46   :  { %v873_v27 = vsub.s32 %v872_v26, %v871_v30 }
 0xe48   :  { %v874_v59 = vshra.s32 %v873_v27, 1 }
 0xe4a   :  { %v875_v50 = vadd.s32 %v874_v59, %v871_v30 }
 0xe4c   :  { %vm876_vm9 = vcmp.ge.s32.totalorder %v1758_v28, %v875_v50 }
 0xe4d   :  { %v877_v12 = vsel %vm876_vm9, 1, %v1414_v1 }
 0xe4e   :  { %v879_v29 = vshrl.u32 %v877_v12, 16  ;;  %v878_v42 = vand.u32 65535, %v877_v12 }
 0xe50   :  { %v881_v51 = vcvt.s32.f32 %v879_v29  ;;  %v880_v31 = vcvt.s32.f32 %v878_v42 }
 0xe52   :  { %884 = vadd.xlane.f32.xlu0 %v881_v51  ;;  %882 = vadd.xlane.f32.xlu1 %v880_v31 }
 0xedf   :  { %v885_v35 = vpop.xlane.xlu0 %884  ;;  %v883_v21 = vpop.xlane.xlu1 %882 }
 0xee0   :  { %v887_v48 = vcvt.f32.s32 %v885_v35  ;;  %v886_v36 = vcvt.f32.s32 %v883_v21 }
 0xee2   :  { %v888_v6 = vshll.u32 %v887_v48, 16 }
 0xee4   :  { %v889_v0 = vadd.s32 %v888_v6, %v886_v36 }
 0xee6   :  { %vm890_vm10 = vcmp.ge.s32.totalorder %v889_v0, %v1774_v49 }
 0xee7   :  { %v891_v44 = vsel %vm890_vm10, %v875_v50, %v871_v30  ;;  %v892_v13 = vsel %vm890_vm10, %v872_v26, %v875_v50 }
 0xee8   :  { %v893_v15 = vsub.s32 %v892_v13, %v891_v44 }
 0xeea   :  { %v894_v53 = vshra.s32 %v893_v15, 1 }
 0xeec   :  { %v895_v46 = vadd.s32 %v894_v53, %v891_v44 }
 0xeee   :  { %vm896_vm11 = vcmp.ge.s32.totalorder %v1758_v28, %v895_v46 }
 0xeef   :  { %v897_v58 = vsel %vm896_vm11, 1, %v1414_v1 }
 0xef0   :  { %v899_v60 = vshrl.u32 %v897_v58, 16  ;;  %v898_v41 = vand.u32 65535, %v897_v58 }
 0xef2   :  { %v901_v54 = vcvt.s32.f32 %v899_v60  ;;  %v900_v8 = vcvt.s32.f32 %v898_v41 }
 0xef4   :  { %904 = vadd.xlane.f32.xlu0 %v901_v54  ;;  %902 = vadd.xlane.f32.xlu1 %v900_v8 }
 0xf81   :  { %v905_v55 = vpop.xlane.xlu0 %904  ;;  %v903_v10 = vpop.xlane.xlu1 %902 }
 0xf82   :  { %v907_v11 = vcvt.f32.s32 %v905_v55  ;;  %v906_v14 = vcvt.f32.s32 %v903_v10 }
 0xf84   :  { %v908_v16 = vshll.u32 %v907_v11, 16 }
 0xf86   :  { %v909_v9 = vadd.s32 %v908_v16, %v906_v14 }
 0xf88   :  { %vm910_vm12 = vcmp.ge.s32.totalorder %v909_v9, %v1774_v49 }
 0xf89   :  { %v911_v18 = vsel %vm910_vm12, %v895_v46, %v891_v44  ;;  %v912_v38 = vsel %vm910_vm12, %v892_v13, %v895_v46 }
 0xf8a   :  { %v913_v52 = vsub.s32 %v912_v38, %v911_v18 }
 0xf8c   :  { %v914_v4 = vshra.s32 %v913_v52, 1 }
 0xf8e   :  { %v915_v2 = vadd.s32 %v914_v4, %v911_v18 }
 0xf90   :  { %vm916_vm13 = vcmp.ge.s32.totalorder %v1758_v28, %v915_v2 }
 0xf91   :  { %v917_v40 = vsel %vm916_vm13, 1, %v1414_v1 }
 0xf92   :  { %v919_v61 = vshrl.u32 %v917_v40, 16  ;;  %v918_v19 = vand.u32 65535, %v917_v40 }
 0xf94   :  { %v921_v3 = vcvt.s32.f32 %v919_v61  ;;  %v920_v7 = vcvt.s32.f32 %v918_v19 }
 0xf96   :  { %924 = vadd.xlane.f32.xlu0 %v921_v3  ;;  %922 = vadd.xlane.f32.xlu1 %v920_v7 }
0x1023   :  { %v925_v22 = vpop.xlane.xlu0 %924  ;;  %v923_v37 = vpop.xlane.xlu1 %922 }
0x1024   :  { %v927_v20 = vcvt.f32.s32 %v925_v22  ;;  %v926_v45 = vcvt.f32.s32 %v923_v37 }
0x1026   :  { %v928_v5 = vshll.u32 %v927_v20, 16 }
0x1028   :  { %v929_v39 = vadd.s32 %v928_v5, %v926_v45 }
0x102a   :  { %vm930_vm14 = vcmp.ge.s32.totalorder %v929_v39, %v1774_v49 }
0x102b   :  { %v931_v24 = vsel %vm930_vm14, %v915_v2, %v911_v18  ;;  %v932_v23 = vsel %vm930_vm14, %v912_v38, %v915_v2 }
0x102c   :  { %v933_v47 = vsub.s32 %v932_v23, %v931_v24 }
0x102e   :  { %v934_v43 = vshra.s32 %v933_v47, 1 }
0x1030   :  { %v935_v33 = vadd.s32 %v934_v43, %v931_v24 }
0x1032   :  { %vm936_vm15 = vcmp.ge.s32.totalorder %v1758_v28, %v935_v33 }
0x1033   :  { %v937_v32 = vsel %vm936_vm15, 1, %v1414_v1 }
0x1034   :  { %v939_v63 = vshrl.u32 %v937_v32, 16  ;;  %v938_v30 = vand.u32 65535, %v937_v32 }
0x1036   :  { %v941_v26 = vcvt.s32.f32 %v939_v63  ;;  %v940_v27 = vcvt.s32.f32 %v938_v30 }
0x1038   :  { %944 = vadd.xlane.f32.xlu0 %v941_v26  ;;  %942 = vadd.xlane.f32.xlu1 %v940_v27 }
0x10c5   :  { %v945_v59 = vpop.xlane.xlu0 %944  ;;  %v943_v50 = vpop.xlane.xlu1 %942 }
0x10c6   :  { %v947_v12 = vcvt.f32.s32 %v945_v59  ;;  %v946_v42 = vcvt.f32.s32 %v943_v50 }
0x10c8   :  { %v948_v29 = vshll.u32 %v947_v12, 16 }
0x10ca   :  { %v949_v51 = vadd.s32 %v948_v29, %v946_v42 }
0x10cc   :  { %vm950_vm0 = vcmp.ge.s32.totalorder %v949_v51, %v1774_v49 }
0x10cd   :  { %v951_v31 = vsel %vm950_vm0, %v935_v33, %v931_v24  ;;  %v952_v35 = vsel %vm950_vm0, %v932_v23, %v935_v33 }
0x10ce   :  { %v953_v21 = vsub.s32 %v952_v35, %v951_v31 }
0x10d0   :  { %v954_v48 = vshra.s32 %v953_v21, 1 }
0x10d2   :  { %v955_v6 = vadd.s32 %v954_v48, %v951_v31 }
0x10d4   :  { %vm956_vm1 = vcmp.ge.s32.totalorder %v1758_v28, %v955_v6 }
0x10d5   :  { %v957_v36 = vsel %vm956_vm1, 1, %v1414_v1 }
0x10d6   :  { %v959_v0 = vshrl.u32 %v957_v36, 16  ;;  %v958_v44 = vand.u32 65535, %v957_v36 }
0x10d8   :  { %v961_v13 = vcvt.s32.f32 %v959_v0  ;;  %v960_v15 = vcvt.s32.f32 %v958_v44 }
0x10da   :  { %964 = vadd.xlane.f32.xlu0 %v961_v13  ;;  %962 = vadd.xlane.f32.xlu1 %v960_v15 }
0x1167   :  { %v965_v53 = vpop.xlane.xlu0 %964  ;;  %v963_v46 = vpop.xlane.xlu1 %962 }
0x1168   :  { %v967_v58 = vcvt.f32.s32 %v965_v53  ;;  %v966_v41 = vcvt.f32.s32 %v963_v46 }
0x116a   :  { %v968_v60 = vshll.u32 %v967_v58, 16 }
0x116c   :  { %v969_v54 = vadd.s32 %v968_v60, %v966_v41 }
0x116e   :  { %vm970_vm2 = vcmp.ge.s32.totalorder %v969_v54, %v1774_v49 }
0x116f   :  { %v971_v8 = vsel %vm970_vm2, %v955_v6, %v951_v31  ;;  %v972_v55 = vsel %vm970_vm2, %v952_v35, %v955_v6 }
0x1170   :  { %v973_v10 = vsub.s32 %v972_v55, %v971_v8 }
0x1172   :  { %v974_v11 = vshra.s32 %v973_v10, 1 }
0x1174   :  { %v975_v16 = vadd.s32 %v974_v11, %v971_v8 }
0x1176   :  { %vm976_vm3 = vcmp.ge.s32.totalorder %v1758_v28, %v975_v16 }
0x1177   :  { %v977_v14 = vsel %vm976_vm3, 1, %v1414_v1 }
0x1178   :  { %v979_v9 = vshrl.u32 %v977_v14, 16  ;;  %v978_v18 = vand.u32 65535, %v977_v14 }
0x117a   :  { %v981_v38 = vcvt.s32.f32 %v979_v9  ;;  %v980_v52 = vcvt.s32.f32 %v978_v18 }
0x117c   :  { %984 = vadd.xlane.f32.xlu0 %v981_v38  ;;  %982 = vadd.xlane.f32.xlu1 %v980_v52 }
0x1209   :  { %v985_v4 = vpop.xlane.xlu0 %984  ;;  %v983_v2 = vpop.xlane.xlu1 %982 }
0x120a   :  { %v987_v40 = vcvt.f32.s32 %v985_v4  ;;  %v986_v19 = vcvt.f32.s32 %v983_v2 }
0x120c   :  { %v988_v61 = vshll.u32 %v987_v40, 16 }
0x120e   :  { %v989_v3 = vadd.s32 %v988_v61, %v986_v19 }
0x1210   :  { %vm990_vm4 = vcmp.ge.s32.totalorder %v989_v3, %v1774_v49 }
0x1211   :  { %v991_v7 = vsel %vm990_vm4, %v975_v16, %v971_v8  ;;  %v992_v22 = vsel %vm990_vm4, %v972_v55, %v975_v16 }
0x1212   :  { %v993_v37 = vsub.s32 %v992_v22, %v991_v7 }
0x1214   :  { %v994_v20 = vshra.s32 %v993_v37, 1 }
0x1216   :  { %v995_v5 = vadd.s32 %v994_v20, %v991_v7 }
0x1218   :  { %vm996_vm5 = vcmp.ge.s32.totalorder %v1758_v28, %v995_v5 }
0x1219   :  { %v997_v45 = vsel %vm996_vm5, 1, %v1414_v1 }
0x121a   :  { %v999_v39 = vshrl.u32 %v997_v45, 16  ;;  %v998_v24 = vand.u32 65535, %v997_v45 }
0x121c   :  { %v1001_v23 = vcvt.s32.f32 %v999_v39  ;;  %v1000_v47 = vcvt.s32.f32 %v998_v24 }
0x121e   :  { %1004 = vadd.xlane.f32.xlu0 %v1001_v23  ;;  %1002 = vadd.xlane.f32.xlu1 %v1000_v47 }
0x12ab   :  { %v1005_v43 = vpop.xlane.xlu0 %1004  ;;  %v1003_v33 = vpop.xlane.xlu1 %1002 }
0x12ac   :  { %v1007_v32 = vcvt.f32.s32 %v1005_v43  ;;  %v1006_v30 = vcvt.f32.s32 %v1003_v33 }
0x12ae   :  { %v1008_v63 = vshll.u32 %v1007_v32, 16 }
0x12b0   :  { %v1009_v26 = vadd.s32 %v1008_v63, %v1006_v30 }
0x12b2   :  { %vm1010_vm6 = vcmp.ge.s32.totalorder %v1009_v26, %v1774_v49 }
0x12b3   :  { %v1011_v27 = vsel %vm1010_vm6, %v995_v5, %v991_v7  ;;  %v1012_v59 = vsel %vm1010_vm6, %v992_v22, %v995_v5 }
0x12b4   :  { %v1013_v50 = vsub.s32 %v1012_v59, %v1011_v27 }
0x12b6   :  { %v1014_v12 = vshra.s32 %v1013_v50, 1 }
0x12b8   :  { %v1015_v29 = vadd.s32 %v1014_v12, %v1011_v27 }
0x12ba   :  { %vm1016_vm7 = vcmp.ge.s32.totalorder %v1758_v28, %v1015_v29 }
0x12bb   :  { %v1017_v42 = vsel %vm1016_vm7, 1, %v1414_v1 }
0x12bc   :  { %v1019_v51 = vshrl.u32 %v1017_v42, 16  ;;  %v1018_v31 = vand.u32 65535, %v1017_v42 }
0x12be   :  { %v1021_v35 = vcvt.s32.f32 %v1019_v51  ;;  %v1020_v21 = vcvt.s32.f32 %v1018_v31 }
0x12c0   :  { %1024 = vadd.xlane.f32.xlu0 %v1021_v35  ;;  %1022 = vadd.xlane.f32.xlu1 %v1020_v21 }
0x134d   :  { %v1025_v48 = vpop.xlane.xlu0 %1024  ;;  %v1023_v6 = vpop.xlane.xlu1 %1022 }
0x134e   :  { %v1027_v36 = vcvt.f32.s32 %v1025_v48  ;;  %v1026_v44 = vcvt.f32.s32 %v1023_v6 }
0x1350   :  { %v1028_v0 = vshll.u32 %v1027_v36, 16 }
0x1352   :  { %v1029_v13 = vadd.s32 %v1028_v0, %v1026_v44 }
0x1354   :  { %vm1030_vm8 = vcmp.ge.s32.totalorder %v1029_v13, %v1774_v49 }
0x1355   :  { %v1031_v15 = vsel %vm1030_vm8, %v1015_v29, %v1011_v27  ;;  %v1032_v53 = vsel %vm1030_vm8, %v1012_v59, %v1015_v29 }
0x1356   :  { %v1033_v46 = vsub.s32 %v1032_v53, %v1031_v15 }
0x1358   :  { %v1034_v58 = vshra.s32 %v1033_v46, 1 }
0x135a   :  { %v1035_v60 = vadd.s32 %v1034_v58, %v1031_v15 }
0x135c   :  { %vm1036_vm9 = vcmp.ge.s32.totalorder %v1758_v28, %v1035_v60 }
0x135d   :  { %v1037_v41 = vsel %vm1036_vm9, 1, %v1414_v1 }
0x135e   :  { %v1039_v54 = vshrl.u32 %v1037_v41, 16  ;;  %v1038_v8 = vand.u32 65535, %v1037_v41 }
0x1360   :  { %v1041_v55 = vcvt.s32.f32 %v1039_v54  ;;  %v1040_v10 = vcvt.s32.f32 %v1038_v8 }
0x1362   :  { %1044 = vadd.xlane.f32.xlu0 %v1041_v55  ;;  %1042 = vadd.xlane.f32.xlu1 %v1040_v10 }
0x13ef   :  { %v1045_v11 = vpop.xlane.xlu0 %1044  ;;  %v1043_v16 = vpop.xlane.xlu1 %1042 }
0x13f0   :  { %v1047_v14 = vcvt.f32.s32 %v1045_v11  ;;  %v1046_v18 = vcvt.f32.s32 %v1043_v16 }
0x13f2   :  { %v1048_v9 = vshll.u32 %v1047_v14, 16 }
0x13f4   :  { %v1049_v38 = vadd.s32 %v1048_v9, %v1046_v18 }
0x13f6   :  { %vm1050_vm10 = vcmp.ge.s32.totalorder %v1049_v38, %v1774_v49 }
0x13f7   :  { %v1051_v52 = vsel %vm1050_vm10, %v1035_v60, %v1031_v15  ;;  %v1052_v4 = vsel %vm1050_vm10, %v1032_v53, %v1035_v60  ;;  %vm1225_vm10 = vcmp.lt.s32.totalorder %v1525_v34, 2 }
0x13f8   :  { %v1053_v2 = vsub.s32 %v1052_v4, %v1051_v52 }
0x13fa   :  { %v1054_v40 = vshra.s32 %v1053_v2, 1 }
0x13fc   :  { %v1055_v61 = vadd.s32 %v1054_v40, %v1051_v52 }
0x13fe   :  { %vm1056_vm11 = vcmp.ge.s32.totalorder %v1758_v28, %v1055_v61 }
0x13ff   :  { %v1057_v19 = vsel %vm1056_vm11, 1, %v1414_v1  ;;  %vm1227_vm11 = vcmask 7168  }
0x1400   :  { %v1059_v3 = vshrl.u32 %v1057_v19, 16  ;;  %v1058_v7 = vand.u32 65535, %v1057_v19 }
0x1402   :  { %v1061_v22 = vcvt.s32.f32 %v1059_v3  ;;  %v1060_v37 = vcvt.s32.f32 %v1058_v7 }
0x1404   :  { %1064 = vadd.xlane.f32.xlu0 %v1061_v22  ;;  %1062 = vadd.xlane.f32.xlu1 %v1060_v37 }
0x1491   :  { %v1065_v20 = vpop.xlane.xlu0 %1064  ;;  %v1063_v5 = vpop.xlane.xlu1 %1062 }
0x1492   :  { %v1067_v45 = vcvt.f32.s32 %v1065_v20  ;;  %v1066_v24 = vcvt.f32.s32 %v1063_v5 }
0x1494   :  { %v1068_v39 = vshll.u32 %v1067_v45, 16 }
0x1496   :  { %v1069_v23 = vadd.s32 %v1068_v39, %v1066_v24 }
0x1498   :  { %vm1070_vm12 = vcmp.ge.s32.totalorder %v1069_v23, %v1774_v49 }
0x1499   :  { %v1071_v47 = vsel %vm1070_vm12, %v1055_v61, %v1051_v52  ;;  %v1072_v43 = vsel %vm1070_vm12, %v1052_v4, %v1055_v61  ;;  %vm1216_vm12 = vcmp.gt.s32.totalorder %v1774_v49, 0 }
0x149a   :  { %v1073_v33 = vsub.s32 %v1072_v43, %v1071_v47 }
0x149c   :  { %v1074_v32 = vshra.s32 %v1073_v33, 1 }
0x149e   :  { %v1075_v63 = vadd.s32 %v1074_v32, %v1071_v47 }
0x14a0   :  { %vm1076_vm13 = vcmp.ge.s32.totalorder %v1758_v28, %v1075_v63 }
0x14a1   :  { %v1077_v30 = vsel %vm1076_vm13, 1, %v1414_v1  ;;  %vm1261_vm13 = vcmp.eq.s32.totalorder %v1593_v17, 0 }
0x14a2   :  { %v1079_v26 = vshrl.u32 %v1077_v30, 16  ;;  %v1078_v27 = vand.u32 65535, %v1077_v30 }
0x14a4   :  { %v1081_v59 = vcvt.s32.f32 %v1079_v26  ;;  %v1080_v50 = vcvt.s32.f32 %v1078_v27 }
0x14a6   :  { %1084 = vadd.xlane.f32.xlu0 %v1081_v59  ;;  %1082 = vadd.xlane.f32.xlu1 %v1080_v50 }
0x1533   :  { %v1085_v12 = vpop.xlane.xlu0 %1084  ;;  %v1083_v29 = vpop.xlane.xlu1 %1082 }
0x1534   :  { %v1087_v42 = vcvt.f32.s32 %v1085_v12  ;;  %v1086_v31 = vcvt.f32.s32 %v1083_v29 }
0x1536   :  { %v1088_v51 = vshll.u32 %v1087_v42, 16 }
0x1538   :  { %v1089_v35 = vadd.s32 %v1088_v51, %v1086_v31 }
0x153a   :  { %vm1090_vm14 = vcmp.ge.s32.totalorder %v1089_v35, %v1774_v49 }
0x153b   :  { %v1091_v21 = vsel %vm1090_vm14, %v1075_v63, %v1071_v47  ;;  %v1092_v48 = vsel %vm1090_vm14, %v1072_v43, %v1075_v63  ;;  %vm1264_vm14 = vcmp.eq.s32.totalorder %v1593_v17, 1 }
0x153c   :  { %v1093_v6 = vsub.s32 %v1092_v48, %v1091_v21 }
0x153e   :  { %v1094_v36 = vshra.s32 %v1093_v6, 1 }
0x1540   :  { %v1095_v0 = vadd.s32 %v1094_v36, %v1091_v21 }
0x1542   :  { %vm1096_vm15 = vcmp.ge.s32.totalorder %v1758_v28, %v1095_v0 }
0x1543   :  { %v1097_v44 = vsel %vm1096_vm15, 1, %v1414_v1  ;;  %vm1268_vm15 = vcmp.eq.s32.totalorder %v1593_v17, 2 }
0x1544   :  { %v1099_v13 = vshrl.u32 %v1097_v44, 16  ;;  %v1098_v15 = vand.u32 65535, %v1097_v44 }
0x1546   :  { %v1101_v53 = vcvt.s32.f32 %v1099_v13  ;;  %v1100_v46 = vcvt.s32.f32 %v1098_v15 }
0x1548   :  { %1104 = vadd.xlane.f32.xlu0 %v1101_v53  ;;  %1102 = vadd.xlane.f32.xlu1 %v1100_v46 }
0x15d5   :  { %v1105_v58 = vpop.xlane.xlu0 %1104  ;;  %v1103_v60 = vpop.xlane.xlu1 %1102 }
0x15d6   :  { %v1107_v41 = vcvt.f32.s32 %v1105_v58  ;;  %v1106_v8 = vcvt.f32.s32 %v1103_v60 }
0x15d8   :  { %v1108_v54 = vshll.u32 %v1107_v41, 16 }
0x15da   :  { %v1109_v55 = vadd.s32 %v1108_v54, %v1106_v8 }
0x15dc   :  { %vm1110_vm0 = vcmp.ge.s32.totalorder %v1109_v55, %v1774_v49 }
0x15dd   :  { %v1111_v10 = vsel %vm1110_vm0, %v1095_v0, %v1091_v21  ;;  %v1112_v11 = vsel %vm1110_vm0, %v1092_v48, %v1095_v0 }
0x15de   :  { %v1113_v16 = vsub.s32 %v1112_v11, %v1111_v10 }
0x15e0   :  { %v1114_v14 = vshra.s32 %v1113_v16, 1 }
0x15e2   :  { %v1115_v9 = vadd.s32 %v1114_v14, %v1111_v10 }
0x15e4   :  { %vm1116_vm1 = vcmp.ge.s32.totalorder %v1758_v28, %v1115_v9 }
0x15e5   :  { %v1117_v18 = vsel %vm1116_vm1, 1, %v1414_v1 }
0x15e6   :  { %v1119_v38 = vshrl.u32 %v1117_v18, 16  ;;  %v1118_v52 = vand.u32 65535, %v1117_v18 }
0x15e8   :  { %v1121_v4 = vcvt.s32.f32 %v1119_v38  ;;  %v1120_v2 = vcvt.s32.f32 %v1118_v52 }
0x15ea   :  { %1124 = vadd.xlane.f32.xlu0 %v1121_v4  ;;  %1122 = vadd.xlane.f32.xlu1 %v1120_v2 }
0x1677   :  { %v1125_v40 = vpop.xlane.xlu0 %1124  ;;  %v1123_v61 = vpop.xlane.xlu1 %1122 }
0x1678   :  { %v1127_v19 = vcvt.f32.s32 %v1125_v40  ;;  %v1126_v7 = vcvt.f32.s32 %v1123_v61 }
0x167a   :  { %v1128_v3 = vshll.u32 %v1127_v19, 16 }
0x167c   :  { %v1129_v22 = vadd.s32 %v1128_v3, %v1126_v7 }
0x167e   :  { %vm1130_vm2 = vcmp.ge.s32.totalorder %v1129_v22, %v1774_v49 }
0x167f   :  { %v1131_v37 = vsel %vm1130_vm2, %v1115_v9, %v1111_v10  ;;  %v1132_v20 = vsel %vm1130_vm2, %v1112_v11, %v1115_v9 }
0x1680   :  { %v1133_v5 = vsub.s32 %v1132_v20, %v1131_v37 }
0x1682   :  { %v1134_v45 = vshra.s32 %v1133_v5, 1 }
0x1684   :  { %v1135_v39 = vadd.s32 %v1134_v45, %v1131_v37 }
0x1686   :  { %vm1136_vm3 = vcmp.ge.s32.totalorder %v1758_v28, %v1135_v39 }
0x1687   :  { %v1137_v24 = vsel %vm1136_vm3, 1, %v1414_v1 }
0x1688   :  { %v1139_v23 = vshrl.u32 %v1137_v24, 16  ;;  %v1138_v47 = vand.u32 65535, %v1137_v24  ;;  %v1249_v24 = vcvt.s32.f32 %v1771_v57 }
0x168a   :  { %v1141_v43 = vcvt.s32.f32 %v1139_v23  ;;  %v1140_v33 = vcvt.s32.f32 %v1138_v47 }
0x168c   :  { %1144 = vadd.xlane.f32.xlu0 %v1141_v43  ;;  %1142 = vadd.xlane.f32.xlu1 %v1140_v33  ;;  %v1250_v33 = vsel %vm1225_vm10, %v1249_v24, 0.0 }
0x168d   :  { %v1251_v57 = vsel %vm1227_vm11, %v1250_v33, 0.0 }
0x1719   :  { %v1145_v32 = vpop.xlane.xlu0 %1144  ;;  %v1143_v63 = vpop.xlane.xlu1 %1142 }
0x171a   :  { %v1147_v30 = vcvt.f32.s32 %v1145_v32  ;;  %v1146_v27 = vcvt.f32.s32 %v1143_v63 }
0x171c   :  { %v1148_v26 = vshll.u32 %v1147_v30, 16 }
0x171e   :  { %v1149_v59 = vadd.s32 %v1148_v26, %v1146_v27 }
0x1720   :  { %vm1150_vm4 = vcmp.ge.s32.totalorder %v1149_v59, %v1774_v49 }
0x1721   :  { %v1151_v50 = vsel %vm1150_vm4, %v1135_v39, %v1131_v37  ;;  %v1152_v12 = vsel %vm1150_vm4, %v1132_v20, %v1135_v39 }
0x1722   :  { %v1153_v29 = vsub.s32 %v1152_v12, %v1151_v50 }
0x1724   :  { %v1154_v42 = vshra.s32 %v1153_v29, 1 }
0x1726   :  { %v1155_v51 = vadd.s32 %v1154_v42, %v1151_v50 }
0x1728   :  { %vm1156_vm5 = vcmp.ge.s32.totalorder %v1758_v28, %v1155_v51 }
0x1729   :  { %v1157_v31 = vsel %vm1156_vm5, 1, %v1414_v1 }
0x172a   :  { %v1159_v35 = vshrl.u32 %v1157_v31, 16  ;;  %v1158_v21 = vand.u32 65535, %v1157_v31 }
0x172c   :  { %v1161_v48 = vcvt.s32.f32 %v1159_v35  ;;  %v1160_v6 = vcvt.s32.f32 %v1158_v21 }
0x172e   :  { %1164 = vadd.xlane.f32.xlu0 %v1161_v48  ;;  %1162 = vadd.xlane.f32.xlu1 %v1160_v6 }
0x17bb   :  { %v1165_v36 = vpop.xlane.xlu0 %1164  ;;  %v1163_v0 = vpop.xlane.xlu1 %1162 }
0x17bc   :  { %v1167_v44 = vcvt.f32.s32 %v1165_v36  ;;  %v1166_v15 = vcvt.f32.s32 %v1163_v0 }
0x17be   :  { %v1168_v13 = vshll.u32 %v1167_v44, 16 }
0x17c0   :  { %v1169_v53 = vadd.s32 %v1168_v13, %v1166_v15 }
0x17c2   :  { %vm1170_vm6 = vcmp.ge.s32.totalorder %v1169_v53, %v1774_v49 }
0x17c3   :  { %v1171_v46 = vsel %vm1170_vm6, %v1155_v51, %v1151_v50  ;;  %v1172_v58 = vsel %vm1170_vm6, %v1152_v12, %v1155_v51 }
0x17c4   :  { %v1173_v60 = vsub.s32 %v1172_v58, %v1171_v46 }
0x17c6   :  { %v1174_v41 = vshra.s32 %v1173_v60, 1 }
0x17c8   :  { %v1175_v54 = vadd.s32 %v1174_v41, %v1171_v46 }
0x17ca   :  { %vm1176_vm7 = vcmp.ge.s32.totalorder %v1758_v28, %v1175_v54 }
0x17cb   :  { %v1177_v8 = vsel %vm1176_vm7, 1, %v1414_v1 }
0x17cc   :  { %v1179_v55 = vshrl.u32 %v1177_v8, 16  ;;  %v1178_v10 = vand.u32 65535, %v1177_v8 }
0x17ce   :  { %v1181_v11 = vcvt.s32.f32 %v1179_v55  ;;  %v1180_v16 = vcvt.s32.f32 %v1178_v10 }
0x17d0   :  { %1184 = vadd.xlane.f32.xlu0 %v1181_v11  ;;  %1182 = vadd.xlane.f32.xlu1 %v1180_v16 }
0x185d   :  { %v1185_v14 = vpop.xlane.xlu0 %1184  ;;  %v1183_v9 = vpop.xlane.xlu1 %1182 }
0x185e   :  { %v1187_v18 = vcvt.f32.s32 %v1185_v14  ;;  %v1186_v52 = vcvt.f32.s32 %v1183_v9 }
0x1860   :  { %v1188_v38 = vshll.u32 %v1187_v18, 16 }
0x1862   :  { %v1189_v4 = vadd.s32 %v1188_v38, %v1186_v52 }
0x1864   :  { %vm1190_vm8 = vcmp.ge.s32.totalorder %v1189_v4, %v1774_v49 }
0x1865   :  { %v1191_v2 = vsel %vm1190_vm8, %v1175_v54, %v1171_v46 }
0x1866   :  { %vm1193_vm9 = vcmp.gt.f32.partialorder %v1751_v56, %v1191_v2 }
0x1867   :  { %v1194_v28 = vsel %vm1193_vm9, 1, %v1414_v1  ;;  %v1207_v7 = vsel %vm1193_vm9, %v1751_v56, 0.0 }
0x1868   :  { %v1196_v40 = vshrl.u32 %v1194_v28, 16  ;;  %v1195_v61 = vand.u32 65535, %v1194_v28 }
0x186a   :  { %v1198_v19 = vcvt.s32.f32 %v1196_v40  ;;  %v1197_v3 = vcvt.s32.f32 %v1195_v61 }
0x186c   :  { %1201 = vadd.xlane.f32.xlu0 %v1198_v19  ;;  %1199 = vadd.xlane.f32.xlu1 %v1197_v3 }
0x1870   :  { %1208 = vadd.xlane.f32.xlu0 %v1207_v7  ;;  %1211 = vadd.xlane.f32.xlu1 %v1755_v25 }
0x1874   :  { %465 = vadd.xlane.f32.xlu0 %v1766_v62 }
0x18f9   :  { %v1202_v22 = vpop.xlane.xlu0 %1201  ;;  %v1200_v37 = vpop.xlane.xlu1 %1199 }
0x18fa   :  { %v1204_v20 = vcvt.f32.s32 %v1202_v22  ;;  %v1203_v45 = vcvt.f32.s32 %v1200_v37 }
0x18fc   :  { %v1205_v5 = vshll.u32 %v1204_v20, 16 }
0x18fd   :  { %v1209_v39 = vpop.xlane.xlu0 %1208  ;;  %v1212_v30 = vpop.xlane.xlu1 %1211 }
0x18fe   :  { %v1206_v1 = vadd.s32 %v1205_v5, %v1203_v45 }
0x1900   :  { %v1213_v23 = vsub.s32 %v1774_v49, %v1206_v1 }
0x1901   :  { %v466_v47 = vpop.xlane.xlu0 %465 }
0x1902   :  { %v1214_v56 = vcvt.s32.f32 %v1213_v23  ;;  %v1226_v25 = vsel %vm1225_vm10, %v466_v47, 0.0 }
0x1903   :  { %v1228_v62 = vsel %vm1227_vm11, %v1226_v25, 0.0 }
0x1904   :  { %v1215_v43 = vmul.f32 %v1214_v56, %v1191_v2  ;;  %1229 = vadd.xlane.f32.xlu1 %v1228_v62 }
0x1906   :  { %v1217_v32 = vadd.f32 %v1215_v43, %v1209_v39 }
0x1908   :  { %v1218_v63 = vsel %vm1216_vm12, %v1217_v32, 0.0  ;;  %1252 = vadd.xlane.f32.xlu1 %v1251_v57 }
0x1909   :  { %v1219_v26 = vadd.f32 %v1218_v63, %v1212_v30 }
0x190b   :  { %v1238_v27 = vsel %vm1225_vm10, %v1219_v26, 0.0 }
0x190c   :  { %v1239_v59 = vsel %vm1227_vm11, %v1238_v27, 0.0 }
0x190d   :  { %1240 = vadd.xlane.f32.xlu0 %v1239_v59 }
0x1991   :  { %v1230_v50 = vpop.xlane.xlu1 %1229 }
0x1992   :  { %v1231_v12 = vrot.slane %v1230_v50, 4 }
0x1994   :  { %v1232_v29 = vadd.f32 %v1231_v12, %v1230_v50 }
0x1995   :  { %v1253_v42 = vpop.xlane.xlu1 %1252 }
0x1996   :  { %v1233_v51 = vrot.slane %v1232_v29, 2  ;;  %v1254_v31 = vrot.slane %v1253_v42, 4 }
0x1998   :  { %v1255_v35 = vadd.f32 %v1254_v31, %v1253_v42  ;;  %v1234_v21 = vadd.f32 %v1233_v51, %v1232_v29 }
0x199a   :  { %v1256_v48 = vrot.slane %v1255_v35, 2  ;;  %v1241_v49 = vpop.xlane.xlu0 %1240  ;;  %v1235_v6 = vrot.slane %v1234_v21, 1 }
0x199b   :  { %v1242_v36 = vrot.slane %v1241_v49, 4 }
0x199c   :  { %v1236_v0 = vadd.f32 %v1235_v6, %v1234_v21  ;;  %v1257_v13 = vadd.f32 %v1256_v48, %v1255_v35 }
0x199d   :  { %v1243_v44 = vadd.f32 %v1242_v36, %v1241_v49 }
0x199e   :  { %1297 = vpush %v1236_v0  ;;  %v1258_v53 = vrot.slane %v1257_v13, 1 }
0x199f   :  { %v1244_v34 = vrot.slane %v1243_v44, 2 }
0x19a0   :  { %v1259_v60 = vadd.f32 %v1258_v53, %v1257_v13 }
0x19a1   :  { %v1245_v15 = vadd.f32 %v1244_v34, %v1243_v44 }
0x19a3   :  { %v1246_v46 = vrot.slane %v1245_v15, 1 }
0x19a5   :  { %v1247_v58 = vadd.f32 %v1246_v46, %v1245_v15 }
0x19a7   :  { %1299 = vpush %v1247_v58 }
0x19a8   :  { %1301 = vpush %v1259_v60 }
0x19cf   :  { %s1298_s1 = spop %1297 }
0x19d0   :  { %v1262_v41 = vstv %s1298_s1 }
0x19d1   :  { %v1263_v8 = vsel %vm1261_vm13, %v1262_v41, 0.0 }
0x19d8   :  { %s1300_s22 = spop %1299 }
0x19d9   :  { %v1265_v54 = vstv %s1300_s22  ;;  %s1302_s23 = spop %1301 }
0x19da   :  { %v1266_v55 = vsel %vm1264_vm14, %v1265_v54, 0.0  ;;  %v1269_v10 = vstv %s1302_s23 }
0x19db   :  { %v1267_v11 = vadd.f32 %v1266_v55, %v1263_v8  ;;  %v1270_v16 = vsel %vm1268_vm15, %v1269_v10, 0.0 }
0x19dd   :  { %v1271_v14 = vadd.f32 %v1270_v16, %v1267_v11 }
0x19df   :  { %1272 = vst [vmem:[#allocation5] sm:$0x1] %v1271_v14 }
0x19e0   :  { %1395 = shalt.err (!%p1392_p12)
}
0x19e1   :  { %s1396_s30 = scalar_lea.hbm %s1901_s4, 16 }
0x19e2   :  { %p1397_p13 = scmp.ne.s32.totalorder %s1901_s4, %s1396_s30  ;;  %p1400_p0 = scmp.lt.u32.totalorder %s1396_s30, %s1901_s4 }
0x19e4   :  { %p1402_p1 = pnand %p1400_p0, %p1397_p13 }
0x19e6   :  { %1405 = shalt.err (!%p1402_p1)
}
0x19e7   :  { %1282 = dma.vmem_to_hbm [thread:$0]  %s1280_s25, 16, %s1901_s4, [#allocation4]  }
0x19e8   :  { %1408 = dma.done.wait [#allocation4], 16  }
0x19e9   :  { %1409 = vsyncadd [#allocation4], 4294967280 }
0x19ea   :  { %1286 = vsyncpa [#allocation3], 1 }
0x19eb   :  { %1287 = vsyncpa [#allocation4], 1 }

</bundles_post_ra>
